<compile_context>
chip_gen: v5e
topology: v5e:2x2
jax: 0.10.0
libtpu: 0.0.40
codegen_flags: <defaults>
</compile_context>

<pallas_src>
import functools

import jax
import jax.numpy as jnp
import numpy as np
from jax.experimental import pallas as pl
from jax.experimental.pallas import tpu as pltpu


# ----------------------------------------------------------------------------
# Fused Pallas kernel: whole BasicBlock for one batch element
# ----------------------------------------------------------------------------
def _basic_block_kernel(x_ref, w1_ref, s1_ref, b1_ref, w2_ref, s2_ref, b2_ref,
                        o_ref, pad_ref):
    """Fused BasicBlock.

    x_ref:  (1, H, W, C)      input tile (NHWC)
    w*_ref: (3, 3, C, C)      conv weights (HWIO)
    s*_ref: (1, 1, C)         folded BN scale
    b*_ref: (1, 1, C)         folded BN bias
    o_ref:  (1, H, W, C)      output tile
    pad_ref:(H+2, W+2, C)     VMEM scratch, halo buffer reused by both convs
    """
    _, H, W, C = o_ref.shape

    def conv3x3(w_ref):
        # 9-tap accumulation; f32 accumulation on the MXU.
        acc = None
        for dy in range(3):
            for dx in range(3):
                patch = pad_ref[dy:dy + H, dx:dx + W, :]           # (H, W, C)
                contrib = jax.lax.dot_general(
                    patch, w_ref[dy, dx],
                    dimension_numbers=(((2,), (0,)), ((), ())),
                    preferred_element_type=jnp.float32)
                acc = contrib if acc is None else acc + contrib
        return acc                                                  # (H, W, C) f32

    # ---- conv1 + bn1 + relu1 : halo handled in VMEM (no host-side pad) ----
    pad_ref[...] = jnp.zeros_like(pad_ref)
    pad_ref[1:H + 1, 1:W + 1, :] = x_ref[0]
    y = conv3x3(w1_ref)
    y = jnp.maximum(y * s1_ref[...] + b1_ref[...], 0.0)   # relu1 (+identity quantizer)

    # ---- conv2 + bn2 + residual + relu2 : y never leaves VMEM ----
    # Border of pad_ref is still zero; only the interior is overwritten.
    pad_ref[1:H + 1, 1:W + 1, :] = y.astype(pad_ref.dtype)
    z = conv3x3(w2_ref)
    z = z * s2_ref[...] + b2_ref[...]
    z = z + x_ref[0].astype(jnp.float32)                  # identity (downsample=None)
    z = jnp.maximum(z, 0.0)                               # relu2 (+identity quantizer)
    o_ref[0] = z.astype(o_ref.dtype)


def _build_basic_block_call(N, H, W, C, dtype=jnp.float32):
    return pl.pallas_call(
        _basic_block_kernel,
        out_shape=jax.ShapeDtypeStruct((N, H, W, C), dtype),
        grid=(N,),
        in_specs=[
            pl.BlockSpec((1, H, W, C), lambda n: (n, 0, 0, 0)),   # x
            pl.BlockSpec((3, 3, C, C), lambda n: (0, 0, 0, 0)),   # w1
            pl.BlockSpec((1, 1, C), lambda n: (0, 0, 0)),         # bn1 scale
            pl.BlockSpec((1, 1, C), lambda n: (0, 0, 0)),         # bn1 bias
            pl.BlockSpec((3, 3, C, C), lambda n: (0, 0, 0, 0)),   # w2
            pl.BlockSpec((1, 1, C), lambda n: (0, 0, 0)),         # bn2 scale
            pl.BlockSpec((1, 1, C), lambda n: (0, 0, 0)),         # bn2 bias
        ],
        out_specs=pl.BlockSpec((1, H, W, C), lambda n: (n, 0, 0, 0)),
        scratch_shapes=[pltpu.VMEM((H + 2, W + 2, C), jnp.float32)],
        compiler_params=pltpu.CompilerParams(
            dimension_semantics=("parallel",)),   # batch axis sharded across TCs
    )


# ----------------------------------------------------------------------------
# BasicBlock forward (wrapper / glue)
# ----------------------------------------------------------------------------
def _fold_bn(gamma, beta, running_mean, running_var, eps=1e-5):
    scale = gamma / jnp.sqrt(running_var + eps)
    bias = beta - running_mean * scale
    return scale.reshape(1, 1, -1), bias.reshape(1, 1, -1)


@jax.jit
def basic_block_forward(x_nchw, w1_hwio, w2_hwio,
                        bn1_scale, bn1_bias, bn2_scale, bn2_bias):
    """BasicBlock.forward.  x_nchw: (N, C, H, W) float32 (PyTorch layout)."""
    N, C, H, W = x_nchw.shape

    # NCHW -> NHWC for the lane-dense-channel kernel layout.
    # (In a full model, keep everything NHWC to avoid these per-block
    #  transposes — they are pure HBM traffic done by XLA.)
    x = jnp.transpose(x_nchw, (0, 2, 3, 1))

    call = _build_basic_block_call(N, H, W, C, x.dtype)
    y = call(x, w1_hwio, bn1_scale, bn1_bias, w2_hwio, bn2_scale, bn2_bias)

    # back to NCHW
    return jnp.transpose(y, (0, 3, 1, 2))


# ----------------------------------------------------------------------------
# Pure-JAX reference (for in-script verification)
# ----------------------------------------------------------------------------
def _ref_forward(x_nchw, w1_hwio, w2_hwio, bn1_scale, bn1_bias, bn2_scale, bn2_bias):
    x = jnp.transpose(x_nchw, (0, 2, 3, 1))
    dn = ("NHWC", "HWIO", "NHWC")

    y = jax.lax.conv_general_dilated(x, w1_hwio, (1, 1),
                                     ((1, 1), (1, 1)), dimension_numbers=dn)
    y = y * bn1_scale.reshape(1, 1, 1, -1) + bn1_bias.reshape(1, 1, 1, -1)
    y = jnp.maximum(y, 0.0)

    y = jax.lax.conv_general_dilated(y, w2_hwio, (1, 1),
                                     ((1, 1), (1, 1)), dimension_numbers=dn)
    y = y * bn2_scale.reshape(1, 1, 1, -1) + bn2_bias.reshape(1, 1, 1, -1)
    y = y + x
    y = jnp.maximum(y, 0.0)
    return jnp.transpose(y, (0, 3, 1, 2))


# ----------------------------------------------------------------------------
# Main
# ----------------------------------------------------------------------------
if __name__ == "__main__":
    # Shapes implied by the module: inplanes == planes, stride=1,
    # downsample=None so the residual shapes line up.
    N, C, H, W = 2, 4, 16, 16
    inplanes = planes = C

    key = jax.random.PRNGKey(0)
    k_x, k_w1, k_w2 = jax.random.split(key, 3)

    x = jax.random.normal(k_x, (N, C, H, W), dtype=jnp.float32)

    # Conv weight init bounds as in nn.Conv2d.reset_parameters
    # (kaiming-uniform-like): uniform(-1/sqrt(fan_in), 1/sqrt(fan_in)).
    fan_in1 = inplanes * 3 * 3
    fan_in2 = planes * 3 * 3
    w1_oihw = jax.random.uniform(k_w1, (planes, inplanes, 3, 3),
                                 minval=-1.0 / np.sqrt(fan_in1),
                                 maxval=1.0 / np.sqrt(fan_in1),
                                 dtype=jnp.float32)
    w2_oihw = jax.random.uniform(k_w2, (planes, planes, 3, 3),
                                 minval=-1.0 / np.sqrt(fan_in2),
                                 maxval=1.0 / np.sqrt(fan_in2),
                                 dtype=jnp.float32)
    # OIHW (PyTorch) -> HWIO (kernel layout).
    w1_hwio = jnp.transpose(w1_oihw, (2, 3, 1, 0))
    w2_hwio = jnp.transpose(w2_oihw, (2, 3, 1, 0))

    # BatchNorm params exactly as initialized by the module (gamma=1, beta=0)
    # with fresh running stats (mean=0, var=1); folded into scale/bias.
    gamma = jnp.ones((planes,), jnp.float32)
    beta = jnp.zeros((planes,), jnp.float32)
    rmean = jnp.zeros((planes,), jnp.float32)
    rvar = jnp.ones((planes,), jnp.float32)
    bn1_scale, bn1_bias = _fold_bn(gamma, beta, rmean, rvar)
    bn2_scale, bn2_bias = _fold_bn(gamma, beta, rmean, rvar)

    out = basic_block_forward(x, w1_hwio, w2_hwio,
                              bn1_scale, bn1_bias, bn2_scale, bn2_bias)
    out = jax.block_until_ready(out)

    ref = _ref_forward(x, w1_hwio, w2_hwio,
                       bn1_scale.reshape(-1), bn1_bias.reshape(-1),
                       bn2_scale.reshape(-1), bn2_bias.reshape(-1))
    ref = jax.block_until_ready(ref)

    assert out.shape == (N, C, H, W)
    np.testing.assert_allclose(np.asarray(out), np.asarray(ref),
                               rtol=1e-4, atol=1e-4)
    print("KERNEL_OK")
</pallas_src>

<mosaic_0001>
module attributes {stable_mosaic.version = 11 : i64} {
  func.func @_basic_block_kernel(%arg0: i32, %arg1: memref<1x16x16x4xf32, #tpu.memory_space<vmem>>, %arg2: memref<3x3x4x4xf32, #tpu.memory_space<vmem>>, %arg3: memref<1x1x4xf32, #tpu.memory_space<vmem>>, %arg4: memref<1x1x4xf32, #tpu.memory_space<vmem>>, %arg5: memref<3x3x4x4xf32, #tpu.memory_space<vmem>>, %arg6: memref<1x1x4xf32, #tpu.memory_space<vmem>>, %arg7: memref<1x1x4xf32, #tpu.memory_space<vmem>>, %arg8: memref<1x16x16x4xf32, #tpu.memory_space<vmem>>, %arg9: memref<18x18x4xf32, #tpu.memory_space<vmem>>) attributes {dimension_semantics = [#tpu.dimension_semantics<parallel>], iteration_bounds = array<i64: 2>, scalar_prefetch = 0 : i64, scratch_operands = 1 : i64, tpu.core_type = #tpu.core_type<tc>, window_params = [{transform_indices = @transform_0, window_bounds = array<i64: 1, 16, 16, 4>}, {pipeline_mode = #tpu.pipeline_mode<synchronous>, transform_indices = @transform_1, window_bounds = array<i64: 3, 3, 4, 4>}, {pipeline_mode = #tpu.pipeline_mode<synchronous>, transform_indices = @transform_2, window_bounds = array<i64: 1, 1, 4>}, {pipeline_mode = #tpu.pipeline_mode<synchronous>, transform_indices = @transform_3, window_bounds = array<i64: 1, 1, 4>}, {pipeline_mode = #tpu.pipeline_mode<synchronous>, transform_indices = @transform_4, window_bounds = array<i64: 3, 3, 4, 4>}, {pipeline_mode = #tpu.pipeline_mode<synchronous>, transform_indices = @transform_5, window_bounds = array<i64: 1, 1, 4>}, {pipeline_mode = #tpu.pipeline_mode<synchronous>, transform_indices = @transform_6, window_bounds = array<i64: 1, 1, 4>}, {transform_indices = @transform_7, window_bounds = array<i64: 1, 16, 16, 4>}]} {
    %cst = arith.constant 0.000000e+00 : f32
    %0 = vector.broadcast %cst : f32 to vector<18x18x4xf32>
    %c0 = arith.constant 0 : index
    %c0_0 = arith.constant 0 : index
    %c0_1 = arith.constant 0 : index
    %1 = vector.load %arg9[%c0, %c0_0, %c0_1] : memref<18x18x4xf32, #tpu.memory_space<vmem>>, vector<18x18x4xf32>
    tpu.vector_store %arg9[%c0, %c0_0, %c0_1], %0 {strides = array<i32>} : memref<18x18x4xf32, #tpu.memory_space<vmem>>, vector<18x18x4xf32>,
    %c0_2 = arith.constant 0 : index
    %c0_3 = arith.constant 0 : index
    %c0_4 = arith.constant 0 : index
    %c0_5 = arith.constant 0 : index
    %2 = vector.load %arg1[%c0_2, %c0_3, %c0_4, %c0_5] : memref<1x16x16x4xf32, #tpu.memory_space<vmem>>, vector<1x16x16x4xf32>
    %3 = vector.shape_cast %2 : vector<1x16x16x4xf32> to vector<16x16x4xf32>
    %c1 = arith.constant 1 : index
    %c1_6 = arith.constant 1 : index
    %c0_7 = arith.constant 0 : index
    %4 = vector.load %arg9[%c1, %c1_6, %c0_7] : memref<18x18x4xf32, #tpu.memory_space<vmem>>, vector<16x16x4xf32>
    tpu.vector_store %arg9[%c1, %c1_6, %c0_7], %3 {strides = array<i32>} : memref<18x18x4xf32, #tpu.memory_space<vmem>>, vector<16x16x4xf32>,
    %c0_8 = arith.constant 0 : index
    %c0_9 = arith.constant 0 : index
    %c0_10 = arith.constant 0 : index
    %5 = vector.load %arg9[%c0_8, %c0_9, %c0_10] : memref<18x18x4xf32, #tpu.memory_space<vmem>>, vector<16x16x4xf32>
    %c0_11 = arith.constant 0 : index
    %c0_12 = arith.constant 0 : index
    %c0_13 = arith.constant 0 : index
    %c0_14 = arith.constant 0 : index
    %6 = vector.load %arg2[%c0_11, %c0_12, %c0_13, %c0_14] : memref<3x3x4x4xf32, #tpu.memory_space<vmem>>, vector<1x1x4x4xf32>
    %7 = vector.shape_cast %6 : vector<1x1x4x4xf32> to vector<4x4xf32>
    %cst_15 = arith.constant dense<0.000000e+00> : vector<16x16x4xf32>
    %8 = tpu.matmul %5, %7, %cst_15 {dimension_numbers = #tpu.dot_dimension_numbers<[2], [0], [0, 1], [1], [0, 0, 0, 1, 1, 1], [], []>} : vector<16x16x4xf32>, vector<4x4xf32>, vector<16x16x4xf32> -> vector<16x16x4xf32>
    %c0_16 = arith.constant 0 : index
    %c1_17 = arith.constant 1 : index
    %c0_18 = arith.constant 0 : index
    %9 = vector.load %arg9[%c0_16, %c1_17, %c0_18] : memref<18x18x4xf32, #tpu.memory_space<vmem>>, vector<16x16x4xf32>
    %c0_19 = arith.constant 0 : index
    %c1_20 = arith.constant 1 : index
    %c0_21 = arith.constant 0 : index
    %c0_22 = arith.constant 0 : index
    %10 = vector.load %arg2[%c0_19, %c1_20, %c0_21, %c0_22] : memref<3x3x4x4xf32, #tpu.memory_space<vmem>>, vector<1x1x4x4xf32>
    %11 = vector.shape_cast %10 : vector<1x1x4x4xf32> to vector<4x4xf32>
    %cst_23 = arith.constant dense<0.000000e+00> : vector<16x16x4xf32>
    %12 = tpu.matmul %9, %11, %cst_23 {dimension_numbers = #tpu.dot_dimension_numbers<[2], [0], [0, 1], [1], [0, 0, 0, 1, 1, 1], [], []>} : vector<16x16x4xf32>, vector<4x4xf32>, vector<16x16x4xf32> -> vector<16x16x4xf32>
    %13 = arith.addf %8, %12 : vector<16x16x4xf32>
    %c0_24 = arith.constant 0 : index
    %c2 = arith.constant 2 : index
    %c0_25 = arith.constant 0 : index
    %14 = vector.load %arg9[%c0_24, %c2, %c0_25] : memref<18x18x4xf32, #tpu.memory_space<vmem>>, vector<16x16x4xf32>
    %c0_26 = arith.constant 0 : index
    %c2_27 = arith.constant 2 : index
    %c0_28 = arith.constant 0 : index
    %c0_29 = arith.constant 0 : index
    %15 = vector.load %arg2[%c0_26, %c2_27, %c0_28, %c0_29] : memref<3x3x4x4xf32, #tpu.memory_space<vmem>>, vector<1x1x4x4xf32>
    %16 = vector.shape_cast %15 : vector<1x1x4x4xf32> to vector<4x4xf32>
    %cst_30 = arith.constant dense<0.000000e+00> : vector<16x16x4xf32>
    %17 = tpu.matmul %14, %16, %cst_30 {dimension_numbers = #tpu.dot_dimension_numbers<[2], [0], [0, 1], [1], [0, 0, 0, 1, 1, 1], [], []>} : vector<16x16x4xf32>, vector<4x4xf32>, vector<16x16x4xf32> -> vector<16x16x4xf32>
    %18 = arith.addf %13, %17 : vector<16x16x4xf32>
    %c1_31 = arith.constant 1 : index
    %c0_32 = arith.constant 0 : index
    %c0_33 = arith.constant 0 : index
    %19 = vector.load %arg9[%c1_31, %c0_32, %c0_33] : memref<18x18x4xf32, #tpu.memory_space<vmem>>, vector<16x16x4xf32>
    %c1_34 = arith.constant 1 : index
    %c0_35 = arith.constant 0 : index
    %c0_36 = arith.constant 0 : index
    %c0_37 = arith.constant 0 : index
    %20 = vector.load %arg2[%c1_34, %c0_35, %c0_36, %c0_37] : memref<3x3x4x4xf32, #tpu.memory_space<vmem>>, vector<1x1x4x4xf32>
    %21 = vector.shape_cast %20 : vector<1x1x4x4xf32> to vector<4x4xf32>
    %cst_38 = arith.constant dense<0.000000e+00> : vector<16x16x4xf32>
    %22 = tpu.matmul %19, %21, %cst_38 {dimension_numbers = #tpu.dot_dimension_numbers<[2], [0], [0, 1], [1], [0, 0, 0, 1, 1, 1], [], []>} : vector<16x16x4xf32>, vector<4x4xf32>, vector<16x16x4xf32> -> vector<16x16x4xf32>
    %23 = arith.addf %18, %22 : vector<16x16x4xf32>
    %c1_39 = arith.constant 1 : index
    %c1_40 = arith.constant 1 : index
    %c0_41 = arith.constant 0 : index
    %24 = vector.load %arg9[%c1_39, %c1_40, %c0_41] : memref<18x18x4xf32, #tpu.memory_space<vmem>>, vector<16x16x4xf32>
    %c1_42 = arith.constant 1 : index
    %c1_43 = arith.constant 1 : index
    %c0_44 = arith.constant 0 : index
    %c0_45 = arith.constant 0 : index
    %25 = vector.load %arg2[%c1_42, %c1_43, %c0_44, %c0_45] : memref<3x3x4x4xf32, #tpu.memory_space<vmem>>, vector<1x1x4x4xf32>
    %26 = vector.shape_cast %25 : vector<1x1x4x4xf32> to vector<4x4xf32>
    %cst_46 = arith.constant dense<0.000000e+00> : vector<16x16x4xf32>
    %27 = tpu.matmul %24, %26, %cst_46 {dimension_numbers = #tpu.dot_dimension_numbers<[2], [0], [0, 1], [1], [0, 0, 0, 1, 1, 1], [], []>} : vector<16x16x4xf32>, vector<4x4xf32>, vector<16x16x4xf32> -> vector<16x16x4xf32>
    %28 = arith.addf %23, %27 : vector<16x16x4xf32>
    %c1_47 = arith.constant 1 : index
    %c2_48 = arith.constant 2 : index
    %c0_49 = arith.constant 0 : index
    %29 = vector.load %arg9[%c1_47, %c2_48, %c0_49] : memref<18x18x4xf32, #tpu.memory_space<vmem>>, vector<16x16x4xf32>
    %c1_50 = arith.constant 1 : index
    %c2_51 = arith.constant 2 : index
    %c0_52 = arith.constant 0 : index
    %c0_53 = arith.constant 0 : index
    %30 = vector.load %arg2[%c1_50, %c2_51, %c0_52, %c0_53] : memref<3x3x4x4xf32, #tpu.memory_space<vmem>>, vector<1x1x4x4xf32>
    %31 = vector.shape_cast %30 : vector<1x1x4x4xf32> to vector<4x4xf32>
    %cst_54 = arith.constant dense<0.000000e+00> : vector<16x16x4xf32>
    %32 = tpu.matmul %29, %31, %cst_54 {dimension_numbers = #tpu.dot_dimension_numbers<[2], [0], [0, 1], [1], [0, 0, 0, 1, 1, 1], [], []>} : vector<16x16x4xf32>, vector<4x4xf32>, vector<16x16x4xf32> -> vector<16x16x4xf32>
    %33 = arith.addf %28, %32 : vector<16x16x4xf32>
    %c2_55 = arith.constant 2 : index
    %c0_56 = arith.constant 0 : index
    %c0_57 = arith.constant 0 : index
    %34 = vector.load %arg9[%c2_55, %c0_56, %c0_57] : memref<18x18x4xf32, #tpu.memory_space<vmem>>, vector<16x16x4xf32>
    %c2_58 = arith.constant 2 : index
    %c0_59 = arith.constant 0 : index
    %c0_60 = arith.constant 0 : index
    %c0_61 = arith.constant 0 : index
    %35 = vector.load %arg2[%c2_58, %c0_59, %c0_60, %c0_61] : memref<3x3x4x4xf32, #tpu.memory_space<vmem>>, vector<1x1x4x4xf32>
    %36 = vector.shape_cast %35 : vector<1x1x4x4xf32> to vector<4x4xf32>
    %cst_62 = arith.constant dense<0.000000e+00> : vector<16x16x4xf32>
    %37 = tpu.matmul %34, %36, %cst_62 {dimension_numbers = #tpu.dot_dimension_numbers<[2], [0], [0, 1], [1], [0, 0, 0, 1, 1, 1], [], []>} : vector<16x16x4xf32>, vector<4x4xf32>, vector<16x16x4xf32> -> vector<16x16x4xf32>
    %38 = arith.addf %33, %37 : vector<16x16x4xf32>
    %c2_63 = arith.constant 2 : index
    %c1_64 = arith.constant 1 : index
    %c0_65 = arith.constant 0 : index
    %39 = vector.load %arg9[%c2_63, %c1_64, %c0_65] : memref<18x18x4xf32, #tpu.memory_space<vmem>>, vector<16x16x4xf32>
    %c2_66 = arith.constant 2 : index
    %c1_67 = arith.constant 1 : index
    %c0_68 = arith.constant 0 : index
    %c0_69 = arith.constant 0 : index
    %40 = vector.load %arg2[%c2_66, %c1_67, %c0_68, %c0_69] : memref<3x3x4x4xf32, #tpu.memory_space<vmem>>, vector<1x1x4x4xf32>
    %41 = vector.shape_cast %40 : vector<1x1x4x4xf32> to vector<4x4xf32>
    %cst_70 = arith.constant dense<0.000000e+00> : vector<16x16x4xf32>
    %42 = tpu.matmul %39, %41, %cst_70 {dimension_numbers = #tpu.dot_dimension_numbers<[2], [0], [0, 1], [1], [0, 0, 0, 1, 1, 1], [], []>} : vector<16x16x4xf32>, vector<4x4xf32>, vector<16x16x4xf32> -> vector<16x16x4xf32>
    %43 = arith.addf %38, %42 : vector<16x16x4xf32>
    %c2_71 = arith.constant 2 : index
    %c2_72 = arith.constant 2 : index
    %c0_73 = arith.constant 0 : index
    %44 = vector.load %arg9[%c2_71, %c2_72, %c0_73] : memref<18x18x4xf32, #tpu.memory_space<vmem>>, vector<16x16x4xf32>
    %c2_74 = arith.constant 2 : index
    %c2_75 = arith.constant 2 : index
    %c0_76 = arith.constant 0 : index
    %c0_77 = arith.constant 0 : index
    %45 = vector.load %arg2[%c2_74, %c2_75, %c0_76, %c0_77] : memref<3x3x4x4xf32, #tpu.memory_space<vmem>>, vector<1x1x4x4xf32>
    %46 = vector.shape_cast %45 : vector<1x1x4x4xf32> to vector<4x4xf32>
    %cst_78 = arith.constant dense<0.000000e+00> : vector<16x16x4xf32>
    %47 = tpu.matmul %44, %46, %cst_78 {dimension_numbers = #tpu.dot_dimension_numbers<[2], [0], [0, 1], [1], [0, 0, 0, 1, 1, 1], [], []>} : vector<16x16x4xf32>, vector<4x4xf32>, vector<16x16x4xf32> -> vector<16x16x4xf32>
    %48 = arith.addf %43, %47 : vector<16x16x4xf32>
    %c0_79 = arith.constant 0 : index
    %c0_80 = arith.constant 0 : index
    %c0_81 = arith.constant 0 : index
    %49 = vector.load %arg3[%c0_79, %c0_80, %c0_81] : memref<1x1x4xf32, #tpu.memory_space<vmem>>, vector<1x1x4xf32>
    %50 = vector.broadcast %49 : vector<1x1x4xf32> to vector<16x16x4xf32>
    %51 = arith.mulf %48, %50 : vector<16x16x4xf32>
    %c0_82 = arith.constant 0 : index
    %c0_83 = arith.constant 0 : index
    %c0_84 = arith.constant 0 : index
    %52 = vector.load %arg4[%c0_82, %c0_83, %c0_84] : memref<1x1x4xf32, #tpu.memory_space<vmem>>, vector<1x1x4xf32>
    %53 = vector.broadcast %52 : vector<1x1x4xf32> to vector<16x16x4xf32>
    %54 = arith.addf %51, %53 : vector<16x16x4xf32>
    %cst_85 = arith.constant 0.000000e+00 : f32
    %55 = vector.broadcast %cst_85 : f32 to vector<16x16x4xf32>
    %56 = arith.maximumf %54, %55 : vector<16x16x4xf32>
    %c1_86 = arith.constant 1 : index
    %c1_87 = arith.constant 1 : index
    %c0_88 = arith.constant 0 : index
    %57 = vector.load %arg9[%c1_86, %c1_87, %c0_88] : memref<18x18x4xf32, #tpu.memory_space<vmem>>, vector<16x16x4xf32>
    tpu.vector_store %arg9[%c1_86, %c1_87, %c0_88], %56 {strides = array<i32>} : memref<18x18x4xf32, #tpu.memory_space<vmem>>, vector<16x16x4xf32>,
    %c0_89 = arith.constant 0 : index
    %c0_90 = arith.constant 0 : index
    %c0_91 = arith.constant 0 : index
    %58 = vector.load %arg9[%c0_89, %c0_90, %c0_91] : memref<18x18x4xf32, #tpu.memory_space<vmem>>, vector<16x16x4xf32>
    %c0_92 = arith.constant 0 : index
    %c0_93 = arith.constant 0 : index
    %c0_94 = arith.constant 0 : index
    %c0_95 = arith.constant 0 : index
    %59 = vector.load %arg5[%c0_92, %c0_93, %c0_94, %c0_95] : memref<3x3x4x4xf32, #tpu.memory_space<vmem>>, vector<1x1x4x4xf32>
    %60 = vector.shape_cast %59 : vector<1x1x4x4xf32> to vector<4x4xf32>
    %cst_96 = arith.constant dense<0.000000e+00> : vector<16x16x4xf32>
    %61 = tpu.matmul %58, %60, %cst_96 {dimension_numbers = #tpu.dot_dimension_numbers<[2], [0], [0, 1], [1], [0, 0, 0, 1, 1, 1], [], []>} : vector<16x16x4xf32>, vector<4x4xf32>, vector<16x16x4xf32> -> vector<16x16x4xf32>
    %c0_97 = arith.constant 0 : index
    %c1_98 = arith.constant 1 : index
    %c0_99 = arith.constant 0 : index
    %62 = vector.load %arg9[%c0_97, %c1_98, %c0_99] : memref<18x18x4xf32, #tpu.memory_space<vmem>>, vector<16x16x4xf32>
    %c0_100 = arith.constant 0 : index
    %c1_101 = arith.constant 1 : index
    %c0_102 = arith.constant 0 : index
    %c0_103 = arith.constant 0 : index
    %63 = vector.load %arg5[%c0_100, %c1_101, %c0_102, %c0_103] : memref<3x3x4x4xf32, #tpu.memory_space<vmem>>, vector<1x1x4x4xf32>
    %64 = vector.shape_cast %63 : vector<1x1x4x4xf32> to vector<4x4xf32>
    %cst_104 = arith.constant dense<0.000000e+00> : vector<16x16x4xf32>
    %65 = tpu.matmul %62, %64, %cst_104 {dimension_numbers = #tpu.dot_dimension_numbers<[2], [0], [0, 1], [1], [0, 0, 0, 1, 1, 1], [], []>} : vector<16x16x4xf32>, vector<4x4xf32>, vector<16x16x4xf32> -> vector<16x16x4xf32>
    %66 = arith.addf %61, %65 : vector<16x16x4xf32>
    %c0_105 = arith.constant 0 : index
    %c2_106 = arith.constant 2 : index
    %c0_107 = arith.constant 0 : index
    %67 = vector.load %arg9[%c0_105, %c2_106, %c0_107] : memref<18x18x4xf32, #tpu.memory_space<vmem>>, vector<16x16x4xf32>
    %c0_108 = arith.constant 0 : index
    %c2_109 = arith.constant 2 : index
    %c0_110 = arith.constant 0 : index
    %c0_111 = arith.constant 0 : index
    %68 = vector.load %arg5[%c0_108, %c2_109, %c0_110, %c0_111] : memref<3x3x4x4xf32, #tpu.memory_space<vmem>>, vector<1x1x4x4xf32>
    %69 = vector.shape_cast %68 : vector<1x1x4x4xf32> to vector<4x4xf32>
    %cst_112 = arith.constant dense<0.000000e+00> : vector<16x16x4xf32>
    %70 = tpu.matmul %67, %69, %cst_112 {dimension_numbers = #tpu.dot_dimension_numbers<[2], [0], [0, 1], [1], [0, 0, 0, 1, 1, 1], [], []>} : vector<16x16x4xf32>, vector<4x4xf32>, vector<16x16x4xf32> -> vector<16x16x4xf32>
    %71 = arith.addf %66, %70 : vector<16x16x4xf32>
    %c1_113 = arith.constant 1 : index
    %c0_114 = arith.constant 0 : index
    %c0_115 = arith.constant 0 : index
    %72 = vector.load %arg9[%c1_113, %c0_114, %c0_115] : memref<18x18x4xf32, #tpu.memory_space<vmem>>, vector<16x16x4xf32>
    %c1_116 = arith.constant 1 : index
    %c0_117 = arith.constant 0 : index
    %c0_118 = arith.constant 0 : index
    %c0_119 = arith.constant 0 : index
    %73 = vector.load %arg5[%c1_116, %c0_117, %c0_118, %c0_119] : memref<3x3x4x4xf32, #tpu.memory_space<vmem>>, vector<1x1x4x4xf32>
    %74 = vector.shape_cast %73 : vector<1x1x4x4xf32> to vector<4x4xf32>
    %cst_120 = arith.constant dense<0.000000e+00> : vector<16x16x4xf32>
    %75 = tpu.matmul %72, %74, %cst_120 {dimension_numbers = #tpu.dot_dimension_numbers<[2], [0], [0, 1], [1], [0, 0, 0, 1, 1, 1], [], []>} : vector<16x16x4xf32>, vector<4x4xf32>, vector<16x16x4xf32> -> vector<16x16x4xf32>
    %76 = arith.addf %71, %75 : vector<16x16x4xf32>
    %c1_121 = arith.constant 1 : index
    %c1_122 = arith.constant 1 : index
    %c0_123 = arith.constant 0 : index
    %77 = vector.load %arg9[%c1_121, %c1_122, %c0_123] : memref<18x18x4xf32, #tpu.memory_space<vmem>>, vector<16x16x4xf32>
    %c1_124 = arith.constant 1 : index
    %c1_125 = arith.constant 1 : index
    %c0_126 = arith.constant 0 : index
    %c0_127 = arith.constant 0 : index
    %78 = vector.load %arg5[%c1_124, %c1_125, %c0_126, %c0_127] : memref<3x3x4x4xf32, #tpu.memory_space<vmem>>, vector<1x1x4x4xf32>
    %79 = vector.shape_cast %78 : vector<1x1x4x4xf32> to vector<4x4xf32>
    %cst_128 = arith.constant dense<0.000000e+00> : vector<16x16x4xf32>
    %80 = tpu.matmul %77, %79, %cst_128 {dimension_numbers = #tpu.dot_dimension_numbers<[2], [0], [0, 1], [1], [0, 0, 0, 1, 1, 1], [], []>} : vector<16x16x4xf32>, vector<4x4xf32>, vector<16x16x4xf32> -> vector<16x16x4xf32>
    %81 = arith.addf %76, %80 : vector<16x16x4xf32>
    %c1_129 = arith.constant 1 : index
    %c2_130 = arith.constant 2 : index
    %c0_131 = arith.constant 0 : index
    %82 = vector.load %arg9[%c1_129, %c2_130, %c0_131] : memref<18x18x4xf32, #tpu.memory_space<vmem>>, vector<16x16x4xf32>
    %c1_132 = arith.constant 1 : index
    %c2_133 = arith.constant 2 : index
    %c0_134 = arith.constant 0 : index
    %c0_135 = arith.constant 0 : index
    %83 = vector.load %arg5[%c1_132, %c2_133, %c0_134, %c0_135] : memref<3x3x4x4xf32, #tpu.memory_space<vmem>>, vector<1x1x4x4xf32>
    %84 = vector.shape_cast %83 : vector<1x1x4x4xf32> to vector<4x4xf32>
    %cst_136 = arith.constant dense<0.000000e+00> : vector<16x16x4xf32>
    %85 = tpu.matmul %82, %84, %cst_136 {dimension_numbers = #tpu.dot_dimension_numbers<[2], [0], [0, 1], [1], [0, 0, 0, 1, 1, 1], [], []>} : vector<16x16x4xf32>, vector<4x4xf32>, vector<16x16x4xf32> -> vector<16x16x4xf32>
    %86 = arith.addf %81, %85 : vector<16x16x4xf32>
    %c2_137 = arith.constant 2 : index
    %c0_138 = arith.constant 0 : index
    %c0_139 = arith.constant 0 : index
    %87 = vector.load %arg9[%c2_137, %c0_138, %c0_139] : memref<18x18x4xf32, #tpu.memory_space<vmem>>, vector<16x16x4xf32>
    %c2_140 = arith.constant 2 : index
    %c0_141 = arith.constant 0 : index
    %c0_142 = arith.constant 0 : index
    %c0_143 = arith.constant 0 : index
    %88 = vector.load %arg5[%c2_140, %c0_141, %c0_142, %c0_143] : memref<3x3x4x4xf32, #tpu.memory_space<vmem>>, vector<1x1x4x4xf32>
    %89 = vector.shape_cast %88 : vector<1x1x4x4xf32> to vector<4x4xf32>
    %cst_144 = arith.constant dense<0.000000e+00> : vector<16x16x4xf32>
    %90 = tpu.matmul %87, %89, %cst_144 {dimension_numbers = #tpu.dot_dimension_numbers<[2], [0], [0, 1], [1], [0, 0, 0, 1, 1, 1], [], []>} : vector<16x16x4xf32>, vector<4x4xf32>, vector<16x16x4xf32> -> vector<16x16x4xf32>
    %91 = arith.addf %86, %90 : vector<16x16x4xf32>
    %c2_145 = arith.constant 2 : index
    %c1_146 = arith.constant 1 : index
    %c0_147 = arith.constant 0 : index
    %92 = vector.load %arg9[%c2_145, %c1_146, %c0_147] : memref<18x18x4xf32, #tpu.memory_space<vmem>>, vector<16x16x4xf32>
    %c2_148 = arith.constant 2 : index
    %c1_149 = arith.constant 1 : index
    %c0_150 = arith.constant 0 : index
    %c0_151 = arith.constant 0 : index
    %93 = vector.load %arg5[%c2_148, %c1_149, %c0_150, %c0_151] : memref<3x3x4x4xf32, #tpu.memory_space<vmem>>, vector<1x1x4x4xf32>
    %94 = vector.shape_cast %93 : vector<1x1x4x4xf32> to vector<4x4xf32>
    %cst_152 = arith.constant dense<0.000000e+00> : vector<16x16x4xf32>
    %95 = tpu.matmul %92, %94, %cst_152 {dimension_numbers = #tpu.dot_dimension_numbers<[2], [0], [0, 1], [1], [0, 0, 0, 1, 1, 1], [], []>} : vector<16x16x4xf32>, vector<4x4xf32>, vector<16x16x4xf32> -> vector<16x16x4xf32>
    %96 = arith.addf %91, %95 : vector<16x16x4xf32>
    %c2_153 = arith.constant 2 : index
    %c2_154 = arith.constant 2 : index
    %c0_155 = arith.constant 0 : index
    %97 = vector.load %arg9[%c2_153, %c2_154, %c0_155] : memref<18x18x4xf32, #tpu.memory_space<vmem>>, vector<16x16x4xf32>
    %c2_156 = arith.constant 2 : index
    %c2_157 = arith.constant 2 : index
    %c0_158 = arith.constant 0 : index
    %c0_159 = arith.constant 0 : index
    %98 = vector.load %arg5[%c2_156, %c2_157, %c0_158, %c0_159] : memref<3x3x4x4xf32, #tpu.memory_space<vmem>>, vector<1x1x4x4xf32>
    %99 = vector.shape_cast %98 : vector<1x1x4x4xf32> to vector<4x4xf32>
    %cst_160 = arith.constant dense<0.000000e+00> : vector<16x16x4xf32>
    %100 = tpu.matmul %97, %99, %cst_160 {dimension_numbers = #tpu.dot_dimension_numbers<[2], [0], [0, 1], [1], [0, 0, 0, 1, 1, 1], [], []>} : vector<16x16x4xf32>, vector<4x4xf32>, vector<16x16x4xf32> -> vector<16x16x4xf32>
    %101 = arith.addf %96, %100 : vector<16x16x4xf32>
    %c0_161 = arith.constant 0 : index
    %c0_162 = arith.constant 0 : index
    %c0_163 = arith.constant 0 : index
    %102 = vector.load %arg6[%c0_161, %c0_162, %c0_163] : memref<1x1x4xf32, #tpu.memory_space<vmem>>, vector<1x1x4xf32>
    %103 = vector.broadcast %102 : vector<1x1x4xf32> to vector<16x16x4xf32>
    %104 = arith.mulf %101, %103 : vector<16x16x4xf32>
    %c0_164 = arith.constant 0 : index
    %c0_165 = arith.constant 0 : index
    %c0_166 = arith.constant 0 : index
    %105 = vector.load %arg7[%c0_164, %c0_165, %c0_166] : memref<1x1x4xf32, #tpu.memory_space<vmem>>, vector<1x1x4xf32>
    %106 = vector.broadcast %105 : vector<1x1x4xf32> to vector<16x16x4xf32>
    %107 = arith.addf %104, %106 : vector<16x16x4xf32>
    %c0_167 = arith.constant 0 : index
    %c0_168 = arith.constant 0 : index
    %c0_169 = arith.constant 0 : index
    %c0_170 = arith.constant 0 : index
    %108 = vector.load %arg1[%c0_167, %c0_168, %c0_169, %c0_170] : memref<1x16x16x4xf32, #tpu.memory_space<vmem>>, vector<1x16x16x4xf32>
    %109 = vector.shape_cast %108 : vector<1x16x16x4xf32> to vector<16x16x4xf32>
    %110 = arith.addf %107, %109 : vector<16x16x4xf32>
    %cst_171 = arith.constant 0.000000e+00 : f32
    %111 = vector.broadcast %cst_171 : f32 to vector<16x16x4xf32>
    %112 = arith.maximumf %110, %111 : vector<16x16x4xf32>
    %c0_172 = arith.constant 0 : index
    %c0_173 = arith.constant 0 : index
    %c0_174 = arith.constant 0 : index
    %c0_175 = arith.constant 0 : index
    %113 = vector.load %arg8[%c0_172, %c0_173, %c0_174, %c0_175] : memref<1x16x16x4xf32, #tpu.memory_space<vmem>>, vector<1x16x16x4xf32>
    %114 = vector.shape_cast %113 : vector<1x16x16x4xf32> to vector<16x16x4xf32>
    %115 = vector.shape_cast %112 : vector<16x16x4xf32> to vector<1x16x16x4xf32>
    tpu.vector_store %arg8[%c0_172, %c0_173, %c0_174, %c0_175], %115 {strides = array<i32>} : memref<1x16x16x4xf32, #tpu.memory_space<vmem>>, vector<1x16x16x4xf32>,
    return
  }
  func.func @transform_0(%arg0: i32) -> (i32, i32, i32, i32) {
    %c0_i32 = arith.constant 0 : i32
    %c0_i32_0 = arith.constant 0 : i32
    %c0_i32_1 = arith.constant 0 : i32
    %c0_i32_2 = arith.constant 0 : i32
    return %arg0, %c0_i32, %c0_i32_0, %c0_i32_1 : i32, i32, i32, i32
  }
  func.func @transform_1(%arg0: i32) -> (i32, i32, i32, i32) {
    %c0_i32 = arith.constant 0 : i32
    %c0_i32_0 = arith.constant 0 : i32
    %c0_i32_1 = arith.constant 0 : i32
    %c0_i32_2 = arith.constant 0 : i32
    %c0_i32_3 = arith.constant 0 : i32
    return %c0_i32, %c0_i32_0, %c0_i32_1, %c0_i32_2 : i32, i32, i32, i32
  }
  func.func @transform_2(%arg0: i32) -> (i32, i32, i32) {
    %c0_i32 = arith.constant 0 : i32
    %c0_i32_0 = arith.constant 0 : i32
    %c0_i32_1 = arith.constant 0 : i32
    %c0_i32_2 = arith.constant 0 : i32
    return %c0_i32, %c0_i32_0, %c0_i32_1 : i32, i32, i32
  }
  func.func @transform_3(%arg0: i32) -> (i32, i32, i32) {
    %c0_i32 = arith.constant 0 : i32
    %c0_i32_0 = arith.constant 0 : i32
    %c0_i32_1 = arith.constant 0 : i32
    %c0_i32_2 = arith.constant 0 : i32
    return %c0_i32, %c0_i32_0, %c0_i32_1 : i32, i32, i32
  }
  func.func @transform_4(%arg0: i32) -> (i32, i32, i32, i32) {
    %c0_i32 = arith.constant 0 : i32
    %c0_i32_0 = arith.constant 0 : i32
    %c0_i32_1 = arith.constant 0 : i32
    %c0_i32_2 = arith.constant 0 : i32
    %c0_i32_3 = arith.constant 0 : i32
    return %c0_i32, %c0_i32_0, %c0_i32_1, %c0_i32_2 : i32, i32, i32, i32
  }
  func.func @transform_5(%arg0: i32) -> (i32, i32, i32) {
    %c0_i32 = arith.constant 0 : i32
    %c0_i32_0 = arith.constant 0 : i32
    %c0_i32_1 = arith.constant 0 : i32
    %c0_i32_2 = arith.constant 0 : i32
    return %c0_i32, %c0_i32_0, %c0_i32_1 : i32, i32, i32
  }
  func.func @transform_6(%arg0: i32) -> (i32, i32, i32) {
    %c0_i32 = arith.constant 0 : i32
    %c0_i32_0 = arith.constant 0 : i32
    %c0_i32_1 = arith.constant 0 : i32
    %c0_i32_2 = arith.constant 0 : i32
    return %c0_i32, %c0_i32_0, %c0_i32_1 : i32, i32, i32
  }
  func.func @transform_7(%arg0: i32) -> (i32, i32, i32, i32) {
    %c0_i32 = arith.constant 0 : i32
    %c0_i32_0 = arith.constant 0 : i32
    %c0_i32_1 = arith.constant 0 : i32
    %c0_i32_2 = arith.constant 0 : i32
    return %arg0, %c0_i32, %c0_i32_0, %c0_i32_1 : i32, i32, i32, i32
  }
}

</mosaic_0001>

<bundles_post_ra>
// kernel: basic_block_forward.1
= control target key start
LH: loop header
LB: loop body
LE: loop exit
PB: predicated region body
PF: predicated region fallthrough
CT: control target
= control target key end

     0   :  { %s6358_s24 = smov 0   ;;  %s8978_s0 = inlined_call_operand.vmem [shape: f32[2,16,16,4], index: 0, kind: input, shape index: {}]   ;;  %s8979_s1 = inlined_call_operand.vmem [shape: f32[3,3,4,4], index: 1, kind: input, shape index: {}]   ;;  %s8980_s2 = inlined_call_operand.vmem [shape: f32[1,1,4], index: 2, kind: input, shape index: {}]   ;;  %s8981_s3 = inlined_call_operand.vmem [shape: f32[1,1,4], index: 3, kind: input, shape index: {}]   ;;  %s8982_s4 = inlined_call_operand.vmem [shape: f32[3,3,4,4], index: 4, kind: input, shape index: {}]   ;;  %s8983_s5 = inlined_call_operand.vmem [shape: f32[1,1,4], index: 5, kind: input, shape index: {}]   ;;  %s8984_s6 = inlined_call_operand.vmem [shape: f32[1,1,4], index: 6, kind: input, shape index: {}]   ;;  %s8985_s7 = inlined_call_operand.vmem [shape: f32[2,16,16,4], index: 7, kind: output, shape index: {}]  }
   0x1 LB: > { %s5667_s25 = sadd.s32 4294967295, %s6315_s24   ;;  %p5671_p0 = scmp.ge.s32.totalorder %s6315_s24, 1  ;;  %s6315_s24 = sphi %s6358_s24, %s17_s24  }
   0x2   : > { %p237_p1 = scmp.lt.s32.totalorder %s6315_s24, 3 }
   0x4   : > { %p238_p2 = pnand %p5671_p0, %p237_p1 }
   0x6   : > { %241 = sbr.rel (%p238_p2) target bundleno = 1485 (0x5cd), region = 48 }
   0xb   : > { %v5676_v0 = vld [vmem:[%s8979_s1 + $0x4] sm:$0xf]  ;;  %vm563_vm0 = vcmask 1043456   ;;  %vm279_vm1 = vcmask 31744   ;;  %v6317_v1 = vmov 0.0   ;;  %p269_p3 = scmp.lt.s32.totalorder %s5667_s25, 1 }
   0xc   : > { %5677 = vmatpush.msk.msra.mxu0 %vm563_vm0, %v5676_v0  ;;  %280 = vst.msk [vmem:[#allocation2] sm:$0xff] %vm279_vm1, %v6317_v1  ;;  %6290 = vmatpush.msk.msra.mxu2 %vm563_vm0, %v5676_v0  ;;  %v432_v2 = vld [vmem:[%s8979_s1] sm:$0xf]  ;;  %v5743_v4 = vld [vmem:[%s8979_s1 + $0x8] sm:$0xf]  ;;  %vm282_vm2 = vcmask 25600  }
   0xd   : > { %281 = vst.msk [vmem:[#allocation2 + $0x8] sm:$0xff] %vm279_vm1, %v6317_v1  ;;  %6291 = vmatpush.msk.msra.mxu3 %vm563_vm0, %v432_v2  ;;  %5710 = vmatpush.msk.msra.mxu1 %vm563_vm0, %v432_v2  ;;  %v5777_v5 = vld [vmem:[%s8979_s1 + $0xc] sm:$0xf]  ;;  %s9309_s25 = smov (!%p269_p3, %s5667_s25), 1  ;;  %v5811_v7 = vld [vmem:[%s8979_s1 + $0x10] sm:$0xf] }
   0xe   : > { %284 = vst.msk [vmem:[#allocation2 + $0x18] sm:$0xff] %vm279_vm1, %v6317_v1  ;;  %5744 = vmatpush.msk.msrb.mxu2 %vm563_vm0, %v5743_v4  ;;  %s6288_s11 = sshll.u32 %s9309_s25, 8  ;;  %5812 = vmatpush.msk.msrb.mxu0 %vm563_vm0, %v5811_v7 }
   0xf   : > { %285 = vst.msk [vmem:[#allocation2 + $0x20] sm:$0xff] %vm279_vm1, %v6317_v1  ;;  %5778 = vmatpush.msk.msrb.mxu3 %vm563_vm0, %v5777_v5  ;;  %s6459_s14 = scalar_lea.vmem %s8978_s0, %s6288_s11  ;;  %s8668_s19 = scalar_lea.vmem %s8985_s7, %s6288_s11 }
  0x10   : > { %287 = vst.msk [vmem:[#allocation2 + $0x30] sm:$0xff] %vm279_vm1, %v6317_v1  ;;  %v349_v8 = vld [vmem:[%s6459_s14 + $0x70] sm:$0xff]  ;;  %v350_v13 = vld [vmem:[%s6459_s14 + $0x78] sm:$0xff]  ;;  %v335_v14 = vld [vmem:[%s6459_s14] sm:$0xff] }
  0x11   : > { %288 = vst.msk [vmem:[#allocation2 + $0x38] sm:$0xff] %vm279_vm1, %v6317_v1  ;;  %v351_v15 = vld [vmem:[%s6459_s14 + $0x80] sm:$0xff]  ;;  %v336_v16 = vld [vmem:[%s6459_s14 + $0x8] sm:$0xff]  ;;  %v337_v18 = vld [vmem:[%s6459_s14 + $0x10] sm:$0xff] }
  0x12   : > { %290 = vst.msk [vmem:[#allocation2 + $0x48] sm:$0xff] %vm279_vm1, %v6317_v1  ;;  %v352_v17 = vld [vmem:[%s6459_s14 + $0x88] sm:$0xff]  ;;  %v353_v19 = vld [vmem:[%s6459_s14 + $0x90] sm:$0xff]  ;;  %v338_v20 = vld [vmem:[%s6459_s14 + $0x18] sm:$0xff] }
  0x13   : > { %291 = vst.msk [vmem:[#allocation2 + $0x50] sm:$0xff] %vm279_vm1, %v6317_v1  ;;  %v400_v6 = vld [vmem:[#allocation2] sm:$0xff]  ;;  %v354_v21 = vld [vmem:[%s6459_s14 + $0x98] sm:$0xff]  ;;  %v340_v28 = vld [vmem:[%s6459_s14 + $0x28] sm:$0xff] }
  0x14   : > { %v433_v3 = vld [vmem:[#allocation2 + $0x1] sm:$0xff]  ;;  %293 = vst.msk [vmem:[#allocation2 + $0x60] sm:$0xff] %vm279_vm1, %v6317_v1  ;;  %5711 = vmatmul.msk.f32.vlgmr.msra.gmra.mxu1 %vm279_vm1, %v400_v6  ;;  %v341_v34 = vld [vmem:[%s6459_s14 + $0x30] sm:$0xff]  ;;  %v342_v40 = vld [vmem:[%s6459_s14 + $0x38] sm:$0xff] }
  0x15   : > { %5678 = vmatmul.msk.f32.vlgmr.msra.gmra.mxu0 %vm279_vm1, %v433_v3  ;;  %294 = vst.msk [vmem:[#allocation2 + $0x68] sm:$0xff] %vm279_vm1, %v6317_v1  ;;  %v401_v9 = vld [vmem:[#allocation2 + $0x8] sm:$0xff]  ;;  %v339_v22 = vld [vmem:[%s6459_s14 + $0x20] sm:$0xff]  ;;  %v357_v39 = vld [vmem:[%s6459_s14 + $0xb0] sm:$0xff] }
  0x16   : > { %296 = vst.msk [vmem:[#allocation2 + $0x78] sm:$0xff] %vm279_vm1, %v6317_v1  ;;  %v355_v25 = vld [vmem:[%s6459_s14 + $0xa0] sm:$0xff]  ;;  %v356_v33 = vld [vmem:[%s6459_s14 + $0xa8] sm:$0xff]  ;;  %v358_v45 = vld [vmem:[%s6459_s14 + $0xb8] sm:$0xff] }
  0x17   : > { %297 = vst.msk [vmem:[#allocation2 + $0x80] sm:$0xff] %vm279_vm1, %v6317_v1  ;;  %v343_v46 = vld [vmem:[%s6459_s14 + $0x40] sm:$0xff]  ;;  %v344_v52 = vld [vmem:[%s6459_s14 + $0x48] sm:$0xff]  ;;  %v345_v58 = vld [vmem:[%s6459_s14 + $0x50] sm:$0xff] }
  0x18   : > { %299 = vst.msk [vmem:[#allocation2 + $0x90] sm:$0xff] %vm279_vm1, %v6317_v1  ;;  %v359_v51 = vld [vmem:[%s6459_s14 + $0xc0] sm:$0xff]  ;;  %v360_v57 = vld [vmem:[%s6459_s14 + $0xc8] sm:$0xff]  ;;  %v361_v63 = vld [vmem:[%s6459_s14 + $0xd0] sm:$0xff] }
  0x19   : > { %300 = vst.msk [vmem:[#allocation2 + $0x98] sm:$0xff] %vm279_vm1, %v6317_v1  ;;  %v346_v0 = vld [vmem:[%s6459_s14 + $0x58] sm:$0xff]  ;;  %v347_v6 = vld [vmem:[%s6459_s14 + $0x60] sm:$0xff] }
  0x1a   : > { %302 = vst.msk [vmem:[#allocation2 + $0xa8] sm:$0xff] %vm279_vm1, %v6317_v1  ;;  %v362_v5 = vld [vmem:[%s6459_s14 + $0xd8] sm:$0xff] }
  0x1b   : > { %303 = vst.msk [vmem:[#allocation2 + $0xb0] sm:$0xff] %vm279_vm1, %v6317_v1 }
  0x1c   : > { %305 = vst.msk [vmem:[#allocation2 + $0xc0] sm:$0xff] %vm279_vm1, %v6317_v1  ;;  %5712 = vmatmul.msk.f32.gmra.mxu1 %vm279_vm1, %v401_v9 }
  0x1d   : > { %306 = vst.msk [vmem:[#allocation2 + $0xc8] sm:$0xff] %vm279_vm1, %v6317_v1 }
  0x1e   : > { %308 = vst.msk [vmem:[#allocation2 + $0xd8] sm:$0xff] %vm279_vm1, %v6317_v1 }
  0x1f   : > { %309 = vst.msk [vmem:[#allocation2 + $0xe0] sm:$0xff] %vm279_vm1, %v6317_v1 }
  0x20   : > { %311 = vst.msk [vmem:[#allocation2 + $0xf0] sm:$0xff] %vm279_vm1, %v6317_v1 }
  0x21   : > { %312 = vst.msk [vmem:[#allocation2 + $0xf8] sm:$0xff] %vm279_vm1, %v6317_v1 }
  0x22   : > { %314 = vst.msk [vmem:[#allocation2 + $0x108] sm:$0xff] %vm279_vm1, %v6317_v1 }
  0x23   : > { %315 = vst.msk [vmem:[#allocation2 + $0x110] sm:$0xff] %vm279_vm1, %v6317_v1 }
  0x24   : > { %317 = vst.msk [vmem:[#allocation2 + $0x120] sm:$0xff] %vm279_vm1, %v6317_v1 }
  0x25   : > { %318 = vst.msk [vmem:[#allocation2 + $0x128] sm:$0xff] %vm279_vm1, %v6317_v1 }
  0x26   : > { %320 = vst.msk [vmem:[#allocation2 + $0x138] sm:$0xff] %vm279_vm1, %v6317_v1 }
  0x27   : > { %321 = vst.msk [vmem:[#allocation2 + $0x140] sm:$0xff] %vm279_vm1, %v6317_v1 }
  0x28   : > { %323 = vst.msk [vmem:[#allocation2 + $0x150] sm:$0xff] %vm279_vm1, %v6317_v1 }
  0x29   : > { %324 = vst.msk [vmem:[#allocation2 + $0x158] sm:$0xff] %vm279_vm1, %v6317_v1 }
  0x2a   : > { %326 = vst.msk [vmem:[#allocation2 + $0x168] sm:$0xff] %vm279_vm1, %v6317_v1 }
  0x2b   : > { %327 = vst.msk [vmem:[#allocation2 + $0x170] sm:$0xff] %vm279_vm1, %v6317_v1 }
  0x2c   : > { %329 = vst.msk [vmem:[#allocation2 + $0x180] sm:$0xff] %vm279_vm1, %v6317_v1 }
  0x2d   : > { %330 = vst.msk [vmem:[#allocation2 + $0x188] sm:$0xff] %vm279_vm1, %v6317_v1 }
  0x2e   : > { %332 = vst.msk [vmem:[#allocation2 + $0x198] sm:$0xff] %vm279_vm1, %v6317_v1 }
  0x2f   : > { %333 = vst.msk [vmem:[#allocation2 + $0x1a0] sm:$0xff] %vm279_vm1, %v6317_v1 }
  0x30   : > { %382 = vst.msk [vmem:[#allocation2 + $0xc1] sm:$0xff] %vm279_vm1, %v349_v8 }
  0x31   : > { %283 = vst.msk [vmem:[#allocation2 + $0x10] sm:$0x3] %vm282_vm2, %v6317_v1 }
  0x32   : > { %286 = vst.msk [vmem:[#allocation2 + $0x28] sm:$0x3] %vm282_vm2, %v6317_v1 }
  0x33   : > { %289 = vst.msk [vmem:[#allocation2 + $0x40] sm:$0x3] %vm282_vm2, %v6317_v1 }
  0x34   : > { %292 = vst.msk [vmem:[#allocation2 + $0x58] sm:$0x3] %vm282_vm2, %v6317_v1 }
  0x35   : > { %295 = vst.msk [vmem:[#allocation2 + $0x70] sm:$0x3] %vm282_vm2, %v6317_v1 }
  0x36   : > { %298 = vst.msk [vmem:[#allocation2 + $0x88] sm:$0x3] %vm282_vm2, %v6317_v1 }
  0x37   : > { %v6491_v10 = vld [vmem:[#allocation2 + $0xc1] sm:$0xff]  ;;  %301 = vst.msk [vmem:[#allocation2 + $0xa0] sm:$0x3] %vm282_vm2, %v6317_v1 }
  0x38   : > { %v6493_v11 = vld [vmem:[#allocation2 + $0xc0] sm:$0xff]  ;;  %5694 = vmatmul.msk.f32.vlgmr.msra.gmra.mxu2 %vm279_vm1, %v6491_v10  ;;  %v434_v12 = vld [vmem:[#allocation2 + $0x9] sm:$0xff]  ;;  %304 = vst.msk [vmem:[#allocation2 + $0xb8] sm:$0x3] %vm282_vm2, %v6317_v1 }
  0x39   : > { %5727 = vmatmul.msk.f32.vlgmr.msra.gmra.mxu3 %vm279_vm1, %v6493_v11  ;;  %5679 = vmatmul.msk.f32.gmra.mxu0 %vm279_vm1, %v434_v12  ;;  %307 = vst.msk [vmem:[#allocation2 + $0xd0] sm:$0x3] %vm282_vm2, %v6317_v1 }
  0x3a   : > { %310 = vst.msk [vmem:[#allocation2 + $0xe8] sm:$0x3] %vm282_vm2, %v6317_v1 }
  0x3b   : > { %313 = vst.msk [vmem:[#allocation2 + $0x100] sm:$0x3] %vm282_vm2, %v6317_v1 }
  0x3c   : > { %316 = vst.msk [vmem:[#allocation2 + $0x118] sm:$0x3] %vm282_vm2, %v6317_v1 }
  0x3d   : > { %319 = vst.msk [vmem:[#allocation2 + $0x130] sm:$0x3] %vm282_vm2, %v6317_v1 }
  0x3e   : > { %322 = vst.msk [vmem:[#allocation2 + $0x148] sm:$0x3] %vm282_vm2, %v6317_v1 }
  0x3f   : > { %325 = vst.msk [vmem:[#allocation2 + $0x160] sm:$0x3] %vm282_vm2, %v6317_v1 }
  0x40   : > { %328 = vst.msk [vmem:[#allocation2 + $0x178] sm:$0x3] %vm282_vm2, %v6317_v1 }
  0x41   : > { %331 = vst.msk [vmem:[#allocation2 + $0x190] sm:$0x3] %vm282_vm2, %v6317_v1 }
  0x42   : > { %334 = vst.msk [vmem:[#allocation2 + $0x1a8] sm:$0x3] %vm282_vm2, %v6317_v1 }
  0x43   : > { %383 = vst.msk [vmem:[#allocation2 + $0xc9] sm:$0xff] %vm279_vm1, %v350_v13  ;;  %v363_v13 = vld [vmem:[%s6459_s14 + $0xe0] sm:$0xff] }
  0x44   : > { %368 = vst.msk [vmem:[#allocation2 + $0x19] sm:$0xff] %vm279_vm1, %v335_v14  ;;  %v348_v14 = vld [vmem:[%s6459_s14 + $0x68] sm:$0xff] }
  0x45   : > { %384 = vst.msk [vmem:[#allocation2 + $0xd9] sm:$0xff] %vm279_vm1, %v351_v15 }
  0x46   : > { %369 = vst.msk [vmem:[#allocation2 + $0x21] sm:$0xff] %vm279_vm1, %v336_v16 }
  0x47   : > { %385 = vst.msk [vmem:[#allocation2 + $0xe1] sm:$0xff] %vm279_vm1, %v352_v17 }
  0x48   : > { %370 = vst.msk [vmem:[#allocation2 + $0x31] sm:$0xff] %vm279_vm1, %v337_v18 }
  0x49   : > { %386 = vst.msk [vmem:[#allocation2 + $0xf1] sm:$0xff] %vm279_vm1, %v353_v19  ;;  %v364_v19 = vld [vmem:[%s6459_s14 + $0xe8] sm:$0xff] }
  0x4a   : > { %v6541_v23 = vld [vmem:[#allocation2 + $0xc9] sm:$0xff]  ;;  %371 = vst.msk [vmem:[#allocation2 + $0x39] sm:$0xff] %vm279_vm1, %v338_v20 }
  0x4b   : > { %v6543_v24 = vld [vmem:[#allocation2 + $0xc8] sm:$0xff]  ;;  %5695 = vmatmul.msk.f32.gmra.mxu2 %vm279_vm1, %v6541_v23  ;;  %v6551_v26 = vld [vmem:[#allocation2 + $0x19] sm:$0xff]  ;;  %387 = vst.msk [vmem:[#allocation2 + $0xf9] sm:$0xff] %vm279_vm1, %v354_v21 }
  0x4c   : > { %5728 = vmatmul.msk.f32.gmra.mxu3 %vm279_vm1, %v6543_v24  ;;  %v6553_v27 = vld [vmem:[#allocation2 + $0x18] sm:$0xff]  ;;  %5680 = vmatmul.msk.f32.gmra.mxu0 %vm279_vm1, %v6551_v26  ;;  %372 = vst.msk [vmem:[#allocation2 + $0x49] sm:$0xff] %vm279_vm1, %v339_v22 }
  0x4d   : > { %5713 = vmatmul.msk.f32.gmra.mxu1 %vm279_vm1, %v6553_v27  ;;  %388 = vst.msk [vmem:[#allocation2 + $0x109] sm:$0xff] %vm279_vm1, %v355_v25  ;;  %v6564_v29 = vld [vmem:[#allocation2 + $0xd9] sm:$0xff]  ;;  %v6568_v31 = vld [vmem:[#allocation2 + $0x21] sm:$0xff] }
  0x4e   : > { %373 = vst.msk [vmem:[#allocation2 + $0x51] sm:$0xff] %vm279_vm1, %v340_v28  ;;  %v6566_v30 = vld [vmem:[#allocation2 + $0xd8] sm:$0xff]  ;;  %v6570_v32 = vld [vmem:[#allocation2 + $0x20] sm:$0xff] }
  0x4f   : > { %389 = vst.msk [vmem:[#allocation2 + $0x111] sm:$0xff] %vm279_vm1, %v356_v33  ;;  %v6584_v35 = vld [vmem:[#allocation2 + $0xe1] sm:$0xff]  ;;  %v6588_v37 = vld [vmem:[#allocation2 + $0x31] sm:$0xff] }
  0x50   : > { %374 = vst.msk [vmem:[#allocation2 + $0x61] sm:$0xff] %vm279_vm1, %v341_v34  ;;  %v6586_v36 = vld [vmem:[#allocation2 + $0xe0] sm:$0xff]  ;;  %v6590_v38 = vld [vmem:[#allocation2 + $0x30] sm:$0xff] }
  0x51   : > { %390 = vst.msk [vmem:[#allocation2 + $0x121] sm:$0xff] %vm279_vm1, %v357_v39  ;;  %v6604_v41 = vld [vmem:[#allocation2 + $0xf1] sm:$0xff]  ;;  %v6608_v43 = vld [vmem:[#allocation2 + $0x39] sm:$0xff] }
  0x52   : > { %375 = vst.msk [vmem:[#allocation2 + $0x69] sm:$0xff] %vm279_vm1, %v342_v40  ;;  %v6606_v42 = vld [vmem:[#allocation2 + $0xf0] sm:$0xff]  ;;  %v6610_v44 = vld [vmem:[#allocation2 + $0x38] sm:$0xff] }
  0x53   : > { %5696 = vmatmul.msk.f32.gmra.mxu2 %vm279_vm1, %v6564_v29  ;;  %391 = vst.msk [vmem:[#allocation2 + $0x129] sm:$0xff] %vm279_vm1, %v358_v45  ;;  %v6624_v47 = vld [vmem:[#allocation2 + $0xf9] sm:$0xff]  ;;  %v6628_v49 = vld [vmem:[#allocation2 + $0x49] sm:$0xff] }
  0x54   : > { %5729 = vmatmul.msk.f32.gmra.mxu3 %vm279_vm1, %v6566_v30  ;;  %5681 = vmatmul.msk.f32.gmra.mxu0 %vm279_vm1, %v6568_v31  ;;  %376 = vst.msk [vmem:[#allocation2 + $0x79] sm:$0xff] %vm279_vm1, %v343_v46  ;;  %v6626_v48 = vld [vmem:[#allocation2 + $0xf8] sm:$0xff]  ;;  %v6630_v50 = vld [vmem:[#allocation2 + $0x48] sm:$0xff] }
  0x55   : > { %5714 = vmatmul.msk.f32.gmra.mxu1 %vm279_vm1, %v6570_v32  ;;  %392 = vst.msk [vmem:[#allocation2 + $0x139] sm:$0xff] %vm279_vm1, %v359_v51  ;;  %v6644_v53 = vld [vmem:[#allocation2 + $0x109] sm:$0xff]  ;;  %v6648_v55 = vld [vmem:[#allocation2 + $0x51] sm:$0xff]  ;;  %v5913_v45 = vld [vmem:[%s8979_s1 + $0x1c] sm:$0xf] }
  0x56   : > { %377 = vst.msk [vmem:[#allocation2 + $0x81] sm:$0xff] %vm279_vm1, %v344_v52  ;;  %v6646_v54 = vld [vmem:[#allocation2 + $0x108] sm:$0xff]  ;;  %v6650_v56 = vld [vmem:[#allocation2 + $0x50] sm:$0xff]  ;;  %v5879_v40 = vld [vmem:[%s8979_s1 + $0x18] sm:$0xf]  ;;  %5914 = vmatpush.msk.msra.mxu3 %vm563_vm0, %v5913_v45 }
  0x57   : > { %393 = vst.msk [vmem:[#allocation2 + $0x141] sm:$0xff] %vm279_vm1, %v360_v57  ;;  %v6664_v59 = vld [vmem:[#allocation2 + $0x111] sm:$0xff]  ;;  %v6668_v61 = vld [vmem:[#allocation2 + $0x61] sm:$0xff]  ;;  %5880 = vmatpush.msk.msra.mxu2 %vm563_vm0, %v5879_v40 }
  0x58   : > { %378 = vst.msk [vmem:[#allocation2 + $0x91] sm:$0xff] %vm279_vm1, %v345_v58  ;;  %v6666_v60 = vld [vmem:[#allocation2 + $0x110] sm:$0xff]  ;;  %v6670_v62 = vld [vmem:[#allocation2 + $0x60] sm:$0xff] }
  0x59   : > { %394 = vst.msk [vmem:[#allocation2 + $0x151] sm:$0xff] %vm279_vm1, %v361_v63  ;;  %v6684_v1 = vld [vmem:[#allocation2 + $0x121] sm:$0xff]  ;;  %v6688_v3 = vld [vmem:[#allocation2 + $0x69] sm:$0xff]  ;;  %v5845_v58 = vld [vmem:[%s8979_s1 + $0x14] sm:$0xf] }
  0x5a   : > { %379 = vst.msk [vmem:[#allocation2 + $0x99] sm:$0xff] %vm279_vm1, %v346_v0  ;;  %v6686_v2 = vld [vmem:[#allocation2 + $0x120] sm:$0xff]  ;;  %v6690_v4 = vld [vmem:[#allocation2 + $0x68] sm:$0xff]  ;;  %5846 = vmatpush.msk.msrb.mxu1 %vm563_vm0, %v5845_v58 }
  0x5b   : > { %5697 = vmatmul.msk.f32.gmra.mxu2 %vm279_vm1, %v6584_v35  ;;  %395 = vst.msk [vmem:[#allocation2 + $0x159] sm:$0xff] %vm279_vm1, %v362_v5  ;;  %v6704_v7 = vld [vmem:[#allocation2 + $0x129] sm:$0xff]  ;;  %v6708_v9 = vld [vmem:[#allocation2 + $0x79] sm:$0xff] }
  0x5c   : > { %5730 = vmatmul.msk.f32.gmra.mxu3 %vm279_vm1, %v6586_v36  ;;  %5682 = vmatmul.msk.f32.gmra.mxu0 %vm279_vm1, %v6588_v37  ;;  %380 = vst.msk [vmem:[#allocation2 + $0xa9] sm:$0xff] %vm279_vm1, %v347_v6  ;;  %v6706_v8 = vld [vmem:[#allocation2 + $0x128] sm:$0xff]  ;;  %v6710_v12 = vld [vmem:[#allocation2 + $0x78] sm:$0xff]  ;;  %v5947_v63 = vld [vmem:[%s8979_s1 + $0x20] sm:$0xf] }
  0x5d   : > { %5715 = vmatmul.msk.f32.gmra.mxu1 %vm279_vm1, %v6590_v38  ;;  %396 = vst.msk [vmem:[#allocation2 + $0x169] sm:$0xff] %vm279_vm1, %v363_v13  ;;  %v6724_v15 = vld [vmem:[#allocation2 + $0x139] sm:$0xff]  ;;  %v6728_v17 = vld [vmem:[#allocation2 + $0x81] sm:$0xff]  ;;  %5948 = vmatpush.msk.msra.mxu0 %vm563_vm0, %v5947_v63 }
  0x5e   : > { %381 = vst.msk [vmem:[#allocation2 + $0xb1] sm:$0xff] %vm279_vm1, %v348_v14  ;;  %v6726_v16 = vld [vmem:[#allocation2 + $0x138] sm:$0xff]  ;;  %v6730_v18 = vld [vmem:[#allocation2 + $0x80] sm:$0xff] }
  0x5f   : > { %397 = vst.msk [vmem:[#allocation2 + $0x171] sm:$0xff] %vm279_vm1, %v364_v19  ;;  %v6742_v20 = vld [vmem:[#allocation2 + $0x141] sm:$0xff]  ;;  %v6746_v22 = vld [vmem:[#allocation2 + $0x91] sm:$0xff] }
  0x60   : > { %v6744_v21 = vld [vmem:[#allocation2 + $0x140] sm:$0xff]  ;;  %v6748_v25 = vld [vmem:[#allocation2 + $0x90] sm:$0xff] }
  0x61   : > { %9054 = vst [vmem:[#allocation3_spill] sm:$0xff] %v6744_v21  ;;  %v6758_v28 = vld [vmem:[#allocation2 + $0x151] sm:$0xff]  ;;  %v6762_v34 = vld [vmem:[#allocation2 + $0x99] sm:$0xff] }
  0x62   : > { %9055 = vst [vmem:[#allocation4_spill] sm:$0xff] %v6758_v28  ;;  %v6760_v33 = vld [vmem:[#allocation2 + $0x150] sm:$0xff]  ;;  %v6764_v39 = vld [vmem:[#allocation2 + $0x98] sm:$0xff] }
  0x63   : > { %5698 = vmatmul.msk.f32.gmra.mxu2 %vm279_vm1, %v6604_v41  ;;  %9056 = vst [vmem:[#allocation5_spill] sm:$0xff] %v6760_v33  ;;  %v6782_v46 = vld [vmem:[#allocation2 + $0x159] sm:$0xff]  ;;  %v6786_v52 = vld [vmem:[#allocation2 + $0xa9] sm:$0xff] }
  0x64   : > { %5731 = vmatmul.msk.f32.gmra.mxu3 %vm279_vm1, %v6606_v42  ;;  %5683 = vmatmul.msk.f32.gmra.mxu0 %vm279_vm1, %v6608_v43  ;;  %9057 = vst [vmem:[#allocation6_spill] sm:$0xff] %v6782_v46  ;;  %v6784_v51 = vld [vmem:[#allocation2 + $0x158] sm:$0xff]  ;;  %v6788_v57 = vld [vmem:[#allocation2 + $0xa8] sm:$0xff] }
  0x65   : > { %5716 = vmatmul.msk.f32.gmra.mxu1 %vm279_vm1, %v6610_v44  ;;  %9058 = vst [vmem:[#allocation7_spill] sm:$0xff] %v6784_v51  ;;  %v6806_v0 = vld [vmem:[#allocation2 + $0x169] sm:$0xff]  ;;  %v6810_v6 = vld [vmem:[#allocation2 + $0xb1] sm:$0xff]  ;;  %v1726_v58 = vld [vmem:[#allocation2 + $0x1a] sm:$0xff] }
  0x66   : > { %9059 = vst [vmem:[#allocation8_spill] sm:$0xff] %v6806_v0  ;;  %v6808_v5 = vld [vmem:[#allocation2 + $0x168] sm:$0xff]  ;;  %v6812_v13 = vld [vmem:[#allocation2 + $0xb0] sm:$0xff] }
  0x67   : > { %9060 = vst [vmem:[#allocation9_spill] sm:$0xff] %v6808_v5  ;;  %v6826_v40 = vld [vmem:[#allocation2 + $0x171] sm:$0xff] }
  0x68   : > { %9061 = vst [vmem:[#allocation10_spill] sm:$0xff] %v6826_v40  ;;  %v6828_v45 = vld [vmem:[#allocation2 + $0x170] sm:$0xff] }
  0x69   : > { %9062 = vst [vmem:[#allocation11_spill] sm:$0xff] %v6828_v45 }
  0x6b   : > { %5699 = vmatmul.msk.f32.gmra.mxu2 %vm279_vm1, %v6624_v47 }
  0x6c   : > { %5732 = vmatmul.msk.f32.gmra.mxu3 %vm279_vm1, %v6626_v48  ;;  %5684 = vmatmul.msk.f32.gmra.mxu0 %vm279_vm1, %v6628_v49 }
  0x6d   : > { %5717 = vmatmul.msk.f32.gmra.mxu1 %vm279_vm1, %v6630_v50 }
  0x73   : > { %5700 = vmatmul.msk.f32.gmra.mxu2 %vm279_vm1, %v6644_v53 }
  0x74   : > { %5733 = vmatmul.msk.f32.gmra.mxu3 %vm279_vm1, %v6646_v54  ;;  %5685 = vmatmul.msk.f32.gmra.mxu0 %vm279_vm1, %v6648_v55 }
  0x75   : > { %5718 = vmatmul.msk.f32.gmra.mxu1 %vm279_vm1, %v6650_v56 }
  0x7b   : > { %5701 = vmatmul.msk.f32.gmra.mxu2 %vm279_vm1, %v6664_v59 }
  0x7c   : > { %5734 = vmatmul.msk.f32.gmra.mxu3 %vm279_vm1, %v6666_v60  ;;  %5686 = vmatmul.msk.f32.gmra.mxu0 %vm279_vm1, %v6668_v61 }
  0x7d   : > { %5719 = vmatmul.msk.f32.gmra.mxu1 %vm279_vm1, %v6670_v62 }
  0x83   : > { %5702 = vmatmul.msk.f32.gmra.mxu2 %vm279_vm1, %v6684_v1 }
  0x84   : > { %5735 = vmatmul.msk.f32.gmra.mxu3 %vm279_vm1, %v6686_v2  ;;  %5687 = vmatmul.msk.f32.gmra.mxu0 %vm279_vm1, %v6688_v3 }
  0x85   : > { %5720 = vmatmul.msk.f32.gmra.mxu1 %vm279_vm1, %v6690_v4 }
  0x8b   : > { %5703 = vmatmul.msk.f32.gmra.mxu2 %vm279_vm1, %v6704_v7 }
  0x8c   : > { %5736 = vmatmul.msk.f32.gmra.mxu3 %vm279_vm1, %v6706_v8  ;;  %5688 = vmatmul.msk.f32.gmra.mxu0 %vm279_vm1, %v6708_v9 }
  0x8d   : > { %5721 = vmatmul.msk.f32.gmra.mxu1 %vm279_vm1, %v6710_v12 }
  0x91   : > { %v6824_v19 = vpop.f32.mrf.mxu1 }
  0x92   : > { %v6822_v14 = vpop.f32.mrf.mxu0 }
  0x93   : > { %5704 = vmatmul.msk.f32.gmra.mxu2 %vm279_vm1, %v6724_v15 }
  0x94   : > { %5737 = vmatmul.msk.f32.gmra.mxu3 %vm279_vm1, %v6726_v16  ;;  %5689 = vmatmul.msk.f32.gmra.mxu0 %vm279_vm1, %v6728_v17 }
  0x95   : > { %5722 = vmatmul.msk.f32.gmra.mxu1 %vm279_vm1, %v6730_v18 }
  0x9b   : > { %5705 = vmatmul.msk.f32.gmra.mxu2 %vm279_vm1, %v6742_v20 }
  0x9c   : > { %5738 = vmatmul.msk.f32.gmra.mxu3 %vm279_vm1, %v6744_v21  ;;  %5690 = vmatmul.msk.f32.gmra.mxu0 %vm279_vm1, %v6746_v22  ;;  %v6870_v21 = vld [vmem:[#allocation2 + $0x3a] sm:$0xff] }
  0x9d   : > { %5723 = vmatmul.msk.f32.gmra.mxu1 %vm279_vm1, %v6748_v25  ;;  %9067 = vst [vmem:[#allocation16_spill] sm:$0xff] %v6870_v21 }
  0xa3   : > { %5706 = vmatmul.msk.f32.gmra.mxu2 %vm279_vm1, %v6758_v28  ;;  %v6855_v28 = vld [vmem:[#allocation2 + $0x32] sm:$0xff] }
  0xa4   : > { %5739 = vmatmul.msk.f32.gmra.mxu3 %vm279_vm1, %v6760_v33  ;;  %5691 = vmatmul.msk.f32.gmra.mxu0 %vm279_vm1, %v6762_v34  ;;  %9065 = vst [vmem:[#allocation14_spill] sm:$0xff] %v6855_v28 }
  0xa5   : > { %5724 = vmatmul.msk.f32.gmra.mxu1 %vm279_vm1, %v6764_v39 }
  0xab   : > { %5707 = vmatmul.msk.f32.gmra.mxu2 %vm279_vm1, %v6782_v46 }
  0xac   : > { %5740 = vmatmul.msk.f32.gmra.mxu3 %vm279_vm1, %v6784_v51  ;;  %5692 = vmatmul.msk.f32.gmra.mxu0 %vm279_vm1, %v6786_v52  ;;  %v1727_v51 = vld [vmem:[#allocation2 + $0x22] sm:$0xff] }
  0xad   : > { %5725 = vmatmul.msk.f32.gmra.mxu1 %vm279_vm1, %v6788_v57 }
  0xb3   : > { %5708 = vmatmul.msk.f32.gmra.mxu2 %vm279_vm1, %v6806_v0  ;;  %v892_v0 = vld [vmem:[#allocation2 + $0x2] sm:$0xff] }
  0xb4   : > { %5741 = vmatmul.msk.f32.gmra.mxu3 %vm279_vm1, %v6808_v5  ;;  %5693 = vmatmul.msk.f32.gmra.mxu0 %vm279_vm1, %v6810_v6  ;;  %v6839_v5 = vpop.f32.mrf.mxu1 }
  0xb5   : > { %5726 = vmatmul.msk.f32.gmra.mxu1 %vm279_vm1, %v6812_v13 }
  0xb6   : > { %v6837_v63 = vpop.f32.mrf.mxu0 }
  0xbb   : > { %5709 = vmatmul.msk.f32.gmra.mxu2 %vm279_vm1, %v6826_v40 }
  0xbc   : > { %5742 = vmatmul.msk.f32.gmra.mxu3 %vm279_vm1, %v6828_v45  ;;  %5813 = vmatmul.msk.f32.vlgmr.msrb.gmra.mxu0 %vm279_vm1, %v6551_v26  ;;  %v6846_v45 = vpop.f32.mrf.mxu2  ;;  %v6848_v40 = vpop.f32.mrf.mxu3  ;;  %v893_v26 = vld [vmem:[#allocation2 + $0xa] sm:$0xff] }
  0xbd   : > { %5847 = vmatmul.msk.f32.vlgmr.msrb.gmra.mxu1 %vm279_vm1, %v1726_v58  ;;  %9063 = vst [vmem:[#allocation12_spill] sm:$0xff] %v6846_v45 }
  0xbe   : > { %9064 = vst [vmem:[#allocation13_spill] sm:$0xff] %v6848_v40 }
  0xc3   : > { %5745 = vmatmul.msk.f32.vlgmr.msrb.gmra.mxu2 %vm279_vm1, %v892_v0 }
  0xc4   : > { %5779 = vmatmul.msk.f32.vlgmr.msrb.gmra.mxu3 %vm279_vm1, %v6553_v27  ;;  %5814 = vmatmul.msk.f32.gmra.mxu0 %vm279_vm1, %v6568_v31 }
  0xc5   : > { %5848 = vmatmul.msk.f32.gmra.mxu1 %vm279_vm1, %v1727_v51 }
  0xc9   : > { %v6851_v46 = vpop.f32.mrf.mxu0 }
  0xca   : > { %v6853_v33 = vpop.f32.mrf.mxu1 }
  0xcb   : > { %5746 = vmatmul.msk.f32.gmra.mxu2 %vm279_vm1, %v893_v26 }
  0xcc   : > { %5780 = vmatmul.msk.f32.gmra.mxu3 %vm279_vm1, %v6570_v32  ;;  %5815 = vmatmul.msk.f32.gmra.mxu0 %vm279_vm1, %v6588_v37 }
  0xcd   : > { %5849 = vmatmul.msk.f32.gmra.mxu1 %vm279_vm1, %v6855_v28 }
  0xce   : > { %v635_v27 = vpop.f32.mrf.mxu2 }
  0xcf   : > { %v847_v31 = vpop.f32.mrf.mxu3 }
  0xd0   : > { %v6864_v0 = vadd.f32 %v847_v31, %v635_v27 }
  0xd1   : > { %v6866_v40 = vpop.f32.mrf.mxu0 }
  0xd2   : > { %9066 = vst [vmem:[#allocation15_spill] sm:$0xff] %v6864_v0  ;;  %v6868_v45 = vpop.f32.mrf.mxu1  ;;  %v6885_v0 = vld [vmem:[#allocation2 + $0x4a] sm:$0xff] }
  0xd3   : > { %5747 = vmatmul.msk.f32.gmra.mxu2 %vm279_vm1, %v1726_v58  ;;  %9069 = vst [vmem:[#allocation18_spill] sm:$0xff] %v6885_v0 }
  0xd4   : > { %5781 = vmatmul.msk.f32.gmra.mxu3 %vm279_vm1, %v6590_v38  ;;  %5816 = vmatmul.msk.f32.gmra.mxu0 %vm279_vm1, %v6608_v43 }
  0xd5   : > { %5850 = vmatmul.msk.f32.gmra.mxu1 %vm279_vm1, %v6870_v21 }
  0xd6   : > { %v638_v32 = vpop.f32.mrf.mxu2 }
  0xd7   : > { %v850_v37 = vpop.f32.mrf.mxu3 }
  0xd8   : > { %v6879_v26 = vadd.f32 %v850_v37, %v638_v32 }
  0xd9   : > { %v6881_v27 = vpop.f32.mrf.mxu0 }
  0xda   : > { %9068 = vst [vmem:[#allocation17_spill] sm:$0xff] %v6879_v26  ;;  %v6883_v31 = vpop.f32.mrf.mxu1  ;;  %v6900_v26 = vld [vmem:[#allocation2 + $0x52] sm:$0xff] }
  0xdb   : > { %5748 = vmatmul.msk.f32.gmra.mxu2 %vm279_vm1, %v1727_v51  ;;  %9071 = vst [vmem:[#allocation20_spill] sm:$0xff] %v6900_v26 }
  0xdc   : > { %5782 = vmatmul.msk.f32.gmra.mxu3 %vm279_vm1, %v6610_v44  ;;  %5817 = vmatmul.msk.f32.gmra.mxu0 %vm279_vm1, %v6628_v49 }
  0xdd   : > { %5851 = vmatmul.msk.f32.gmra.mxu1 %vm279_vm1, %v6885_v0 }
  0xde   : > { %v641_v38 = vpop.f32.mrf.mxu2 }
  0xdf   : > { %v853_v43 = vpop.f32.mrf.mxu3 }
  0xe0   : > { %v6894_v58 = vadd.f32 %v853_v43, %v641_v38 }
  0xe1   : > { %v6896_v32 = vpop.f32.mrf.mxu0 }
  0xe2   : > { %9070 = vst [vmem:[#allocation19_spill] sm:$0xff] %v6894_v58  ;;  %v6898_v37 = vpop.f32.mrf.mxu1  ;;  %v6916_v58 = vld [vmem:[#allocation2 + $0x62] sm:$0xff] }
  0xe3   : > { %5749 = vmatmul.msk.f32.gmra.mxu2 %vm279_vm1, %v6855_v28  ;;  %9073 = vst [vmem:[#allocation22_spill] sm:$0xff] %v6916_v58  ;;  %v6932_v28 = vld [vmem:[#allocation2 + $0x6a] sm:$0xff] }
  0xe4   : > { %5783 = vmatmul.msk.f32.gmra.mxu3 %vm279_vm1, %v6630_v50  ;;  %5818 = vmatmul.msk.f32.gmra.mxu0 %vm279_vm1, %v6648_v55  ;;  %9075 = vst [vmem:[#allocation24_spill] sm:$0xff] %v6932_v28 }
  0xe5   : > { %5852 = vmatmul.msk.f32.gmra.mxu1 %vm279_vm1, %v6900_v26 }
  0xe6   : > { %v644_v44 = vpop.f32.mrf.mxu2 }
  0xe7   : > { %v856_v49 = vpop.f32.mrf.mxu3 }
  0xe8   : > { %v6910_v51 = vadd.f32 %v856_v49, %v644_v44 }
  0xe9   : > { %v6912_v38 = vpop.f32.mrf.mxu0 }
  0xea   : > { %9072 = vst [vmem:[#allocation21_spill] sm:$0xff] %v6910_v51  ;;  %v6914_v43 = vpop.f32.mrf.mxu1 }
  0xeb   : > { %5750 = vmatmul.msk.f32.gmra.mxu2 %vm279_vm1, %v6870_v21  ;;  %v6948_v21 = vld [vmem:[#allocation2 + $0x7a] sm:$0xff] }
  0xec   : > { %5784 = vmatmul.msk.f32.gmra.mxu3 %vm279_vm1, %v6650_v56  ;;  %5819 = vmatmul.msk.f32.gmra.mxu0 %vm279_vm1, %v6668_v61  ;;  %9077 = vst [vmem:[#allocation26_spill] sm:$0xff] %v6948_v21 }
  0xed   : > { %5853 = vmatmul.msk.f32.gmra.mxu1 %vm279_vm1, %v6916_v58 }
  0xee   : > { %v647_v50 = vpop.f32.mrf.mxu2 }
  0xef   : > { %v859_v55 = vpop.f32.mrf.mxu3 }
  0xf0   : > { %v6926_v44 = vadd.f32 %v859_v55, %v647_v50 }
  0xf1   : > { %v6928_v49 = vpop.f32.mrf.mxu0 }
  0xf2   : > { %9074 = vst [vmem:[#allocation23_spill] sm:$0xff] %v6926_v44  ;;  %v6930_v51 = vpop.f32.mrf.mxu1 }
  0xf3   : > { %5751 = vmatmul.msk.f32.gmra.mxu2 %vm279_vm1, %v6885_v0  ;;  %v6964_v0 = vld [vmem:[#allocation2 + $0x82] sm:$0xff] }
  0xf4   : > { %5785 = vmatmul.msk.f32.gmra.mxu3 %vm279_vm1, %v6670_v62  ;;  %5820 = vmatmul.msk.f32.gmra.mxu0 %vm279_vm1, %v6688_v3  ;;  %9079 = vst [vmem:[#allocation28_spill] sm:$0xff] %v6964_v0 }
  0xf5   : > { %5854 = vmatmul.msk.f32.gmra.mxu1 %vm279_vm1, %v6932_v28 }
  0xf6   : > { %v650_v56 = vpop.f32.mrf.mxu2 }
  0xf7   : > { %v862_v61 = vpop.f32.mrf.mxu3 }
  0xf8   : > { %v6942_v50 = vadd.f32 %v862_v61, %v650_v56 }
  0xf9   : > { %v6944_v55 = vpop.f32.mrf.mxu0 }
  0xfa   : > { %9076 = vst [vmem:[#allocation25_spill] sm:$0xff] %v6942_v50  ;;  %v6946_v44 = vpop.f32.mrf.mxu1 }
  0xfb   : > { %5752 = vmatmul.msk.f32.gmra.mxu2 %vm279_vm1, %v6900_v26  ;;  %v6980_v26 = vld [vmem:[#allocation2 + $0x92] sm:$0xff] }
  0xfc   : > { %5786 = vmatmul.msk.f32.gmra.mxu3 %vm279_vm1, %v6690_v4  ;;  %5821 = vmatmul.msk.f32.gmra.mxu0 %vm279_vm1, %v6708_v9  ;;  %9081 = vst [vmem:[#allocation30_spill] sm:$0xff] %v6980_v26 }
  0xfd   : > { %5855 = vmatmul.msk.f32.gmra.mxu1 %vm279_vm1, %v6948_v21 }
  0xfe   : > { %v653_v62 = vpop.f32.mrf.mxu2 }
  0xff   : > { %v865_v3 = vpop.f32.mrf.mxu3 }
 0x100   : > { %v6958_v56 = vadd.f32 %v865_v3, %v653_v62 }
 0x101   : > { %v6960_v61 = vpop.f32.mrf.mxu0 }
 0x102   : > { %9078 = vst [vmem:[#allocation27_spill] sm:$0xff] %v6958_v56  ;;  %v6962_v50 = vpop.f32.mrf.mxu1 }
 0x103   : > { %5753 = vmatmul.msk.f32.gmra.mxu2 %vm279_vm1, %v6916_v58  ;;  %v6996_v58 = vld [vmem:[#allocation2 + $0x9a] sm:$0xff] }
 0x104   : > { %5787 = vmatmul.msk.f32.gmra.mxu3 %vm279_vm1, %v6710_v12  ;;  %5822 = vmatmul.msk.f32.gmra.mxu0 %vm279_vm1, %v6728_v17  ;;  %9083 = vst [vmem:[#allocation32_spill] sm:$0xff] %v6996_v58 }
 0x105   : > { %5856 = vmatmul.msk.f32.gmra.mxu1 %vm279_vm1, %v6964_v0 }
 0x106   : > { %v656_v4 = vpop.f32.mrf.mxu2 }
 0x107   : > { %v868_v9 = vpop.f32.mrf.mxu3 }
 0x108   : > { %v6974_v62 = vadd.f32 %v868_v9, %v656_v4 }
 0x109   : > { %v6976_v3 = vpop.f32.mrf.mxu0 }
 0x10a   : > { %9080 = vst [vmem:[#allocation29_spill] sm:$0xff] %v6974_v62  ;;  %v6978_v56 = vpop.f32.mrf.mxu1 }
 0x10b   : > { %5754 = vmatmul.msk.f32.gmra.mxu2 %vm279_vm1, %v6932_v28  ;;  %v7012_v28 = vld [vmem:[#allocation2 + $0xaa] sm:$0xff] }
 0x10c   : > { %5788 = vmatmul.msk.f32.gmra.mxu3 %vm279_vm1, %v6730_v18  ;;  %5823 = vmatmul.msk.f32.gmra.mxu0 %vm279_vm1, %v6746_v22  ;;  %9085 = vst [vmem:[#allocation34_spill] sm:$0xff] %v7012_v28 }
 0x10d   : > { %5857 = vmatmul.msk.f32.gmra.mxu1 %vm279_vm1, %v6980_v26 }
 0x10e   : > { %v659_v12 = vpop.f32.mrf.mxu2 }
 0x10f   : > { %v871_v17 = vpop.f32.mrf.mxu3 }
 0x110   : > { %v6990_v4 = vadd.f32 %v871_v17, %v659_v12 }
 0x111   : > { %v6992_v9 = vpop.f32.mrf.mxu0 }
 0x112   : > { %9082 = vst [vmem:[#allocation31_spill] sm:$0xff] %v6990_v4  ;;  %v6994_v62 = vpop.f32.mrf.mxu1 }
 0x113   : > { %5755 = vmatmul.msk.f32.gmra.mxu2 %vm279_vm1, %v6948_v21  ;;  %v7028_v21 = vld [vmem:[#allocation2 + $0xb2] sm:$0xff] }
 0x114   : > { %5789 = vmatmul.msk.f32.gmra.mxu3 %vm279_vm1, %v6748_v25  ;;  %5824 = vmatmul.msk.f32.gmra.mxu0 %vm279_vm1, %v6762_v34  ;;  %9087 = vst [vmem:[#allocation36_spill] sm:$0xff] %v7028_v21 }
 0x115   : > { %5858 = vmatmul.msk.f32.gmra.mxu1 %vm279_vm1, %v6996_v58 }
 0x116   : > { %v662_v18 = vpop.f32.mrf.mxu2 }
 0x117   : > { %v874_v22 = vpop.f32.mrf.mxu3 }
 0x118   : > { %v7006_v12 = vadd.f32 %v874_v22, %v662_v18 }
 0x119   : > { %v7008_v17 = vpop.f32.mrf.mxu0 }
 0x11a   : > { %9084 = vst [vmem:[#allocation33_spill] sm:$0xff] %v7006_v12  ;;  %v7010_v4 = vpop.f32.mrf.mxu1 }
 0x11b   : > { %5756 = vmatmul.msk.f32.gmra.mxu2 %vm279_vm1, %v6964_v0  ;;  %v7044_v0 = vld [vmem:[#allocation2 + $0xc2] sm:$0xff] }
 0x11c   : > { %5790 = vmatmul.msk.f32.gmra.mxu3 %vm279_vm1, %v6764_v39  ;;  %5825 = vmatmul.msk.f32.gmra.mxu0 %vm279_vm1, %v6786_v52  ;;  %9089 = vst [vmem:[#allocation38_spill] sm:$0xff] %v7044_v0 }
 0x11d   : > { %5859 = vmatmul.msk.f32.gmra.mxu1 %vm279_vm1, %v7012_v28 }
 0x11e   : > { %v665_v25 = vpop.f32.mrf.mxu2 }
 0x11f   : > { %v877_v34 = vpop.f32.mrf.mxu3 }
 0x120   : > { %v7022_v18 = vadd.f32 %v877_v34, %v665_v25 }
 0x121   : > { %v7024_v22 = vpop.f32.mrf.mxu0 }
 0x122   : > { %9086 = vst [vmem:[#allocation35_spill] sm:$0xff] %v7022_v18  ;;  %v7026_v12 = vpop.f32.mrf.mxu1 }
 0x123   : > { %5757 = vmatmul.msk.f32.gmra.mxu2 %vm279_vm1, %v6980_v26 }
 0x124   : > { %5791 = vmatmul.msk.f32.gmra.mxu3 %vm279_vm1, %v6788_v57  ;;  %5826 = vmatmul.msk.f32.gmra.mxu0 %vm279_vm1, %v6810_v6  ;;  %v5981_v57 = vld [vmem:[%s8982_s4 + $0x4] sm:$0xf] }
 0x125   : > { %5860 = vmatmul.msk.f32.gmra.mxu1 %vm279_vm1, %v7028_v21 }
 0x126   : > { %v668_v39 = vpop.f32.mrf.mxu2  ;;  %5982 = vmatpush.msk.msra.mxu1 %vm563_vm0, %v5981_v57 }
 0x127   : > { %v880_v52 = vpop.f32.mrf.mxu3 }
 0x128   : > { %v7038_v25 = vadd.f32 %v880_v52, %v668_v39 }
 0x129   : > { %v7040_v34 = vpop.f32.mrf.mxu0 }
 0x12a   : > { %9088 = vst [vmem:[#allocation37_spill] sm:$0xff] %v7038_v25  ;;  %v7042_v18 = vpop.f32.mrf.mxu1 }
 0x12b   : > { %5758 = vmatmul.msk.f32.gmra.mxu2 %vm279_vm1, %v6996_v58  ;;  %v7062_v58 = vld [vmem:[#allocation2 + $0xca] sm:$0xff] }
 0x12c   : > { %5792 = vmatmul.msk.f32.gmra.mxu3 %vm279_vm1, %v6812_v13  ;;  %5827 = vmatmul.msk.f32.gmra.mxu0 %vm279_vm1, %v6491_v10  ;;  %9091 = vst [vmem:[#allocation40_spill] sm:$0xff] %v7062_v58 }
 0x12d   : > { %5861 = vmatmul.msk.f32.gmra.mxu1 %vm279_vm1, %v7044_v0 }
 0x12e   : > { %v671_v6 = vpop.f32.mrf.mxu2 }
 0x12f   : > { %v883_v39 = vpop.f32.mrf.mxu3 }
 0x130   : > { %v7058_v52 = vadd.f32 %v883_v39, %v671_v6 }
 0x131   : > { %v7060_v25 = vpop.f32.mrf.mxu0 }
 0x132   : > { %9090 = vst [vmem:[#allocation39_spill] sm:$0xff] %v7058_v52  ;;  %v7068_v10 = vpop.f32.mrf.mxu1  ;;  %v7076_v52 = vld [vmem:[#allocation2 + $0xda] sm:$0xff] }
 0x133   : > { %5759 = vmatmul.msk.f32.gmra.mxu2 %vm279_vm1, %v7012_v28  ;;  %9092 = vst [vmem:[#allocation41_spill] sm:$0xff] %v7068_v10  ;;  %v7100_v10 = vld [vmem:[#allocation2 + $0xf2] sm:$0xff] }
 0x134   : > { %5793 = vmatmul.msk.f32.gmra.mxu3 %vm279_vm1, %v6493_v11  ;;  %5828 = vmatmul.msk.f32.gmra.mxu0 %vm279_vm1, %v6541_v23 }
 0x135   : > { %5862 = vmatmul.msk.f32.gmra.mxu1 %vm279_vm1, %v7062_v58 }
 0x136   : > { %v674_v13 = vpop.f32.mrf.mxu2 }
 0x137   : > { %v886_v57 = vpop.f32.mrf.mxu3 }
 0x138   : > { %v7074_v6 = vadd.f32 %v886_v57, %v674_v13 }
 0x139   : > { %v1598_v39 = vpop.f32.mrf.mxu0 }
 0x13a   : > { %9093 = vst [vmem:[#allocation42_spill] sm:$0xff] %v7074_v6  ;;  %v1876_v11 = vpop.f32.mrf.mxu1  ;;  %v7088_v6 = vld [vmem:[#allocation2 + $0xe2] sm:$0xff] }
 0x13b   : > { %5760 = vmatmul.msk.f32.gmra.mxu2 %vm279_vm1, %v7028_v21 }
 0x13c   : > { %5794 = vmatmul.msk.f32.gmra.mxu3 %vm279_vm1, %v6543_v24  ;;  %5829 = vmatmul.msk.f32.gmra.mxu0 %vm279_vm1, %v6564_v29  ;;  %v797_v24 = vadd.f32 %v6824_v19, %v6822_v14 }
 0x13d   : > { %5863 = vmatmul.msk.f32.gmra.mxu1 %vm279_vm1, %v7076_v52 }
 0x13e   : > { %v677_v23 = vpop.f32.mrf.mxu2 }
 0x13f   : > { %v889_v28 = vpop.f32.mrf.mxu3 }
 0x140   : > { %v7086_v13 = vadd.f32 %v889_v28, %v677_v23 }
 0x141   : > { %v1601_v57 = vpop.f32.mrf.mxu0 }
 0x142   : > { %9094 = vst [vmem:[#allocation43_spill] sm:$0xff] %v7086_v13  ;;  %v1879_v29 = vpop.f32.mrf.mxu1 }
 0x143   : > { %5761 = vmatmul.msk.f32.gmra.mxu2 %vm279_vm1, %v7044_v0  ;;  %v7114_v0 = vld [vmem:[#allocation2 + $0xfa] sm:$0xff] }
 0x144   : > { %5795 = vmatmul.msk.f32.gmra.mxu3 %vm279_vm1, %v6566_v30  ;;  %5830 = vmatmul.msk.f32.gmra.mxu0 %vm279_vm1, %v6584_v35  ;;  %v800_v35 = vadd.f32 %v6839_v5, %v6837_v63 }
 0x145   : > { %5864 = vmatmul.msk.f32.gmra.mxu1 %vm279_vm1, %v7088_v6 }
 0x146   : > { %v1042_v28 = vpop.f32.mrf.mxu2 }
 0x147   : > { %v1320_v23 = vpop.f32.mrf.mxu3  ;;  %v1138_v13 = vadd.f32 %v1042_v28, %v797_v24 }
 0x149   : > { %v1416_v21 = vadd.f32 %v1320_v23, %v1138_v13  ;;  %v1604_v26 = vpop.f32.mrf.mxu0 }
 0x14a   : > { %v1882_v28 = vpop.f32.mrf.mxu1 }
 0x14b   : > { %5762 = vmatmul.msk.f32.gmra.mxu2 %vm279_vm1, %v7062_v58  ;;  %v1694_v30 = vadd.f32 %v1598_v39, %v1416_v21 }
 0x14c   : > { %5796 = vmatmul.msk.f32.gmra.mxu3 %vm279_vm1, %v6586_v36  ;;  %5831 = vmatmul.msk.f32.gmra.mxu0 %vm279_vm1, %v6604_v41  ;;  %v803_v41 = vadd.f32 %v6853_v33, %v6851_v46 }
 0x14d   : > { %5865 = vmatmul.msk.f32.gmra.mxu1 %vm279_vm1, %v7100_v10  ;;  %v7112_v14 = vadd.f32 %v1876_v11, %v1694_v30 }
 0x14e   : > { %v1045_v19 = vpop.f32.mrf.mxu2 }
 0x14f   : > { %v1323_v13 = vpop.f32.mrf.mxu3  ;;  %v1139_v24 = vadd.f32 %v1045_v19, %v800_v35  ;;  %v7128_v19 = vld [vmem:[#allocation2 + $0x10a] sm:$0xff] }
 0x151   : > { %v1417_v23 = vadd.f32 %v1323_v13, %v1139_v24  ;;  %v1607_v58 = vpop.f32.mrf.mxu0 }
 0x152   : > { %v1885_v35 = vpop.f32.mrf.mxu1 }
 0x153   : > { %5763 = vmatmul.msk.f32.gmra.mxu2 %vm279_vm1, %v7076_v52  ;;  %v1695_v36 = vadd.f32 %v1601_v57, %v1417_v23  ;;  %v7142_v23 = vld [vmem:[#allocation2 + $0x112] sm:$0xff] }
 0x154   : > { %5797 = vmatmul.msk.f32.gmra.mxu3 %vm279_vm1, %v6606_v42  ;;  %5832 = vmatmul.msk.f32.gmra.mxu0 %vm279_vm1, %v6624_v47  ;;  %v806_v47 = vadd.f32 %v6868_v45, %v6866_v40  ;;  %v809_v40 = vadd.f32 %v6883_v31, %v6881_v27 }
 0x155   : > { %5866 = vmatmul.msk.f32.gmra.mxu1 %vm279_vm1, %v7114_v0  ;;  %v7126_v21 = vadd.f32 %v1879_v29, %v1695_v36 }
 0x156   : > { %v1048_v5 = vpop.f32.mrf.mxu2 }
 0x157   : > { %v1326_v63 = vpop.f32.mrf.mxu3  ;;  %v1140_v39 = vadd.f32 %v1048_v5, %v803_v41 }
 0x159   : > { %v1418_v11 = vadd.f32 %v1326_v63, %v1140_v39  ;;  %v1610_v30 = vpop.f32.mrf.mxu0  ;;  %v7156_v63 = vld [vmem:[#allocation2 + $0x122] sm:$0xff] }
 0x15b   : > { %5764 = vmatmul.msk.f32.gmra.mxu2 %vm279_vm1, %v7088_v6  ;;  %v1696_v42 = vadd.f32 %v1604_v26, %v1418_v11 }
 0x15c   : > { %5798 = vmatmul.msk.f32.gmra.mxu3 %vm279_vm1, %v6626_v48  ;;  %5833 = vmatmul.msk.f32.gmra.mxu0 %vm279_vm1, %v6644_v53  ;;  %v1888_v53 = vpop.f32.mrf.mxu1 }
 0x15d   : > { %5867 = vmatmul.msk.f32.gmra.mxu1 %vm279_vm1, %v7128_v19  ;;  %v7140_v33 = vadd.f32 %v1882_v28, %v1696_v42 }
 0x15e   : > { %v1051_v46 = vpop.f32.mrf.mxu2 }
 0x15f   : > { %v1329_v57 = vpop.f32.mrf.mxu3  ;;  %v1141_v29 = vadd.f32 %v1051_v46, %v806_v47  ;;  %v7170_v47 = vld [vmem:[#allocation2 + $0x12a] sm:$0xff] }
 0x161   : > { %v1419_v13 = vadd.f32 %v1329_v57, %v1141_v29  ;;  %v1613_v24 = vpop.f32.mrf.mxu0 }
 0x163   : > { %5765 = vmatmul.msk.f32.gmra.mxu2 %vm279_vm1, %v7100_v10  ;;  %v1697_v48 = vadd.f32 %v1607_v58, %v1419_v13 }
 0x164   : > { %5799 = vmatmul.msk.f32.gmra.mxu3 %vm279_vm1, %v6646_v54  ;;  %5834 = vmatmul.msk.f32.gmra.mxu0 %vm279_vm1, %v6664_v59  ;;  %v812_v59 = vadd.f32 %v6898_v37, %v6896_v32  ;;  %v1891_v31 = vpop.f32.mrf.mxu1 }
 0x165   : > { %5868 = vmatmul.msk.f32.gmra.mxu1 %vm279_vm1, %v7142_v23  ;;  %v7154_v45 = vadd.f32 %v1885_v35, %v1697_v48  ;;  %v7184_v48 = vld [vmem:[#allocation2 + $0x13a] sm:$0xff] }
 0x166   : > { %v1054_v26 = vpop.f32.mrf.mxu2 }
 0x167   : > { %v1332_v28 = vpop.f32.mrf.mxu3  ;;  %v1142_v36 = vadd.f32 %v1054_v26, %v809_v40 }
 0x169   : > { %v1420_v41 = vadd.f32 %v1332_v28, %v1142_v36  ;;  %v1616_v5 = vpop.f32.mrf.mxu0  ;;  %v7198_v28 = vld [vmem:[#allocation2 + $0x142] sm:$0xff] }
 0x16b   : > { %5766 = vmatmul.msk.f32.gmra.mxu2 %vm279_vm1, %v7114_v0  ;;  %v1698_v54 = vadd.f32 %v1610_v30, %v1420_v41 }
 0x16c   : > { %5800 = vmatmul.msk.f32.gmra.mxu3 %vm279_vm1, %v6666_v60  ;;  %5835 = vmatmul.msk.f32.gmra.mxu0 %vm279_vm1, %v6684_v1  ;;  %v815_v1 = vadd.f32 %v6914_v43, %v6912_v38  ;;  %v1894_v57 = vpop.f32.mrf.mxu1 }
 0x16d   : > { %5869 = vmatmul.msk.f32.gmra.mxu1 %vm279_vm1, %v7156_v63  ;;  %v7168_v27 = vadd.f32 %v1888_v53, %v1698_v54 }
 0x16e   : > { %v1057_v58 = vpop.f32.mrf.mxu2 }
 0x16f   : > { %v1335_v39 = vpop.f32.mrf.mxu3  ;;  %v1143_v11 = vadd.f32 %v1057_v58, %v812_v59 }
 0x171   : > { %v1421_v35 = vadd.f32 %v1335_v39, %v1143_v11  ;;  %v1619_v42 = vpop.f32.mrf.mxu0  ;;  %v824_v39 = vadd.f32 %v6962_v50, %v6960_v61  ;;  %v827_v50 = vadd.f32 %v6978_v56, %v6976_v3  ;;  %v830_v56 = vadd.f32 %v6994_v62, %v6992_v9 }
 0x172   : > { %v833_v62 = vadd.f32 %v7010_v4, %v7008_v17  ;;  %v836_v4 = vadd.f32 %v7026_v12, %v7024_v22  ;;  %v839_v12 = vadd.f32 %v7042_v18, %v7040_v34  ;;  %v9105_v18 = vld [vmem:[#allocation41_spill] sm:$0xff] }
 0x173   : > { %5767 = vmatmul.msk.f32.gmra.mxu2 %vm279_vm1, %v7128_v19  ;;  %v1699_v60 = vadd.f32 %v1613_v24, %v1421_v35  ;;  %v842_v34 = vadd.f32 %v9105_v18, %v7060_v25  ;;  %v2285_v18 = vld [vmem:[#allocation2 + $0x49] sm:$0xff] }
 0x174   : > { %5801 = vmatmul.msk.f32.gmra.mxu3 %vm279_vm1, %v6686_v2  ;;  %5836 = vmatmul.msk.f32.gmra.mxu0 %vm279_vm1, %v6704_v7  ;;  %v818_v7 = vadd.f32 %v6930_v51, %v6928_v49  ;;  %v365_v51 = vld [vmem:[%s6459_s14 + $0xf0] sm:$0xff]  ;;  %v821_v49 = vadd.f32 %v6946_v44, %v6944_v55  ;;  %v9096_v44 = vld [vmem:[#allocation4_spill] sm:$0xff] }
 0x175   : > { %5870 = vmatmul.msk.f32.gmra.mxu1 %vm279_vm1, %v7170_v47  ;;  %v7182_v32 = vadd.f32 %v1891_v31, %v1699_v60  ;;  %398 = vst.msk [vmem:[#allocation2 + $0x181] sm:$0xff] %vm279_vm1, %v365_v51  ;;  %v7214_v31 = vld [vmem:[#allocation2 + $0x152] sm:$0xff] }
 0x176   : > { %v1060_v37 = vpop.f32.mrf.mxu2  ;;  %v366_v55 = vld [vmem:[%s6459_s14 + $0xf8] sm:$0xff] }
 0x177   : > { %v1338_v30 = vpop.f32.mrf.mxu3  ;;  %v1144_v46 = vadd.f32 %v1060_v37, %v815_v1  ;;  %399 = vst.msk [vmem:[#allocation2 + $0x189] sm:$0xff] %vm279_vm1, %v366_v55  ;;  %v7230_v37 = vld [vmem:[#allocation2 + $0x15a] sm:$0xff] }
 0x179   : > { %v1422_v29 = vadd.f32 %v1338_v30, %v1144_v46  ;;  %v1622_v13 = vpop.f32.mrf.mxu0  ;;  %v9097_v30 = vld [vmem:[#allocation5_spill] sm:$0xff] }
 0x17b   : > { %5768 = vmatmul.msk.f32.gmra.mxu2 %vm279_vm1, %v7142_v23  ;;  %v1700_v2 = vadd.f32 %v1616_v5, %v1422_v29 }
 0x17c   : > { %5802 = vmatmul.msk.f32.gmra.mxu3 %vm279_vm1, %v6706_v8  ;;  %5837 = vmatmul.msk.f32.gmra.mxu0 %vm279_vm1, %v6724_v15  ;;  %v1897_v8 = vpop.f32.mrf.mxu1  ;;  %v7272_v55 = vld [vmem:[#allocation2 + $0x181] sm:$0xff] }
 0x17d   : > { %5871 = vmatmul.msk.f32.gmra.mxu1 %vm279_vm1, %v7184_v48  ;;  %v7196_v38 = vadd.f32 %v1894_v57, %v1700_v2  ;;  %v9098_v57 = vld [vmem:[#allocation6_spill] sm:$0xff] }
 0x17e   : > { %v1063_v43 = vpop.f32.mrf.mxu2 }
 0x17f   : > { %v1341_v24 = vpop.f32.mrf.mxu3  ;;  %v1145_v53 = vadd.f32 %v1063_v43, %v818_v7  ;;  %v7244_v43 = vld [vmem:[#allocation2 + $0x16a] sm:$0xff] }
 0x181   : > { %v1423_v40 = vadd.f32 %v1341_v24, %v1145_v53  ;;  %v1625_v26 = vpop.f32.mrf.mxu0  ;;  %v9099_v24 = vld [vmem:[#allocation7_spill] sm:$0xff] }
 0x183   : > { %5769 = vmatmul.msk.f32.gmra.mxu2 %vm279_vm1, %v7156_v63  ;;  %v1701_v15 = vadd.f32 %v1619_v42, %v1423_v40  ;;  %v9100_v40 = vld [vmem:[#allocation8_spill] sm:$0xff] }
 0x184   : > { %5803 = vmatmul.msk.f32.gmra.mxu3 %vm279_vm1, %v6726_v16  ;;  %5838 = vmatmul.msk.f32.gmra.mxu0 %vm279_vm1, %v6742_v20  ;;  %v9095_v20 = vld [vmem:[#allocation3_spill] sm:$0xff] }
 0x185   : > { %5872 = vmatmul.msk.f32.gmra.mxu1 %vm279_vm1, %v7198_v28  ;;  %v7211_v36 = vadd.f32 %v1897_v8, %v1701_v15 }
 0x186   : > { %v1066_v41 = vpop.f32.mrf.mxu2 }
 0x187   : > { %v1344_v5 = vpop.f32.mrf.mxu3  ;;  %v1146_v54 = vadd.f32 %v1066_v41, %v821_v49  ;;  %v7258_v49 = vld [vmem:[#allocation2 + $0x172] sm:$0xff]  ;;  %v9101_v41 = vld [vmem:[#allocation9_spill] sm:$0xff] }
 0x189   : > { %v1424_v16 = vadd.f32 %v1344_v5, %v1146_v54  ;;  %v1628_v59 = vpop.f32.mrf.mxu0  ;;  %v9102_v54 = vld [vmem:[#allocation10_spill] sm:$0xff] }
 0x18b   : > { %5770 = vmatmul.msk.f32.gmra.mxu2 %vm279_vm1, %v7170_v47  ;;  %v7220_v58 = vadd.f32 %v1622_v13, %v1424_v16 }
 0x18c   : > { %5804 = vmatmul.msk.f32.gmra.mxu3 %vm279_vm1, %v9095_v20  ;;  %5839 = vmatmul.msk.f32.gmra.mxu0 %vm279_vm1, %v9096_v44 }
 0x18d   : > { %5873 = vmatmul.msk.f32.gmra.mxu1 %vm279_vm1, %v7214_v31 }
 0x18e   : > { %v1069_v11 = vpop.f32.mrf.mxu2 }
 0x18f   : > { %v1347_v35 = vpop.f32.mrf.mxu3  ;;  %v1147_v42 = vadd.f32 %v1069_v11, %v824_v39  ;;  %v7274_v39 = vld [vmem:[#allocation2 + $0x182] sm:$0xff]  ;;  %v9103_v11 = vld [vmem:[#allocation11_spill] sm:$0xff] }
 0x191   : > { %v1425_v60 = vadd.f32 %v1347_v35, %v1147_v42  ;;  %v1631_v1 = vpop.f32.mrf.mxu0 }
 0x193   : > { %5771 = vmatmul.msk.f32.gmra.mxu2 %vm279_vm1, %v7184_v48  ;;  %v7236_v46 = vadd.f32 %v1625_v26, %v1425_v60 }
 0x194   : > { %5805 = vmatmul.msk.f32.gmra.mxu3 %vm279_vm1, %v9097_v30  ;;  %5840 = vmatmul.msk.f32.gmra.mxu0 %vm279_vm1, %v9098_v57 }
 0x195   : > { %5874 = vmatmul.msk.f32.gmra.mxu1 %vm279_vm1, %v7230_v37 }
 0x196   : > { %v1072_v61 = vpop.f32.mrf.mxu2 }
 0x197   : > { %v1350_v29 = vpop.f32.mrf.mxu3  ;;  %v1148_v13 = vadd.f32 %v1072_v61, %v827_v50  ;;  %v7290_v50 = vld [vmem:[#allocation2 + $0x189] sm:$0xff] }
 0x198   : > { %v7292_v61 = vld [vmem:[#allocation2 + $0x18a] sm:$0xff] }
 0x199   : > { %v1426_v2 = vadd.f32 %v1350_v29, %v1148_v13  ;;  %v1634_v7 = vpop.f32.mrf.mxu0 }
 0x19b   : > { %5772 = vmatmul.msk.f32.gmra.mxu2 %vm279_vm1, %v7198_v28  ;;  %v7250_v53 = vadd.f32 %v1628_v59, %v1426_v2 }
 0x19c   : > { %5806 = vmatmul.msk.f32.gmra.mxu3 %vm279_vm1, %v9099_v24  ;;  %5841 = vmatmul.msk.f32.gmra.mxu0 %vm279_vm1, %v9100_v40 }
 0x19d   : > { %5875 = vmatmul.msk.f32.gmra.mxu1 %vm279_vm1, %v7244_v43 }
 0x19e   : > { %v1075_v3 = vpop.f32.mrf.mxu2 }
 0x19f   : > { %v1353_v26 = vpop.f32.mrf.mxu3  ;;  %v1149_v8 = vadd.f32 %v1075_v3, %v830_v56  ;;  %v9104_v3 = vld [vmem:[#allocation14_spill] sm:$0xff] }
 0x1a1   : > { %v1427_v15 = vadd.f32 %v1353_v26, %v1149_v8  ;;  %v1637_v51 = vpop.f32.mrf.mxu0 }
 0x1a3   : > { %5773 = vmatmul.msk.f32.gmra.mxu2 %vm279_vm1, %v7214_v31  ;;  %v7264_v5 = vadd.f32 %v1631_v1, %v1427_v15  ;;  %v7288_v1 = vld [vmem:[#allocation2 + $0x180] sm:$0xff] }
 0x1a4   : > { %5807 = vmatmul.msk.f32.gmra.mxu3 %vm279_vm1, %v9101_v41  ;;  %5842 = vmatmul.msk.f32.gmra.mxu0 %vm279_vm1, %v9102_v54  ;;  %v2283_v41 = vld [vmem:[#allocation2 + $0x31] sm:$0xff] }
 0x1a5   : > { %5876 = vmatmul.msk.f32.gmra.mxu1 %vm279_vm1, %v7258_v49 }
 0x1a6   : > { %v1078_v9 = vpop.f32.mrf.mxu2 }
 0x1a7   : > { %v1356_v16 = vpop.f32.mrf.mxu3  ;;  %v1150_v59 = vadd.f32 %v1078_v9, %v833_v62 }
 0x1a9   : > { %v1428_v20 = vadd.f32 %v1356_v16, %v1150_v59  ;;  %v1640_v44 = vpop.f32.mrf.mxu0  ;;  %v9106_v16 = vld [vmem:[#allocation16_spill] sm:$0xff] }
 0x1aa   : > { %v9107_v59 = vld [vmem:[#allocation12_spill] sm:$0xff] }
 0x1ab   : > { %5774 = vmatmul.msk.f32.gmra.mxu2 %vm279_vm1, %v7230_v37  ;;  %v7280_v35 = vadd.f32 %v1634_v7, %v1428_v20  ;;  %v7306_v7 = vld [vmem:[#allocation2 + $0x188] sm:$0xff]  ;;  %v9108_v20 = vld [vmem:[#allocation13_spill] sm:$0xff] }
 0x1ac   : > { %5808 = vmatmul.msk.f32.gmra.mxu3 %vm279_vm1, %v9103_v11  ;;  %5843 = vmatmul.msk.f32.gmra.mxu0 %vm279_vm1, %v7272_v55 }
 0x1ad   : > { %5877 = vmatmul.msk.f32.gmra.mxu1 %vm279_vm1, %v7274_v39 }
 0x1ae   : > { %v1081_v17 = vpop.f32.mrf.mxu2 }
 0x1af   : > { %v1359_v42 = vpop.f32.mrf.mxu3  ;;  %v1151_v60 = vadd.f32 %v1081_v17, %v836_v4  ;;  %v2006_v17 = vld [vmem:[#allocation2 + $0x38] sm:$0xff] }
 0x1b1   : > { %v1429_v30 = vadd.f32 %v1359_v42, %v1151_v60  ;;  %v1643_v57 = vpop.f32.mrf.mxu0  ;;  %v2284_v42 = vld [vmem:[#allocation2 + $0x39] sm:$0xff] }
 0x1b3   : > { %5775 = vmatmul.msk.f32.gmra.mxu2 %vm279_vm1, %v7244_v43  ;;  %v7298_v29 = vadd.f32 %v1637_v51, %v1429_v30  ;;  %v2005_v51 = vld [vmem:[#allocation2 + $0x30] sm:$0xff] }
 0x1b4   : > { %5809 = vmatmul.msk.f32.gmra.mxu3 %vm279_vm1, %v7288_v1  ;;  %5844 = vmatmul.msk.f32.gmra.mxu0 %vm279_vm1, %v7290_v50 }
 0x1b5   : > { %5878 = vmatmul.msk.f32.gmra.mxu1 %vm279_vm1, %v7292_v61 }
 0x1b6   : > { %v1084_v22 = vpop.f32.mrf.mxu2 }
 0x1b7   : > { %v1362_v13 = vpop.f32.mrf.mxu3  ;;  %v1152_v2 = vadd.f32 %v1084_v22, %v839_v12 }
 0x1b9   : > { %v1430_v24 = vadd.f32 %v1362_v13, %v1152_v2  ;;  %v1646_v40 = vpop.f32.mrf.mxu0  ;;  %v9110_v2 = vld [vmem:[#allocation15_spill] sm:$0xff] }
 0x1bb   : > { %5776 = vmatmul.msk.f32.gmra.mxu2 %vm279_vm1, %v7258_v49  ;;  %v7312_v56 = vadd.f32 %v1640_v44, %v1430_v24  ;;  %v845_v44 = vadd.f32 %v9108_v20, %v9107_v59  ;;  %v2008_v59 = vld [vmem:[#allocation2 + $0x50] sm:$0xff] }
 0x1bc   : > { %5810 = vmatmul.msk.f32.gmra.mxu3 %vm279_vm1, %v7306_v7  ;;  %5949 = vmatmul.msk.f32.vlgmr.msra.gmra.mxu0 %vm279_vm1, %v9104_v3  ;;  %v2007_v3 = vld [vmem:[#allocation2 + $0x48] sm:$0xff]  ;;  %v2286_v20 = vld [vmem:[#allocation2 + $0x51] sm:$0xff] }
 0x1be   : > { %v1087_v26 = vpop.f32.mrf.mxu2 }
 0x1bf   : > { %v1365_v8 = vpop.f32.mrf.mxu3  ;;  %v1153_v15 = vadd.f32 %v1087_v26, %v842_v34 }
 0x1c1   : > { %v1431_v54 = vadd.f32 %v1365_v8, %v1153_v15  ;;  %v1649_v62 = vpop.f32.mrf.mxu0  ;;  %v9111_v15 = vld [vmem:[#allocation20_spill] sm:$0xff] }
 0x1c3   : > { %5881 = vmatmul.msk.f32.vlgmr.msra.gmra.mxu2 %vm279_vm1, %v2005_v51  ;;  %v7320_v9 = vadd.f32 %v1643_v57, %v1431_v54  ;;  %v9109_v57 = vld [vmem:[#allocation18_spill] sm:$0xff]  ;;  %v9112_v54 = vld [vmem:[#allocation17_spill] sm:$0xff] }
 0x1c4   : > { %5915 = vmatmul.msk.f32.vlgmr.msra.gmra.mxu3 %vm279_vm1, %v2283_v41  ;;  %5950 = vmatmul.msk.f32.gmra.mxu0 %vm279_vm1, %v9106_v16  ;;  %v7339_v41 = vpop.f32.mrf.mxu1 }
 0x1c6   : > { %v1090_v25 = vpop.f32.mrf.mxu2 }
 0x1c7   : > { %v1368_v11 = vpop.f32.mrf.mxu3  ;;  %v1154_v4 = vadd.f32 %v1090_v25, %v845_v44 }
 0x1c9   : > { %v1432_v60 = vadd.f32 %v1368_v11, %v1154_v4  ;;  %v1652_v30 = vpop.f32.mrf.mxu0 }
 0x1cb   : > { %5882 = vmatmul.msk.f32.gmra.mxu2 %vm279_vm1, %v2006_v17  ;;  %v7328_v12 = vadd.f32 %v1646_v40, %v1432_v60 }
 0x1cc   : > { %5916 = vmatmul.msk.f32.gmra.mxu3 %vm279_vm1, %v2284_v42  ;;  %5951 = vmatmul.msk.f32.gmra.mxu0 %vm279_vm1, %v9109_v57  ;;  %v9115_v42 = vld [vmem:[#allocation19_spill] sm:$0xff]  ;;  %v2009_v57 = vld [vmem:[#allocation2 + $0x60] sm:$0xff] }
 0x1ce   : > { %v1093_v22 = vpop.f32.mrf.mxu2 }
 0x1cf   : > { %v1371_v13 = vpop.f32.mrf.mxu3  ;;  %v1155_v24 = vadd.f32 %v1093_v22, %v9110_v2  ;;  %v2287_v22 = vld [vmem:[#allocation2 + $0x61] sm:$0xff] }
 0x1d1   : > { %v1433_v34 = vadd.f32 %v1371_v13, %v1155_v24  ;;  %v1655_v26 = vpop.f32.mrf.mxu0  ;;  %v7349_v13 = vpop.f32.mrf.mxu1 }
 0x1d3   : > { %5883 = vmatmul.msk.f32.gmra.mxu2 %vm279_vm1, %v2007_v3  ;;  %v7335_v8 = vadd.f32 %v1649_v62, %v1433_v34  ;;  %v9114_v62 = vld [vmem:[#allocation22_spill] sm:$0xff] }
 0x1d4   : > { %5917 = vmatmul.msk.f32.gmra.mxu3 %vm279_vm1, %v2285_v18  ;;  %5952 = vmatmul.msk.f32.gmra.mxu0 %vm279_vm1, %v9111_v15  ;;  %v9118_v15 = vld [vmem:[#allocation21_spill] sm:$0xff] }
 0x1d6   : > { %v1096_v40 = vpop.f32.mrf.mxu2 }
 0x1d7   : > { %v1374_v51 = vpop.f32.mrf.mxu3  ;;  %v1156_v16 = vadd.f32 %v1096_v40, %v9112_v54  ;;  %v2288_v54 = vld [vmem:[#allocation2 + $0x69] sm:$0xff] }
 0x1d9   : > { %v1434_v44 = vadd.f32 %v1374_v51, %v1156_v16  ;;  %v1658_v25 = vpop.f32.mrf.mxu0  ;;  %v2010_v51 = vld [vmem:[#allocation2 + $0x68] sm:$0xff] }
 0x1db   : > { %5884 = vmatmul.msk.f32.gmra.mxu2 %vm279_vm1, %v2008_v59  ;;  %v7344_v11 = vadd.f32 %v1652_v30, %v1434_v44  ;;  %v9117_v30 = vld [vmem:[#allocation24_spill] sm:$0xff] }
 0x1dc   : > { %5918 = vmatmul.msk.f32.gmra.mxu3 %vm279_vm1, %v2286_v20  ;;  %5953 = vmatmul.msk.f32.gmra.mxu0 %vm279_vm1, %v9114_v62  ;;  %v7358_v20 = vpop.f32.mrf.mxu1 }
 0x1dd   : > { %9113 = vst [vmem:[#allocation3_spill] sm:$0xff] %v7344_v11 }
 0x1de   : > { %v1099_v4 = vpop.f32.mrf.mxu2 }
 0x1df   : > { %v1377_v17 = vpop.f32.mrf.mxu3  ;;  %v1157_v60 = vadd.f32 %v1099_v4, %v9115_v42 }
 0x1e1   : > { %v1435_v2 = vadd.f32 %v1377_v17, %v1157_v60  ;;  %v1661_v24 = vpop.f32.mrf.mxu0  ;;  %v9121_v17 = vld [vmem:[#allocation23_spill] sm:$0xff]  ;;  %v2011_v60 = vld [vmem:[#allocation2 + $0x78] sm:$0xff] }
 0x1e3   : > { %5885 = vmatmul.msk.f32.gmra.mxu2 %vm279_vm1, %v2009_v57  ;;  %v7353_v3 = vadd.f32 %v1655_v26, %v1435_v2  ;;  %v9120_v26 = vld [vmem:[#allocation26_spill] sm:$0xff]  ;;  %v2289_v57 = vld [vmem:[#allocation2 + $0x79] sm:$0xff] }
 0x1e4   : > { %5919 = vmatmul.msk.f32.gmra.mxu3 %vm279_vm1, %v2287_v22  ;;  %5954 = vmatmul.msk.f32.gmra.mxu0 %vm279_vm1, %v9117_v30 }
 0x1e5   : > { %9116 = vst [vmem:[#allocation4_spill] sm:$0xff] %v7353_v3 }
 0x1e6   : > { %v1102_v18 = vpop.f32.mrf.mxu2 }
 0x1e7   : > { %v1380_v34 = vpop.f32.mrf.mxu3  ;;  %v1158_v40 = vadd.f32 %v1102_v18, %v9118_v15  ;;  %v9123_v18 = vld [vmem:[#allocation28_spill] sm:$0xff] }
 0x1e9   : > { %v1436_v16 = vadd.f32 %v1380_v34, %v1158_v40  ;;  %v1664_v59 = vpop.f32.mrf.mxu0  ;;  %v9124_v40 = vld [vmem:[#allocation25_spill] sm:$0xff] }
 0x1eb   : > { %5886 = vmatmul.msk.f32.gmra.mxu2 %vm279_vm1, %v2010_v51  ;;  %v7362_v44 = vadd.f32 %v1658_v25, %v1436_v16  ;;  %v7373_v25 = vpop.f32.mrf.mxu1  ;;  %v2290_v16 = vld [vmem:[#allocation2 + $0x81] sm:$0xff] }
 0x1ec   : > { %5920 = vmatmul.msk.f32.gmra.mxu3 %vm279_vm1, %v2288_v54  ;;  %5955 = vmatmul.msk.f32.gmra.mxu0 %vm279_vm1, %v9120_v26  ;;  %v2012_v54 = vld [vmem:[#allocation2 + $0x80] sm:$0xff] }
 0x1ed   : > { %9119 = vst [vmem:[#allocation5_spill] sm:$0xff] %v7362_v44 }
 0x1ee   : > { %v1105_v62 = vpop.f32.mrf.mxu2 }
 0x1ef   : > { %v1383_v4 = vpop.f32.mrf.mxu3  ;;  %v1159_v42 = vadd.f32 %v1105_v62, %v9121_v17 }
 0x1f1   : > { %v1437_v22 = vadd.f32 %v1383_v4, %v1159_v42  ;;  %v1667_v2 = vpop.f32.mrf.mxu0 }
 0x1f3   : > { %5887 = vmatmul.msk.f32.gmra.mxu2 %vm279_vm1, %v2011_v60  ;;  %v7369_v30 = vadd.f32 %v1661_v24, %v1437_v22  ;;  %v9126_v24 = vld [vmem:[#allocation30_spill] sm:$0xff]  ;;  %v7382_v60 = vpop.f32.mrf.mxu1 }
 0x1f4   : > { %5921 = vmatmul.msk.f32.gmra.mxu3 %vm279_vm1, %v2289_v57  ;;  %5956 = vmatmul.msk.f32.gmra.mxu0 %vm279_vm1, %v9123_v18  ;;  %v9127_v57 = vld [vmem:[#allocation27_spill] sm:$0xff] }
 0x1f5   : > { %9122 = vst [vmem:[#allocation6_spill] sm:$0xff] %v7369_v30  ;;  %v2013_v18 = vld [vmem:[#allocation2 + $0x90] sm:$0xff]  ;;  %v2292_v30 = vld [vmem:[#allocation2 + $0x99] sm:$0xff] }
 0x1f6   : > { %v1108_v34 = vpop.f32.mrf.mxu2 }
 0x1f7   : > { %v1386_v15 = vpop.f32.mrf.mxu3  ;;  %v1160_v51 = vadd.f32 %v1108_v34, %v9124_v40  ;;  %v2291_v34 = vld [vmem:[#allocation2 + $0x91] sm:$0xff] }
 0x1f9   : > { %v1438_v26 = vadd.f32 %v1386_v15, %v1160_v51  ;;  %v1670_v62 = vpop.f32.mrf.mxu0 }
 0x1fb   : > { %5888 = vmatmul.msk.f32.gmra.mxu2 %vm279_vm1, %v2012_v54  ;;  %v7378_v4 = vadd.f32 %v1664_v59, %v1438_v26  ;;  %v9129_v59 = vld [vmem:[#allocation32_spill] sm:$0xff]  ;;  %v9130_v26 = vld [vmem:[#allocation29_spill] sm:$0xff] }
 0x1fc   : > { %5922 = vmatmul.msk.f32.gmra.mxu3 %vm279_vm1, %v2290_v16  ;;  %5957 = vmatmul.msk.f32.gmra.mxu0 %vm279_vm1, %v9126_v24 }
 0x1fd   : > { %9125 = vst [vmem:[#allocation7_spill] sm:$0xff] %v7378_v4  ;;  %v2014_v4 = vld [vmem:[#allocation2 + $0x98] sm:$0xff] }
 0x1fe   : > { %v1111_v17 = vpop.f32.mrf.mxu2 }
 0x1ff   : > { %v1389_v42 = vpop.f32.mrf.mxu3  ;;  %v1161_v22 = vadd.f32 %v1111_v17, %v9127_v57  ;;  %v7392_v17 = vpop.f32.mrf.mxu1 }
 0x201   : > { %v1439_v40 = vadd.f32 %v1389_v42, %v1161_v22  ;;  %v1673_v15 = vpop.f32.mrf.mxu0 }
 0x203   : > { %5889 = vmatmul.msk.f32.gmra.mxu2 %vm279_vm1, %v2013_v18  ;;  %v7387_v51 = vadd.f32 %v1667_v2, %v1439_v40  ;;  %v9132_v2 = vld [vmem:[#allocation34_spill] sm:$0xff]  ;;  %v9133_v40 = vld [vmem:[#allocation31_spill] sm:$0xff] }
 0x204   : > { %5923 = vmatmul.msk.f32.gmra.mxu3 %vm279_vm1, %v2291_v34  ;;  %5958 = vmatmul.msk.f32.gmra.mxu0 %vm279_vm1, %v9129_v59 }
 0x205   : > { %9128 = vst [vmem:[#allocation8_spill] sm:$0xff] %v7387_v51 }
 0x206   : > { %v1114_v54 = vpop.f32.mrf.mxu2 }
 0x207   : > { %v1392_v16 = vpop.f32.mrf.mxu3  ;;  %v1162_v24 = vadd.f32 %v1114_v54, %v9130_v26  ;;  %v2015_v54 = vld [vmem:[#allocation2 + $0xa8] sm:$0xff]  ;;  %v7401_v3 = vpop.f32.mrf.mxu1 }
 0x208   : > { %v2293_v26 = vld [vmem:[#allocation2 + $0xa9] sm:$0xff] }
 0x209   : > { %v1440_v57 = vadd.f32 %v1392_v16, %v1162_v24  ;;  %v1676_v42 = vpop.f32.mrf.mxu0  ;;  %v9136_v24 = vld [vmem:[#allocation33_spill] sm:$0xff] }
 0x20b   : > { %5890 = vmatmul.msk.f32.gmra.mxu2 %vm279_vm1, %v2014_v4  ;;  %v7396_v22 = vadd.f32 %v1670_v62, %v1440_v57  ;;  %v9135_v62 = vld [vmem:[#allocation36_spill] sm:$0xff] }
 0x20c   : > { %5924 = vmatmul.msk.f32.gmra.mxu3 %vm279_vm1, %v2292_v30  ;;  %5959 = vmatmul.msk.f32.gmra.mxu0 %vm279_vm1, %v9132_v2  ;;  %v2016_v2 = vld [vmem:[#allocation2 + $0xb0] sm:$0xff] }
 0x20d   : > { %9131 = vst [vmem:[#allocation9_spill] sm:$0xff] %v7396_v22 }
 0x20e   : > { %v1117_v18 = vpop.f32.mrf.mxu2 }
 0x20f   : > { %v1395_v34 = vpop.f32.mrf.mxu3  ;;  %v1163_v59 = vadd.f32 %v1117_v18, %v9133_v40  ;;  %v2294_v18 = vld [vmem:[#allocation2 + $0xb1] sm:$0xff] }
 0x211   : > { %v1441_v51 = vadd.f32 %v1395_v34, %v1163_v59  ;;  %v1679_v44 = vpop.f32.mrf.mxu0 }
 0x213   : > { %5891 = vmatmul.msk.f32.gmra.mxu2 %vm279_vm1, %v2015_v54  ;;  %v7405_v30 = vadd.f32 %v1673_v15, %v1441_v51  ;;  %v9138_v54 = vld [vmem:[#allocation38_spill] sm:$0xff]  ;;  %v7416_v15 = vpop.f32.mrf.mxu1 }
 0x214   : > { %5925 = vmatmul.msk.f32.gmra.mxu3 %vm279_vm1, %v2293_v26  ;;  %5960 = vmatmul.msk.f32.gmra.mxu0 %vm279_vm1, %v9135_v62  ;;  %v9139_v62 = vld [vmem:[#allocation35_spill] sm:$0xff] }
 0x215   : > { %9134 = vst [vmem:[#allocation10_spill] sm:$0xff] %v7405_v30 }
 0x216   : > { %v1120_v4 = vpop.f32.mrf.mxu2 }
 0x217   : > { %v1398_v16 = vpop.f32.mrf.mxu3  ;;  %v1164_v57 = vadd.f32 %v1120_v4, %v9136_v24  ;;  %v2017_v4 = vld [vmem:[#allocation2 + $0xc0] sm:$0xff] }
 0x218   : > { %v2295_v24 = vld [vmem:[#allocation2 + $0xc1] sm:$0xff] }
 0x219   : > { %v1442_v40 = vadd.f32 %v1398_v16, %v1164_v57  ;;  %v1682_v34 = vpop.f32.mrf.mxu0  ;;  %v3007_v57 = vld [vmem:[%s8982_s4] sm:$0xf] }
 0x21a   : > { %6015 = vmatpush.msk.msrb.mxu2 %vm563_vm0, %v3007_v57 }
 0x21b   : > { %5892 = vmatmul.msk.f32.gmra.mxu2 %vm279_vm1, %v2016_v2  ;;  %v7412_v59 = vadd.f32 %v1676_v42, %v1442_v40  ;;  %v6048_v42 = vld [vmem:[%s8982_s4 + $0x8] sm:$0xf] }
 0x21c   : > { %5926 = vmatmul.msk.f32.gmra.mxu3 %vm279_vm1, %v2294_v18  ;;  %5961 = vmatmul.msk.f32.gmra.mxu0 %vm279_vm1, %v9138_v54  ;;  %v7433_v54 = vpop.f32.mrf.mxu1 }
 0x21d   : > { %9137 = vst [vmem:[#allocation11_spill] sm:$0xff] %v7412_v59  ;;  %6049 = vmatpush.msk.msrb.mxu3 %vm563_vm0, %v6048_v42  ;;  %v2296_v59 = vld [vmem:[#allocation2 + $0xc9] sm:$0xff]  ;;  %v3008_v42 = vld [vmem:[#allocation2 + $0x1] sm:$0xff] }
 0x21e   : > { %v1123_v51 = vpop.f32.mrf.mxu2  ;;  %5983 = vmatmul.msk.f32.vlgmr.msra.gmra.mxu1 %vm279_vm1, %v3008_v42  ;;  %v9145_v42 = vld [vmem:[#allocation42_spill] sm:$0xff] }
 0x21f   : > { %v1401_v26 = vpop.f32.mrf.mxu3  ;;  %v1165_v30 = vadd.f32 %v1123_v51, %v9139_v62  ;;  %v9142_v51 = vld [vmem:[#allocation37_spill] sm:$0xff]  ;;  %v2018_v62 = vld [vmem:[#allocation2 + $0xc8] sm:$0xff] }
 0x221   : > { %v1443_v22 = vadd.f32 %v1401_v26, %v1165_v30  ;;  %v1685_v16 = vpop.f32.mrf.mxu0  ;;  %v9141_v30 = vld [vmem:[#allocation40_spill] sm:$0xff] }
 0x223   : > { %5893 = vmatmul.msk.f32.gmra.mxu2 %vm279_vm1, %v2017_v4  ;;  %v7429_v2 = vadd.f32 %v1679_v44, %v1443_v22 }
 0x224   : > { %5927 = vmatmul.msk.f32.gmra.mxu3 %vm279_vm1, %v2295_v24  ;;  %5962 = vmatmul.msk.f32.gmra.mxu0 %vm279_vm1, %v9141_v30  ;;  %v9143_v24 = vld [vmem:[#allocation39_spill] sm:$0xff] }
 0x225   : > { %9140 = vst [vmem:[#allocation14_spill] sm:$0xff] %v7429_v2 }
 0x226   : > { %v1126_v18 = vpop.f32.mrf.mxu2 }
 0x227   : > { %v1404_v40 = vpop.f32.mrf.mxu3  ;;  %v1166_v26 = vadd.f32 %v1126_v18, %v9142_v51  ;;  %v2019_v18 = vld [vmem:[#allocation2 + $0xd8] sm:$0xff] }
 0x228   : > { %v2297_v51 = vld [vmem:[#allocation2 + $0xd9] sm:$0xff] }
 0x229   : > { %v1444_v57 = vadd.f32 %v1404_v40, %v1166_v26  ;;  %v1688_v11 = vpop.f32.mrf.mxu0  ;;  %v7444_v40 = vpop.f32.mrf.mxu1 }
 0x22b   : > { %5894 = vmatmul.msk.f32.gmra.mxu2 %vm279_vm1, %v2018_v62  ;;  %v7438_v44 = vadd.f32 %v1682_v34, %v1444_v57  ;;  %v3009_v62 = vld [vmem:[#allocation2 + $0x9] sm:$0xff] }
 0x22c   : > { %5928 = vmatmul.msk.f32.gmra.mxu3 %vm279_vm1, %v2296_v59  ;;  %5963 = vmatmul.msk.f32.gmra.mxu0 %vm279_vm1, %v7076_v52  ;;  %v6082_v52 = vld [vmem:[%s8982_s4 + $0xc] sm:$0xf]  ;;  %v6116_v59 = vld [vmem:[%s8982_s4 + $0x10] sm:$0xf] }
 0x22d   : > { %6117 = vmatpush.msk.msrb.mxu1 %vm563_vm0, %v6116_v59  ;;  %6083 = vmatpush.msk.msrb.mxu0 %vm563_vm0, %v6082_v52  ;;  %v9146_v52 = vld [vmem:[#allocation43_spill] sm:$0xff] }
 0x22e   : > { %v1129_v22 = vpop.f32.mrf.mxu2  ;;  %5984 = vmatmul.msk.f32.gmra.mxu1 %vm279_vm1, %v3009_v62 }
 0x22f   : > { %v1407_v4 = vpop.f32.mrf.mxu3  ;;  %v1167_v30 = vadd.f32 %v1129_v22, %v9143_v24  ;;  %v2298_v24 = vld [vmem:[#allocation2 + $0xe1] sm:$0xff] }
 0x231   : > { %v1445_v26 = vadd.f32 %v1407_v4, %v1167_v30  ;;  %v1691_v2 = vpop.f32.mrf.mxu0  ;;  %v2020_v4 = vld [vmem:[#allocation2 + $0xe0] sm:$0xff] }
 0x233   : > { %5895 = vmatmul.msk.f32.gmra.mxu2 %vm279_vm1, %v2019_v18  ;;  %v7448_v34 = vadd.f32 %v1685_v16, %v1445_v26 }
 0x234   : > { %5929 = vmatmul.msk.f32.gmra.mxu3 %vm279_vm1, %v2297_v51  ;;  %5964 = vmatmul.msk.f32.gmra.mxu0 %vm279_vm1, %v7088_v6  ;;  %v7462_v51 = vpop.f32.mrf.mxu1 }
 0x235   : > { %9144 = vst [vmem:[#allocation41_spill] sm:$0xff] %v7448_v34 }
 0x236   : > { %v1132_v57 = vpop.f32.mrf.mxu2 }
 0x237   : > { %v1410_v16 = vpop.f32.mrf.mxu3  ;;  %v1168_v22 = vadd.f32 %v1132_v57, %v9145_v42  ;;  %v2021_v57 = vld [vmem:[#allocation2 + $0xf0] sm:$0xff] }
 0x238   : > { %v2299_v42 = vld [vmem:[#allocation2 + $0xf1] sm:$0xff] }
 0x239   : > { %v1446_v30 = vadd.f32 %v1410_v16, %v1168_v22  ;;  %v2711_v18 = vpop.f32.mrf.mxu0 }
 0x23b   : > { %5896 = vmatmul.msk.f32.gmra.mxu2 %vm279_vm1, %v2020_v4  ;;  %v7466_v6 = vadd.f32 %v1688_v11, %v1446_v30  ;;  %v2022_v30 = vld [vmem:[#allocation2 + $0xf8] sm:$0xff] }
 0x23c   : > { %5930 = vmatmul.msk.f32.gmra.mxu3 %vm279_vm1, %v2298_v24  ;;  %5965 = vmatmul.msk.f32.gmra.mxu0 %vm279_vm1, %v7100_v10  ;;  %v7477_v11 = vpop.f32.mrf.mxu1 }
 0x23e   : > { %v1135_v26 = vpop.f32.mrf.mxu2 }
 0x23f   : > { %v1413_v62 = vpop.f32.mrf.mxu3  ;;  %v1169_v59 = vadd.f32 %v1135_v26, %v9146_v52  ;;  %v2300_v26 = vld [vmem:[#allocation2 + $0xf9] sm:$0xff] }
 0x241   : > { %v1447_v34 = vadd.f32 %v1413_v62, %v1169_v59  ;;  %v2714_v16 = vpop.f32.mrf.mxu0  ;;  %v7483_v62 = vld [vmem:[%s8980_s2] ss:$0 sm:$0xff] }
 0x243   : > { %5897 = vmatmul.msk.f32.gmra.mxu2 %vm279_vm1, %v2021_v57  ;;  %v7473_v22 = vadd.f32 %v1691_v2, %v1447_v34 }
 0x244   : > { %5931 = vmatmul.msk.f32.gmra.mxu3 %vm279_vm1, %v2299_v42  ;;  %5966 = vmatmul.msk.f32.gmra.mxu0 %vm279_vm1, %v7114_v0  ;;  %v7488_v0 = vld [vmem:[%s8981_s3] ss:$0 sm:$0xff]  ;;  %v7495_v42 = vpop.f32.mrf.mxu1 }
 0x245   : > { %9147 = vst [vmem:[#allocation16_spill] sm:$0xff] %v7473_v22 }
 0x246   : > { %v2155_v10 = vpop.f32.mrf.mxu2 }
 0x247   : > { %v2433_v4 = vpop.f32.mrf.mxu3  ;;  %v2251_v24 = vadd.f32 %v2155_v10, %v7112_v14 }
 0x249   : > { %v2529_v52 = vadd.f32 %v2433_v4, %v2251_v24  ;;  %v2717_v59 = vpop.f32.mrf.mxu0  ;;  %v2023_v4 = vld [vmem:[#allocation2 + $0x108] sm:$0xff] }
 0x24a   : > { %v2301_v24 = vld [vmem:[#allocation2 + $0x109] sm:$0xff] }
 0x24b   : > { %v2807_v2 = vadd.f32 %v2711_v18, %v2529_v52  ;;  %5898 = vmatmul.msk.f32.gmra.mxu2 %vm279_vm1, %v2022_v30 }
 0x24c   : > { %5932 = vmatmul.msk.f32.gmra.mxu3 %vm279_vm1, %v2300_v26  ;;  %5967 = vmatmul.msk.f32.gmra.mxu0 %vm279_vm1, %v7128_v19 }
 0x24d   : > { %v2843_v14 = vmul.f32 %v7483_v62, %v2807_v2 }
 0x24e   : > { %v2158_v34 = vpop.f32.mrf.mxu2 }
 0x24f   : > { %v2436_v57 = vpop.f32.mrf.mxu3  ;;  %v2879_v18 = vadd.f32 %v7488_v0, %v2843_v14  ;;  %v2252_v10 = vadd.f32 %v2158_v34, %v7126_v21 }
 0x251   : > { %v2911_v52 = vmax.f32 %v2879_v18, 0.0  ;;  %v2530_v22 = vadd.f32 %v2436_v57, %v2252_v10  ;;  %v2720_v30 = vpop.f32.mrf.mxu0  ;;  %v2024_v57 = vld [vmem:[#allocation2 + $0x110] sm:$0xff]  ;;  %v7507_v10 = vpop.f32.mrf.mxu1 }
 0x252   : > { %v2302_v18 = vld [vmem:[#allocation2 + $0x111] sm:$0xff] }
 0x253   : > { %2943 = vst.msk [vmem:[#allocation2 + $0x19] sm:$0xff] %vm279_vm1, %v2911_v52  ;;  %v2808_v26 = vadd.f32 %v2714_v16, %v2530_v22  ;;  %5899 = vmatmul.msk.f32.gmra.mxu2 %vm279_vm1, %v2023_v4 }
 0x254   : > { %5933 = vmatmul.msk.f32.gmra.mxu3 %vm279_vm1, %v2301_v24  ;;  %5968 = vmatmul.msk.f32.gmra.mxu0 %vm279_vm1, %v7142_v23 }
 0x255   : > { %v2844_v19 = vmul.f32 %v7483_v62, %v2808_v26 }
 0x256   : > { %v2161_v2 = vpop.f32.mrf.mxu2 }
 0x257   : > { %v2439_v14 = vpop.f32.mrf.mxu3  ;;  %v2880_v21 = vadd.f32 %v7488_v0, %v2844_v19  ;;  %v2253_v34 = vadd.f32 %v2161_v2, %v7140_v33 }
 0x259   : > { %v2912_v16 = vmax.f32 %v2880_v21, 0.0  ;;  %v2531_v22 = vadd.f32 %v2439_v14, %v2253_v34  ;;  %v2723_v4 = vpop.f32.mrf.mxu0  ;;  %v2025_v14 = vld [vmem:[#allocation2 + $0x120] sm:$0xff] }
 0x25a   : > { %v3010_v52 = vld [vmem:[#allocation2 + $0x19] sm:$0xff]  ;;  %v2303_v21 = vld [vmem:[#allocation2 + $0x121] sm:$0xff] }
 0x25b   : > { %2944 = vst.msk [vmem:[#allocation2 + $0x21] sm:$0xff] %vm279_vm1, %v2912_v16  ;;  %v2809_v24 = vadd.f32 %v2717_v59, %v2531_v22  ;;  %5900 = vmatmul.msk.f32.gmra.mxu2 %vm279_vm1, %v2024_v57  ;;  %5985 = vmatmul.msk.f32.gmra.mxu1 %vm279_vm1, %v3010_v52 }
 0x25c   : > { %5934 = vmatmul.msk.f32.gmra.mxu3 %vm279_vm1, %v2302_v18  ;;  %5969 = vmatmul.msk.f32.gmra.mxu0 %vm279_vm1, %v7156_v63  ;;  %v7518_v18 = vpop.f32.mrf.mxu1 }
 0x25d   : > { %v2845_v33 = vmul.f32 %v7483_v62, %v2809_v24 }
 0x25e   : > { %v2164_v23 = vpop.f32.mrf.mxu2 }
 0x25f   : > { %v2442_v26 = vpop.f32.mrf.mxu3  ;;  %v2881_v19 = vadd.f32 %v7488_v0, %v2845_v33  ;;  %v2254_v2 = vadd.f32 %v2164_v23, %v7154_v45  ;;  %v2026_v23 = vld [vmem:[#allocation2 + $0x128] sm:$0xff] }
 0x261   : > { %v2913_v59 = vmax.f32 %v2881_v19, 0.0  ;;  %v2532_v34 = vadd.f32 %v2442_v26, %v2254_v2  ;;  %v2726_v57 = vpop.f32.mrf.mxu0  ;;  %v2304_v26 = vld [vmem:[#allocation2 + $0x129] sm:$0xff] }
 0x262   : > { %v3011_v16 = vld [vmem:[#allocation2 + $0x21] sm:$0xff] }
 0x263   : > { %2945 = vst.msk [vmem:[#allocation2 + $0x31] sm:$0xff] %vm279_vm1, %v2913_v59  ;;  %v2810_v22 = vadd.f32 %v2720_v30, %v2532_v34  ;;  %5901 = vmatmul.msk.f32.gmra.mxu2 %vm279_vm1, %v2025_v14  ;;  %5986 = vmatmul.msk.f32.gmra.mxu1 %vm279_vm1, %v3011_v16 }
 0x264   : > { %5935 = vmatmul.msk.f32.gmra.mxu3 %vm279_vm1, %v2303_v21  ;;  %5970 = vmatmul.msk.f32.gmra.mxu0 %vm279_vm1, %v7170_v47  ;;  %v7535_v47 = vpop.f32.mrf.mxu1 }
 0x265   : > { %v2846_v45 = vmul.f32 %v7483_v62, %v2810_v22 }
 0x266   : > { %v2167_v63 = vpop.f32.mrf.mxu2 }
 0x267   : > { %v2445_v52 = vpop.f32.mrf.mxu3  ;;  %v2882_v24 = vadd.f32 %v7488_v0, %v2846_v45  ;;  %v2255_v33 = vadd.f32 %v2167_v63, %v7168_v27  ;;  %v2305_v45 = vld [vmem:[#allocation2 + $0x139] sm:$0xff] }
 0x269   : > { %v2914_v30 = vmax.f32 %v2882_v24, 0.0  ;;  %v2533_v19 = vadd.f32 %v2445_v52, %v2255_v33  ;;  %v2729_v2 = vpop.f32.mrf.mxu0 }
 0x26a   : > { %v3012_v14 = vld [vmem:[#allocation2 + $0x31] sm:$0xff] }
 0x26b   : > { %2946 = vst.msk [vmem:[#allocation2 + $0x39] sm:$0xff] %vm279_vm1, %v2914_v30  ;;  %v2811_v21 = vadd.f32 %v2723_v4, %v2533_v19  ;;  %5902 = vmatmul.msk.f32.gmra.mxu2 %vm279_vm1, %v2026_v23  ;;  %5987 = vmatmul.msk.f32.gmra.mxu1 %vm279_vm1, %v3012_v14  ;;  %v2027_v4 = vld [vmem:[#allocation2 + $0x138] sm:$0xff] }
 0x26c   : > { %5936 = vmatmul.msk.f32.gmra.mxu3 %vm279_vm1, %v2304_v26  ;;  %5971 = vmatmul.msk.f32.gmra.mxu0 %vm279_vm1, %v7184_v48  ;;  %v7547_v30 = vpop.f32.mrf.mxu1 }
 0x26d   : > { %v2847_v27 = vmul.f32 %v7483_v62, %v2811_v21  ;;  %v2306_v21 = vld [vmem:[#allocation2 + $0x141] sm:$0xff] }
 0x26e   : > { %v2170_v59 = vpop.f32.mrf.mxu2 }
 0x26f   : > { %v2448_v34 = vpop.f32.mrf.mxu3  ;;  %v2883_v16 = vadd.f32 %v7488_v0, %v2847_v27  ;;  %v2256_v22 = vadd.f32 %v2170_v59, %v7182_v32 }
 0x271   : > { %v2915_v63 = vmax.f32 %v2883_v16, 0.0  ;;  %v2534_v52 = vadd.f32 %v2448_v34, %v2256_v22  ;;  %v2732_v24 = vpop.f32.mrf.mxu0 }
 0x272   : > { %v3013_v33 = vld [vmem:[#allocation2 + $0x39] sm:$0xff] }
 0x273   : > { %2947 = vst.msk [vmem:[#allocation2 + $0x49] sm:$0xff] %vm279_vm1, %v2915_v63  ;;  %v2812_v23 = vadd.f32 %v2726_v57, %v2534_v52  ;;  %5903 = vmatmul.msk.f32.gmra.mxu2 %vm279_vm1, %v2027_v4  ;;  %5988 = vmatmul.msk.f32.gmra.mxu1 %vm279_vm1, %v3013_v33  ;;  %v2028_v57 = vld [vmem:[#allocation2 + $0x140] sm:$0xff]  ;;  %v2029_v52 = vld [vmem:[#allocation2 + $0x150] sm:$0xff] }
 0x274   : > { %5937 = vmatmul.msk.f32.gmra.mxu3 %vm279_vm1, %v2305_v45  ;;  %5972 = vmatmul.msk.f32.gmra.mxu0 %vm279_vm1, %v7198_v28  ;;  %v2307_v33 = vld [vmem:[#allocation2 + $0x151] sm:$0xff] }
 0x275   : > { %v2848_v32 = vmul.f32 %v7483_v62, %v2812_v23 }
 0x276   : > { %v2173_v48 = vpop.f32.mrf.mxu2 }
 0x277   : > { %v2451_v26 = vpop.f32.mrf.mxu3  ;;  %v2884_v19 = vadd.f32 %v7488_v0, %v2848_v32  ;;  %v2257_v14 = vadd.f32 %v2173_v48, %v7196_v38 }
 0x279   : > { %v2916_v27 = vmax.f32 %v2884_v19, 0.0  ;;  %v2535_v59 = vadd.f32 %v2451_v26, %v2257_v14  ;;  %v2735_v34 = vpop.f32.mrf.mxu0 }
 0x27a   : > { %v3014_v16 = vld [vmem:[#allocation2 + $0x49] sm:$0xff] }
 0x27b   : > { %2948 = vst.msk [vmem:[#allocation2 + $0x51] sm:$0xff] %vm279_vm1, %v2916_v27  ;;  %v2813_v22 = vadd.f32 %v2729_v2, %v2535_v59  ;;  %5904 = vmatmul.msk.f32.gmra.mxu2 %vm279_vm1, %v2028_v57  ;;  %5989 = vmatmul.msk.f32.gmra.mxu1 %vm279_vm1, %v3014_v16  ;;  %v7560_v2 = vpop.f32.mrf.mxu1  ;;  %v2308_v59 = vld [vmem:[#allocation2 + $0x159] sm:$0xff] }
 0x27c   : > { %5938 = vmatmul.msk.f32.gmra.mxu3 %vm279_vm1, %v2306_v21  ;;  %5973 = vmatmul.msk.f32.gmra.mxu0 %vm279_vm1, %v7214_v31 }
 0x27d   : > { %v2849_v38 = vmul.f32 %v7483_v62, %v2813_v22 }
 0x27e   : > { %v2176_v28 = vpop.f32.mrf.mxu2 }
 0x27f   : > { %v2454_v4 = vpop.f32.mrf.mxu3  ;;  %v2885_v45 = vadd.f32 %v7488_v0, %v2849_v38  ;;  %v2258_v63 = vadd.f32 %v2176_v28, %v7211_v36  ;;  %v1980_v36 = vadd.f32 %v7339_v41, %v7220_v58  ;;  %v1981_v58 = vadd.f32 %v7349_v13, %v7236_v46 }
 0x280   : > { %v1982_v46 = vadd.f32 %v7358_v20, %v7250_v53  ;;  %v1983_v53 = vadd.f32 %v7373_v25, %v7264_v5  ;;  %v1984_v5 = vadd.f32 %v7382_v60, %v7280_v35  ;;  %v1985_v35 = vadd.f32 %v7392_v17, %v7298_v29 }
 0x281   : > { %v2917_v23 = vmax.f32 %v2885_v45, 0.0  ;;  %v2536_v32 = vadd.f32 %v2454_v4, %v2258_v63  ;;  %v2738_v48 = vpop.f32.mrf.mxu0  ;;  %v1986_v29 = vadd.f32 %v7401_v3, %v7312_v56  ;;  %v3744_v56 = vld [vmem:[#allocation2 + $0x18] sm:$0xff]  ;;  %v1987_v3 = vadd.f32 %v7416_v15, %v7320_v9  ;;  %v3745_v9 = vld [vmem:[#allocation2 + $0x20] sm:$0xff] }
 0x282   : > { %v3015_v26 = vld [vmem:[#allocation2 + $0x51] sm:$0xff]  ;;  %v1988_v15 = vadd.f32 %v7433_v54, %v7328_v12  ;;  %v1989_v54 = vadd.f32 %v7444_v40, %v7335_v8 }
 0x283   : > { %2949 = vst.msk [vmem:[#allocation2 + $0x61] sm:$0xff] %vm279_vm1, %v2917_v23  ;;  %v2814_v19 = vadd.f32 %v2732_v24, %v2536_v32  ;;  %5905 = vmatmul.msk.f32.gmra.mxu2 %vm279_vm1, %v2029_v52  ;;  %5990 = vmatmul.msk.f32.gmra.mxu1 %vm279_vm1, %v3015_v26  ;;  %v2030_v24 = vld [vmem:[#allocation2 + $0x158] sm:$0xff]  ;;  %v7572_v4 = vpop.f32.mrf.mxu1  ;;  %v2309_v23 = vld [vmem:[#allocation2 + $0x169] sm:$0xff] }
 0x284   : > { %5939 = vmatmul.msk.f32.gmra.mxu3 %vm279_vm1, %v2307_v33  ;;  %5974 = vmatmul.msk.f32.gmra.mxu0 %vm279_vm1, %v7230_v37  ;;  %v3746_v12 = vld [vmem:[#allocation2 + $0x30] sm:$0xff]  ;;  %v7688_v8 = vld [vmem:[#allocation2 + $0x38] sm:$0xff] }
 0x285   : > { %v2850_v31 = vmul.f32 %v7483_v62, %v2814_v19  ;;  %v9148_v40 = vld [vmem:[#allocation3_spill] sm:$0xff] }
 0x286   : > { %v2179_v14 = vpop.f32.mrf.mxu2 }
 0x287   : > { %v2457_v57 = vpop.f32.mrf.mxu3  ;;  %v2886_v21 = vadd.f32 %v7488_v0, %v2850_v31  ;;  %v2259_v27 = vadd.f32 %v2179_v14, %v1980_v36 }
 0x289   : > { %v2918_v16 = vmax.f32 %v2886_v21, 0.0  ;;  %v2537_v22 = vadd.f32 %v2457_v57, %v2259_v27  ;;  %v2741_v38 = vpop.f32.mrf.mxu0  ;;  %v2032_v27 = vld [vmem:[#allocation2 + $0x170] sm:$0xff] }
 0x28a   : > { %v3016_v28 = vld [vmem:[#allocation2 + $0x61] sm:$0xff] }
 0x28b   : > { %2950 = vst.msk [vmem:[#allocation2 + $0x69] sm:$0xff] %vm279_vm1, %v2918_v16  ;;  %v2815_v37 = vadd.f32 %v2735_v34, %v2537_v22  ;;  %5906 = vmatmul.msk.f32.gmra.mxu2 %vm279_vm1, %v2030_v24  ;;  %5991 = vmatmul.msk.f32.gmra.mxu1 %vm279_vm1, %v3016_v28  ;;  %v2031_v34 = vld [vmem:[#allocation2 + $0x168] sm:$0xff]  ;;  %v2310_v24 = vld [vmem:[#allocation2 + $0x171] sm:$0xff] }
 0x28c   : > { %5940 = vmatmul.msk.f32.gmra.mxu3 %vm279_vm1, %v2308_v59  ;;  %5975 = vmatmul.msk.f32.gmra.mxu0 %vm279_vm1, %v7244_v43  ;;  %v7592_v43 = vpop.f32.mrf.mxu1 }
 0x28d   : > { %v2851_v41 = vmul.f32 %v7483_v62, %v2815_v37 }
 0x28e   : > { %v2182_v45 = vpop.f32.mrf.mxu2 }
 0x28f   : > { %v2460_v63 = vpop.f32.mrf.mxu3  ;;  %v2887_v52 = vadd.f32 %v7488_v0, %v2851_v41  ;;  %v2260_v33 = vadd.f32 %v2182_v45, %v1981_v58 }
 0x291   : > { %v2919_v32 = vmax.f32 %v2887_v52, 0.0  ;;  %v2538_v26 = vadd.f32 %v2460_v63, %v2260_v33  ;;  %v2744_v19 = vpop.f32.mrf.mxu0 }
 0x292   : > { %v3017_v36 = vld [vmem:[#allocation2 + $0x69] sm:$0xff] }
 0x293   : > { %2951 = vst.msk [vmem:[#allocation2 + $0x79] sm:$0xff] %vm279_vm1, %v2919_v32  ;;  %v2816_v31 = vadd.f32 %v2738_v48, %v2538_v26  ;;  %5907 = vmatmul.msk.f32.gmra.mxu2 %vm279_vm1, %v2031_v34  ;;  %5992 = vmatmul.msk.f32.gmra.mxu1 %vm279_vm1, %v3017_v36 }
 0x294   : > { %5941 = vmatmul.msk.f32.gmra.mxu3 %vm279_vm1, %v2309_v23  ;;  %5976 = vmatmul.msk.f32.gmra.mxu0 %vm279_vm1, %v7258_v49  ;;  %v7605_v41 = vpop.f32.mrf.mxu1 }
 0x295   : > { %v2852_v13 = vmul.f32 %v7483_v62, %v2816_v31 }
 0x296   : > { %v2185_v14 = vpop.f32.mrf.mxu2 }
 0x297   : > { %v2463_v57 = vpop.f32.mrf.mxu3  ;;  %v2888_v48 = vadd.f32 %v7488_v0, %v2852_v13  ;;  %v2261_v21 = vadd.f32 %v2185_v14, %v1982_v46  ;;  %v2591_v46 = vld [vmem:[#allocation2 + $0x19a] sm:$0xff] }
 0x299   : > { %v2920_v59 = vmax.f32 %v2888_v48, 0.0  ;;  %v2539_v16 = vadd.f32 %v2463_v57, %v2261_v21  ;;  %v2747_v22 = vpop.f32.mrf.mxu0 }
 0x29a   : > { %v3018_v28 = vld [vmem:[#allocation2 + $0x79] sm:$0xff] }
 0x29b   : > { %2952 = vst.msk [vmem:[#allocation2 + $0x81] sm:$0xff] %vm279_vm1, %v2920_v59  ;;  %v2817_v49 = vadd.f32 %v2741_v38, %v2539_v16  ;;  %5908 = vmatmul.msk.f32.gmra.mxu2 %vm279_vm1, %v2032_v27  ;;  %5993 = vmatmul.msk.f32.gmra.mxu1 %vm279_vm1, %v3018_v28  ;;  %v2035_v27 = vld [vmem:[#allocation2 + $0x198] sm:$0xff] }
 0x29c   : > { %5942 = vmatmul.msk.f32.gmra.mxu3 %vm279_vm1, %v2310_v24  ;;  %5977 = vmatmul.msk.f32.gmra.mxu0 %vm279_vm1, %v7274_v39  ;;  %v7620_v36 = vpop.f32.mrf.mxu1  ;;  %v2313_v24 = vld [vmem:[#allocation2 + $0x199] sm:$0xff] }
 0x29d   : > { %v2853_v20 = vmul.f32 %v7483_v62, %v2817_v49 }
 0x29e   : > { %v2188_v37 = vpop.f32.mrf.mxu2 }
 0x29f   : > { %v2466_v58 = vpop.f32.mrf.mxu3  ;;  %v2889_v38 = vadd.f32 %v7488_v0, %v2853_v20  ;;  %v2262_v45 = vadd.f32 %v2188_v37, %v1983_v53 }
 0x2a1   : > { %v2921_v63 = vmax.f32 %v2889_v38, 0.0  ;;  %v2540_v52 = vadd.f32 %v2466_v58, %v2262_v45  ;;  %v2750_v33 = vpop.f32.mrf.mxu0  ;;  %v2036_v38 = vld [vmem:[#allocation2 + $0x1a0] sm:$0xff] }
 0x2a2   : > { %v3019_v34 = vld [vmem:[#allocation2 + $0x81] sm:$0xff] }
 0x2a3   : > { %2953 = vst.msk [vmem:[#allocation2 + $0x91] sm:$0xff] %vm279_vm1, %v2921_v63  ;;  %v2818_v23 = vadd.f32 %v2744_v19, %v2540_v52  ;;  %5909 = vmatmul.msk.f32.gmra.mxu2 %vm279_vm1, %v7288_v1  ;;  %5994 = vmatmul.msk.f32.gmra.mxu1 %vm279_vm1, %v3019_v34  ;;  %v2314_v45 = vld [vmem:[#allocation2 + $0x1a1] sm:$0xff] }
 0x2a4   : > { %5943 = vmatmul.msk.f32.gmra.mxu3 %vm279_vm1, %v7272_v55  ;;  %5978 = vmatmul.msk.f32.gmra.mxu0 %vm279_vm1, %v7292_v61  ;;  %v7633_v28 = vpop.f32.mrf.mxu1 }
 0x2a5   : > { %v2854_v39 = vmul.f32 %v7483_v62, %v2818_v23 }
 0x2a6   : > { %v2191_v25 = vpop.f32.mrf.mxu2 }
 0x2a7   : > { %v2469_v32 = vpop.f32.mrf.mxu3  ;;  %v2890_v26 = vadd.f32 %v7488_v0, %v2854_v39  ;;  %v2263_v19 = vadd.f32 %v2191_v25, %v1984_v5 }
 0x2a9   : > { %v2922_v1 = vmax.f32 %v2890_v26, 0.0  ;;  %v2541_v31 = vadd.f32 %v2469_v32, %v2263_v19  ;;  %v2753_v55 = vpop.f32.mrf.mxu0 }
 0x2aa   : > { %v3020_v13 = vld [vmem:[#allocation2 + $0x91] sm:$0xff] }
 0x2ab   : > { %2954 = vst.msk [vmem:[#allocation2 + $0x99] sm:$0xff] %vm279_vm1, %v2922_v1  ;;  %v2819_v61 = vadd.f32 %v2747_v22, %v2541_v31  ;;  %5910 = vmatmul.msk.f32.gmra.mxu2 %vm279_vm1, %v7306_v7  ;;  %5995 = vmatmul.msk.f32.gmra.mxu1 %vm279_vm1, %v3020_v13  ;;  %v2975_v1 = vld [vmem:[#allocation2] sm:$0xff] }
 0x2ac   : > { %5944 = vmatmul.msk.f32.gmra.mxu3 %vm279_vm1, %v7290_v50  ;;  %5979 = vmatmul.msk.f32.gmra.mxu0 %vm279_vm1, %v2591_v46  ;;  %v2592_v50 = vld [vmem:[#allocation2 + $0x1a2] sm:$0xff]  ;;  %v7651_v5 = vpop.f32.mrf.mxu1 }
 0x2ad   : > { %v2855_v60 = vmul.f32 %v7483_v62, %v2819_v61  ;;  %v3466_v31 = vld [vmem:[#allocation2 + $0x2] sm:$0xff] }
 0x2ae   : > { %v2194_v14 = vpop.f32.mrf.mxu2 }
 0x2af   : > { %v2472_v57 = vpop.f32.mrf.mxu3  ;;  %v2891_v48 = vadd.f32 %v7488_v0, %v2855_v60  ;;  %v2264_v21 = vadd.f32 %v2194_v14, %v1985_v35 }
 0x2b1   : > { %v2923_v7 = vmax.f32 %v2891_v48, 0.0  ;;  %v2542_v59 = vadd.f32 %v2472_v57, %v2264_v21  ;;  %v2756_v16 = vpop.f32.mrf.mxu0 }
 0x2b2   : > { %v3021_v22 = vld [vmem:[#allocation2 + $0x99] sm:$0xff] }
 0x2b3   : > { %2955 = vst.msk [vmem:[#allocation2 + $0xa9] sm:$0xff] %vm279_vm1, %v2923_v7  ;;  %v2820_v49 = vadd.f32 %v2750_v33, %v2542_v59  ;;  %5911 = vmatmul.msk.f32.gmra.mxu2 %vm279_vm1, %v2035_v27  ;;  %5996 = vmatmul.msk.f32.gmra.mxu1 %vm279_vm1, %v3021_v22  ;;  %v3467_v7 = vld [vmem:[#allocation2 + $0xa] sm:$0xff] }
 0x2b4   : > { %5945 = vmatmul.msk.f32.gmra.mxu3 %vm279_vm1, %v2313_v24  ;;  %5980 = vmatmul.msk.f32.gmra.mxu0 %vm279_vm1, %v2592_v50  ;;  %v7663_v14 = vpop.f32.mrf.mxu1  ;;  %v2976_v24 = vld [vmem:[#allocation2 + $0x8] sm:$0xff] }
 0x2b5   : > { %v2856_v17 = vmul.f32 %v7483_v62, %v2820_v49 }
 0x2b6   : > { %v2197_v53 = vpop.f32.mrf.mxu2 }
 0x2b7   : > { %v2475_v20 = vpop.f32.mrf.mxu3  ;;  %v2892_v37 = vadd.f32 %v7488_v0, %v2856_v17  ;;  %v2265_v58 = vadd.f32 %v2197_v53, %v1986_v29 }
 0x2b9   : > { %v2924_v63 = vmax.f32 %v2892_v37, 0.0  ;;  %v2543_v52 = vadd.f32 %v2475_v20, %v2265_v58  ;;  %v2759_v33 = vpop.f32.mrf.mxu0 }
 0x2ba   : > { %v3022_v34 = vld [vmem:[#allocation2 + $0xa9] sm:$0xff] }
 0x2bb   : > { %2956 = vst.msk [vmem:[#allocation2 + $0xb1] sm:$0xff] %vm279_vm1, %v2924_v63  ;;  %v2821_v23 = vadd.f32 %v2753_v55, %v2543_v52  ;;  %5912 = vmatmul.msk.f32.gmra.mxu2 %vm279_vm1, %v2036_v38  ;;  %5997 = vmatmul.msk.f32.gmra.mxu1 %vm279_vm1, %v3022_v34 }
 0x2bc   : > { %5946 = vmatmul.msk.f32.gmra.mxu3 %vm279_vm1, %v2314_v45  ;;  %6084 = vmatmul.msk.f32.vlgmr.msrb.gmra.mxu0 %vm279_vm1, %v3744_v56  ;;  %v7678_v58 = vpop.f32.mrf.mxu1 }
 0x2bd   : > { %v2857_v39 = vmul.f32 %v7483_v62, %v2821_v23  ;;  %v1990_v23 = vadd.f32 %v7462_v51, %v9148_v40  ;;  %v7708_v51 = vld [vmem:[#allocation2 + $0x48] sm:$0xff]  ;;  %v7742_v40 = vld [vmem:[#allocation2 + $0x3a] sm:$0xff] }
 0x2be   : > { %v2200_v25 = vpop.f32.mrf.mxu2 }
 0x2bf   : > { %v2478_v32 = vpop.f32.mrf.mxu3  ;;  %v2893_v26 = vadd.f32 %v7488_v0, %v2857_v39  ;;  %v2266_v19 = vadd.f32 %v2200_v25, %v1987_v3 }
 0x2c1   : > { %v2925_v55 = vmax.f32 %v2893_v26, 0.0  ;;  %v2544_v46 = vadd.f32 %v2478_v32, %v2266_v19  ;;  %v2762_v13 = vpop.f32.mrf.mxu0 }
 0x2c2   : > { %v3023_v61 = vld [vmem:[#allocation2 + $0xb1] sm:$0xff] }
 0x2c3   : > { %2957 = vst.msk [vmem:[#allocation2 + $0xc1] sm:$0xff] %vm279_vm1, %v2925_v55  ;;  %v2822_v35 = vadd.f32 %v2756_v16, %v2544_v46  ;;  %6016 = vmatmul.msk.f32.vlgmr.msrb.gmra.mxu2 %vm279_vm1, %v2975_v1  ;;  %5998 = vmatmul.msk.f32.gmra.mxu1 %vm279_vm1, %v3023_v61  ;;  %v7702_v46 = vld [vmem:[#allocation2 + $0x22] sm:$0xff]  ;;  %v9149_v61 = vld [vmem:[#allocation4_spill] sm:$0xff] }
 0x2c4   : > { %6050 = vmatmul.msk.f32.vlgmr.msrb.gmra.mxu3 %vm279_vm1, %v3466_v31  ;;  %6085 = vmatmul.msk.f32.gmra.mxu0 %vm279_vm1, %v3745_v9 }
 0x2c5   : > { %v2858_v60 = vmul.f32 %v7483_v62, %v2822_v35  ;;  %v1991_v35 = vadd.f32 %v7477_v11, %v9149_v61  ;;  %v7728_v11 = vld [vmem:[#allocation2 + $0x50] sm:$0xff] }
 0x2c6   : > { %v2203_v57 = vpop.f32.mrf.mxu2 }
 0x2c7   : > { %v2481_v48 = vpop.f32.mrf.mxu3  ;;  %v2894_v21 = vadd.f32 %v7488_v0, %v2858_v60  ;;  %v2267_v27 = vadd.f32 %v2203_v57, %v1988_v15 }
 0x2c9   : > { %v2926_v59 = vmax.f32 %v2894_v21, 0.0  ;;  %v2545_v16 = vadd.f32 %v2481_v48, %v2267_v27  ;;  %v2765_v50 = vpop.f32.mrf.mxu0 }
 0x2ca   : > { %v7666_v22 = vld [vmem:[#allocation2 + $0xc1] sm:$0xff] }
 0x2cb   : > { %2958 = vst.msk [vmem:[#allocation2 + $0xc9] sm:$0xff] %vm279_vm1, %v2926_v59  ;;  %v2823_v49 = vadd.f32 %v2759_v33, %v2545_v16  ;;  %6017 = vmatmul.msk.f32.gmra.mxu2 %vm279_vm1, %v2976_v24  ;;  %5999 = vmatmul.msk.f32.gmra.mxu1 %vm279_vm1, %v7666_v22  ;;  %v7682_v33 = vld [vmem:[#allocation2 + $0x1a] sm:$0xff]  ;;  %v7722_v16 = vld [vmem:[#allocation2 + $0x32] sm:$0xff] }
 0x2cc   : > { %6051 = vmatmul.msk.f32.gmra.mxu3 %vm279_vm1, %v3467_v7  ;;  %6086 = vmatmul.msk.f32.gmra.mxu0 %vm279_vm1, %v3746_v12 }
 0x2cd   : > { %v2859_v29 = vmul.f32 %v7483_v62, %v2823_v49  ;;  %v9150_v49 = vld [vmem:[#allocation5_spill] sm:$0xff] }
 0x2ce   : > { %v2206_v17 = vpop.f32.mrf.mxu2 }
 0x2cf   : > { %v2484_v53 = vpop.f32.mrf.mxu3  ;;  %v2895_v20 = vadd.f32 %v7488_v0, %v2859_v29  ;;  %v2268_v37 = vadd.f32 %v2206_v17, %v1989_v54  ;;  %v1992_v54 = vadd.f32 %v7495_v42, %v9150_v49  ;;  %v7749_v42 = vld [vmem:[#allocation2 + $0x60] sm:$0xff] }
 0x2d1   : > { %v2927_v38 = vmax.f32 %v2895_v20, 0.0  ;;  %v2546_v45 = vadd.f32 %v2484_v53, %v2268_v37  ;;  %v2768_v63 = vpop.f32.mrf.mxu0 }
 0x2d2   : > { %v7680_v52 = vld [vmem:[#allocation2 + $0xc9] sm:$0xff] }
 0x2d3   : > { %2959 = vst.msk [vmem:[#allocation2 + $0xd9] sm:$0xff] %vm279_vm1, %v2927_v38  ;;  %v2824_v34 = vadd.f32 %v2762_v13, %v2546_v45  ;;  %6018 = vmatmul.msk.f32.gmra.mxu2 %vm279_vm1, %v3744_v56  ;;  %6000 = vmatmul.msk.f32.gmra.mxu1 %vm279_vm1, %v7680_v52 }
 0x2d4   : > { %6052 = vmatmul.msk.f32.gmra.mxu3 %vm279_vm1, %v7682_v33  ;;  %6087 = vmatmul.msk.f32.gmra.mxu0 %vm279_vm1, %v7688_v8 }
 0x2d5   : > { %v2860_v3 = vmul.f32 %v7483_v62, %v2824_v34 }
 0x2d6   : > { %v2209_v39 = vpop.f32.mrf.mxu2 }
 0x2d7   : > { %v2487_v25 = vpop.f32.mrf.mxu3  ;;  %v2896_v56 = vadd.f32 %v7488_v0, %v2860_v3  ;;  %v2269_v32 = vadd.f32 %v2209_v39, %v1990_v23  ;;  %v9151_v3 = vld [vmem:[#allocation6_spill] sm:$0xff] }
 0x2d8   : > { %v7698_v1 = vpop.f32.mrf.mxu1  ;;  %v1993_v39 = vadd.f32 %v7507_v10, %v9151_v3  ;;  %v7770_v10 = vld [vmem:[#allocation2 + $0x68] sm:$0xff] }
 0x2d9   : > { %v2928_v26 = vmax.f32 %v2896_v56, 0.0  ;;  %v2547_v19 = vadd.f32 %v2487_v25, %v2269_v32  ;;  %v2771_v31 = vpop.f32.mrf.mxu0 }
 0x2da   : > { %v7700_v55 = vld [vmem:[#allocation2 + $0xd9] sm:$0xff] }
 0x2db   : > { %2960 = vst.msk [vmem:[#allocation2 + $0xe1] sm:$0xff] %vm279_vm1, %v2928_v26  ;;  %v2825_v13 = vadd.f32 %v2765_v50, %v2547_v19  ;;  %6019 = vmatmul.msk.f32.gmra.mxu2 %vm279_vm1, %v3745_v9  ;;  %6001 = vmatmul.msk.f32.gmra.mxu1 %vm279_vm1, %v7700_v55 }
 0x2dc   : > { %6053 = vmatmul.msk.f32.gmra.mxu3 %vm279_vm1, %v7702_v46  ;;  %6088 = vmatmul.msk.f32.gmra.mxu0 %vm279_vm1, %v7708_v51 }
 0x2dd   : > { %v2861_v15 = vmul.f32 %v7483_v62, %v2825_v13 }
 0x2de   : > { %v2212_v60 = vpop.f32.mrf.mxu2 }
 0x2df   : > { %v2490_v57 = vpop.f32.mrf.mxu3  ;;  %v2897_v9 = vadd.f32 %v7488_v0, %v2861_v15  ;;  %v2270_v48 = vadd.f32 %v2212_v60, %v1991_v35  ;;  %v7763_v60 = vld [vmem:[#allocation2 + $0x4a] sm:$0xff] }
 0x2e0   : > { %v7718_v24 = vpop.f32.mrf.mxu1 }
 0x2e1   : > { %v2929_v21 = vmax.f32 %v2897_v9, 0.0  ;;  %v2548_v27 = vadd.f32 %v2490_v57, %v2270_v48  ;;  %v2774_v7 = vpop.f32.mrf.mxu0  ;;  %v9152_v9 = vld [vmem:[#allocation7_spill] sm:$0xff] }
 0x2e2   : > { %v7720_v59 = vld [vmem:[#allocation2 + $0xe1] sm:$0xff]  ;;  %v1994_v48 = vadd.f32 %v7518_v18, %v9152_v9  ;;  %v7791_v18 = vld [vmem:[#allocation2 + $0x78] sm:$0xff] }
 0x2e3   : > { %2961 = vst.msk [vmem:[#allocation2 + $0xf1] sm:$0xff] %vm279_vm1, %v2929_v21  ;;  %v2826_v50 = vadd.f32 %v2768_v63, %v2548_v27  ;;  %6020 = vmatmul.msk.f32.gmra.mxu2 %vm279_vm1, %v3746_v12  ;;  %6002 = vmatmul.msk.f32.gmra.mxu1 %vm279_vm1, %v7720_v59 }
 0x2e4   : > { %6054 = vmatmul.msk.f32.gmra.mxu3 %vm279_vm1, %v7722_v16  ;;  %6089 = vmatmul.msk.f32.gmra.mxu0 %vm279_vm1, %v7728_v11 }
 0x2e5   : > { %v2862_v29 = vmul.f32 %v7483_v62, %v2826_v50 }
 0x2e6   : > { %v2215_v17 = vpop.f32.mrf.mxu2 }
 0x2e7   : > { %v2493_v53 = vpop.f32.mrf.mxu3  ;;  %v2898_v12 = vadd.f32 %v7488_v0, %v2862_v29  ;;  %v2271_v20 = vadd.f32 %v2215_v17, %v1992_v54 }
 0x2e8   : > { %v7738_v45 = vpop.f32.mrf.mxu1 }
 0x2e9   : > { %v2930_v37 = vmax.f32 %v2898_v12, 0.0  ;;  %v2549_v38 = vadd.f32 %v2493_v53, %v2271_v20  ;;  %v2777_v63 = vpop.f32.mrf.mxu0  ;;  %v7784_v20 = vld [vmem:[#allocation2 + $0x52] sm:$0xff] }
 0x2ea   : > { %v7740_v34 = vld [vmem:[#allocation2 + $0xf1] sm:$0xff] }
 0x2eb   : > { %2962 = vst.msk [vmem:[#allocation2 + $0xf9] sm:$0xff] %vm279_vm1, %v2930_v37  ;;  %v2827_v23 = vadd.f32 %v2771_v31, %v2549_v38  ;;  %6021 = vmatmul.msk.f32.gmra.mxu2 %vm279_vm1, %v7688_v8  ;;  %6003 = vmatmul.msk.f32.gmra.mxu1 %vm279_vm1, %v7740_v34  ;;  %v9153_v38 = vld [vmem:[#allocation8_spill] sm:$0xff] }
 0x2ec   : > { %6055 = vmatmul.msk.f32.gmra.mxu3 %vm279_vm1, %v7742_v40  ;;  %6090 = vmatmul.msk.f32.gmra.mxu0 %vm279_vm1, %v7749_v42 }
 0x2ed   : > { %v2863_v25 = vmul.f32 %v7483_v62, %v2827_v23  ;;  %v1995_v23 = vadd.f32 %v7535_v47, %v9153_v38  ;;  %v7812_v47 = vld [vmem:[#allocation2 + $0x80] sm:$0xff] }
 0x2ee   : > { %v2218_v56 = vpop.f32.mrf.mxu2 }
 0x2ef   : > { %v2496_v32 = vpop.f32.mrf.mxu3  ;;  %v2899_v26 = vadd.f32 %v7488_v0, %v2863_v25  ;;  %v2272_v19 = vadd.f32 %v2218_v56, %v1993_v39 }
 0x2f0   : > { %v7759_v61 = vpop.f32.mrf.mxu1 }
 0x2f1   : > { %v2931_v31 = vmax.f32 %v2899_v26, 0.0  ;;  %v2550_v13 = vadd.f32 %v2496_v32, %v2272_v19  ;;  %v2780_v35 = vpop.f32.mrf.mxu0 }
 0x2f2   : > { %v7761_v15 = vld [vmem:[#allocation2 + $0xf9] sm:$0xff] }
 0x2f3   : > { %2963 = vst.msk [vmem:[#allocation2 + $0x109] sm:$0xff] %vm279_vm1, %v2931_v31  ;;  %v2828_v57 = vadd.f32 %v2774_v7, %v2550_v13  ;;  %6022 = vmatmul.msk.f32.gmra.mxu2 %vm279_vm1, %v7708_v51  ;;  %6004 = vmatmul.msk.f32.gmra.mxu1 %vm279_vm1, %v7761_v15 }
 0x2f4   : > { %6056 = vmatmul.msk.f32.gmra.mxu3 %vm279_vm1, %v7763_v60  ;;  %6091 = vmatmul.msk.f32.gmra.mxu0 %vm279_vm1, %v7770_v10 }
 0x2f5   : > { %v2864_v21 = vmul.f32 %v7483_v62, %v2828_v57  ;;  %v7805_v57 = vld [vmem:[#allocation2 + $0x62] sm:$0xff] }
 0x2f6   : > { %v2221_v27 = vpop.f32.mrf.mxu2 }
 0x2f7   : > { %v2499_v7 = vpop.f32.mrf.mxu3  ;;  %v2900_v50 = vadd.f32 %v7488_v0, %v2864_v21  ;;  %v2273_v49 = vadd.f32 %v2221_v27, %v1994_v48  ;;  %v9154_v48 = vld [vmem:[#allocation9_spill] sm:$0xff] }
 0x2f8   : > { %v7780_v17 = vpop.f32.mrf.mxu1  ;;  %v1996_v21 = vadd.f32 %v7547_v30, %v9154_v48  ;;  %v7833_v30 = vld [vmem:[#allocation2 + $0x90] sm:$0xff] }
 0x2f9   : > { %v2932_v54 = vmax.f32 %v2900_v50, 0.0  ;;  %v2551_v29 = vadd.f32 %v2499_v7, %v2273_v49  ;;  %v2783_v53 = vpop.f32.mrf.mxu0 }
 0x2fa   : > { %v7782_v12 = vld [vmem:[#allocation2 + $0x109] sm:$0xff] }
 0x2fb   : > { %2964 = vst.msk [vmem:[#allocation2 + $0x111] sm:$0xff] %vm279_vm1, %v2932_v54  ;;  %v2829_v37 = vadd.f32 %v2777_v63, %v2551_v29  ;;  %6023 = vmatmul.msk.f32.gmra.mxu2 %vm279_vm1, %v7728_v11  ;;  %6005 = vmatmul.msk.f32.gmra.mxu1 %vm279_vm1, %v7782_v12 }
 0x2fc   : > { %6057 = vmatmul.msk.f32.gmra.mxu3 %vm279_vm1, %v7784_v20  ;;  %6092 = vmatmul.msk.f32.gmra.mxu0 %vm279_vm1, %v7791_v18 }
 0x2fd   : > { %v2865_v3 = vmul.f32 %v7483_v62, %v2829_v37 }
 0x2fe   : > { %v2224_v63 = vpop.f32.mrf.mxu2 }
 0x2ff   : > { %v2502_v39 = vpop.f32.mrf.mxu3  ;;  %v2901_v25 = vadd.f32 %v7488_v0, %v2865_v3  ;;  %v2274_v56 = vadd.f32 %v2224_v63, %v1995_v23  ;;  %v7826_v3 = vld [vmem:[#allocation2 + $0x6a] sm:$0xff] }
 0x300   : > { %v7801_v19 = vpop.f32.mrf.mxu1 }
 0x301   : > { %v2933_v32 = vmax.f32 %v2901_v25, 0.0  ;;  %v2552_v26 = vadd.f32 %v2502_v39, %v2274_v56  ;;  %v2786_v31 = vpop.f32.mrf.mxu0  ;;  %v9155_v39 = vld [vmem:[#allocation10_spill] sm:$0xff] }
 0x302   : > { %v7803_v13 = vld [vmem:[#allocation2 + $0x111] sm:$0xff]  ;;  %v1997_v25 = vadd.f32 %v7560_v2, %v9155_v39 }
 0x303   : > { %2965 = vst.msk [vmem:[#allocation2 + $0x121] sm:$0xff] %vm279_vm1, %v2933_v32  ;;  %v2830_v9 = vadd.f32 %v2780_v35, %v2552_v26  ;;  %6024 = vmatmul.msk.f32.gmra.mxu2 %vm279_vm1, %v7749_v42  ;;  %6006 = vmatmul.msk.f32.gmra.mxu1 %vm279_vm1, %v7803_v13  ;;  %v7854_v2 = vld [vmem:[#allocation2 + $0x98] sm:$0xff] }
 0x304   : > { %6058 = vmatmul.msk.f32.gmra.mxu3 %vm279_vm1, %v7805_v57  ;;  %6093 = vmatmul.msk.f32.gmra.mxu0 %vm279_vm1, %v7812_v47  ;;  %9158 = vst [vmem:[#allocation18_spill] sm:$0xff] %v7854_v2 }
 0x305   : > { %v2866_v27 = vmul.f32 %v7483_v62, %v2830_v9 }
 0x306   : > { %v2227_v35 = vpop.f32.mrf.mxu2 }
 0x307   : > { %v2505_v7 = vpop.f32.mrf.mxu3  ;;  %v2902_v50 = vadd.f32 %v7488_v0, %v2866_v27  ;;  %v2275_v49 = vadd.f32 %v2227_v35, %v1996_v21 }
 0x308   : > { %v7822_v37 = vpop.f32.mrf.mxu1 }
 0x309   : > { %v2934_v54 = vmax.f32 %v2902_v50, 0.0  ;;  %v2553_v29 = vadd.f32 %v2505_v7, %v2275_v49  ;;  %v2789_v38 = vpop.f32.mrf.mxu0  ;;  %v7847_v50 = vld [vmem:[#allocation2 + $0x7a] sm:$0xff] }
 0x30a   : > { %v7824_v23 = vld [vmem:[#allocation2 + $0x121] sm:$0xff]  ;;  %9157 = vst [vmem:[#allocation13_spill] sm:$0xff] %v7847_v50 }
 0x30b   : > { %2966 = vst.msk [vmem:[#allocation2 + $0x129] sm:$0xff] %vm279_vm1, %v2934_v54  ;;  %v2831_v63 = vadd.f32 %v2783_v53, %v2553_v29  ;;  %6025 = vmatmul.msk.f32.gmra.mxu2 %vm279_vm1, %v7770_v10  ;;  %6007 = vmatmul.msk.f32.gmra.mxu1 %vm279_vm1, %v7824_v23  ;;  %v9159_v54 = vld [vmem:[#allocation11_spill] sm:$0xff] }
 0x30c   : > { %6059 = vmatmul.msk.f32.gmra.mxu3 %vm279_vm1, %v7826_v3  ;;  %6094 = vmatmul.msk.f32.gmra.mxu0 %vm279_vm1, %v7833_v30  ;;  %v1998_v29 = vadd.f32 %v7572_v4, %v9159_v54  ;;  %v7875_v4 = vld [vmem:[#allocation2 + $0xa8] sm:$0xff] }
 0x30d   : > { %v2867_v56 = vmul.f32 %v7483_v62, %v2831_v63  ;;  %9162 = vst [vmem:[#allocation17_spill] sm:$0xff] %v7875_v4 }
 0x30e   : > { %v2230_v53 = vpop.f32.mrf.mxu2 }
 0x30f   : > { %v2508_v32 = vpop.f32.mrf.mxu3  ;;  %v2903_v26 = vadd.f32 %v7488_v0, %v2867_v56  ;;  %v2276_v9 = vadd.f32 %v2230_v53, %v1997_v25 }
 0x310   : > { %v7843_v27 = vpop.f32.mrf.mxu1 }
 0x311   : > { %v2935_v48 = vmax.f32 %v2903_v26, 0.0  ;;  %v2554_v21 = vadd.f32 %v2508_v32, %v2276_v9  ;;  %v2792_v35 = vpop.f32.mrf.mxu0 }
 0x312   : > { %v7845_v7 = vld [vmem:[#allocation2 + $0x129] sm:$0xff] }
 0x313   : > { %9156 = vst [vmem:[#allocation12_spill] sm:$0xff] %v7845_v7  ;;  %v2832_v49 = vadd.f32 %v2786_v31, %v2554_v21  ;;  %6026 = vmatmul.msk.f32.gmra.mxu2 %vm279_vm1, %v7791_v18  ;;  %6008 = vmatmul.msk.f32.gmra.mxu1 %vm279_vm1, %v7845_v7  ;;  %v7868_v21 = vld [vmem:[#allocation2 + $0x82] sm:$0xff] }
 0x314   : > { %2967 = vst.msk [vmem:[#allocation2 + $0x139] sm:$0xff] %vm279_vm1, %v2935_v48  ;;  %6060 = vmatmul.msk.f32.gmra.mxu3 %vm279_vm1, %v7847_v50  ;;  %6095 = vmatmul.msk.f32.gmra.mxu0 %vm279_vm1, %v7854_v2 }
 0x315   : > { %v2868_v63 = vmul.f32 %v7483_v62, %v2832_v49  ;;  %9161 = vst [vmem:[#allocation20_spill] sm:$0xff] %v7868_v21  ;;  %v9163_v49 = vld [vmem:[#allocation14_spill] sm:$0xff] }
 0x316   : > { %v2233_v31 = vpop.f32.mrf.mxu2  ;;  %v1999_v54 = vadd.f32 %v7592_v43, %v9163_v49  ;;  %v7896_v43 = vld [vmem:[#allocation2 + $0xb0] sm:$0xff] }
 0x317   : > { %v2511_v39 = vpop.f32.mrf.mxu3  ;;  %v2904_v25 = vadd.f32 %v7488_v0, %v2868_v63  ;;  %v2277_v56 = vadd.f32 %v2233_v31, %v1998_v29  ;;  %9166 = vst [vmem:[#allocation24_spill] sm:$0xff] %v7896_v43 }
 0x318   : > { %v7864_v26 = vpop.f32.mrf.mxu1 }
 0x319   : > { %v2936_v53 = vmax.f32 %v2904_v25, 0.0  ;;  %v2555_v32 = vadd.f32 %v2511_v39, %v2277_v56  ;;  %v2795_v9 = vpop.f32.mrf.mxu0 }
 0x31b   : > { %v7866_v48 = vld [vmem:[#allocation2 + $0x139] sm:$0xff]  ;;  %2968 = vst.msk [vmem:[#allocation2 + $0x141] sm:$0xff] %vm279_vm1, %v2936_v53  ;;  %v2833_v7 = vadd.f32 %v2789_v38, %v2555_v32  ;;  %6027 = vmatmul.msk.f32.gmra.mxu2 %vm279_vm1, %v7812_v47 }
 0x31c   : > { %9160 = vst [vmem:[#allocation15_spill] sm:$0xff] %v7866_v48  ;;  %6061 = vmatmul.msk.f32.gmra.mxu3 %vm279_vm1, %v7868_v21  ;;  %6009 = vmatmul.msk.f32.gmra.mxu1 %vm279_vm1, %v7866_v48  ;;  %v7889_v48 = vld [vmem:[#allocation2 + $0x92] sm:$0xff] }
 0x31d   : > { %6096 = vmatmul.msk.f32.gmra.mxu0 %vm279_vm1, %v7875_v4  ;;  %v2869_v29 = vmul.f32 %v7483_v62, %v2833_v7  ;;  %9165 = vst [vmem:[#allocation19_spill] sm:$0xff] %v7889_v48  ;;  %v2000_v7 = vadd.f32 %v7605_v41, %v7438_v44  ;;  %v7917_v44 = vld [vmem:[#allocation2 + $0xc0] sm:$0xff]  ;;  %v6218_v41 = vld [vmem:[%s8982_s4 + $0x1c] sm:$0xf] }
 0x31e   : > { %v2236_v38 = vpop.f32.mrf.mxu2  ;;  %9169 = vst [vmem:[#allocation23_spill] sm:$0xff] %v7917_v44  ;;  %6219 = vmatpush.msk.msra.mxu0 %vm563_vm0, %v6218_v41 }
 0x31f   : > { %v2514_v63 = vpop.f32.mrf.mxu3  ;;  %v2905_v31 = vadd.f32 %v7488_v0, %v2869_v29  ;;  %v2278_v39 = vadd.f32 %v2236_v38, %v1999_v54 }
 0x320   : > { %v7885_v53 = vpop.f32.mrf.mxu1 }
 0x321   : > { %v2937_v25 = vmax.f32 %v2905_v31, 0.0  ;;  %v2556_v56 = vadd.f32 %v2514_v63, %v2278_v39  ;;  %v2798_v32 = vpop.f32.mrf.mxu0 }
 0x322   : > { %v7887_v21 = vld [vmem:[#allocation2 + $0x141] sm:$0xff] }
 0x323   : > { %9164 = vst [vmem:[#allocation22_spill] sm:$0xff] %v7887_v21  ;;  %v2834_v50 = vadd.f32 %v2792_v35, %v2556_v56  ;;  %6028 = vmatmul.msk.f32.gmra.mxu2 %vm279_vm1, %v7833_v30 }
 0x324   : > { %2969 = vst.msk [vmem:[#allocation2 + $0x151] sm:$0xff] %vm279_vm1, %v2937_v25  ;;  %6062 = vmatmul.msk.f32.gmra.mxu3 %vm279_vm1, %v7889_v48  ;;  %6010 = vmatmul.msk.f32.gmra.mxu1 %vm279_vm1, %v7887_v21  ;;  %v7910_v21 = vld [vmem:[#allocation2 + $0x9a] sm:$0xff] }
 0x325   : > { %6097 = vmatmul.msk.f32.gmra.mxu0 %vm279_vm1, %v7896_v43  ;;  %v2870_v49 = vmul.f32 %v7483_v62, %v2834_v50  ;;  %9168 = vst [vmem:[#allocation26_spill] sm:$0xff] %v7910_v21  ;;  %v6150_v62 = vld [vmem:[%s8982_s4 + $0x14] sm:$0xf]  ;;  %v6252_v50 = vld [vmem:[%s8982_s4 + $0x20] sm:$0xf] }
 0x326   : > { %v2239_v35 = vpop.f32.mrf.mxu2  ;;  %6151 = vmatpush.msk.msra.mxu2 %vm563_vm0, %v6150_v62  ;;  %6253 = vmatpush.msk.msra.mxu1 %vm563_vm0, %v6252_v50  ;;  %v7958_v50 = vld [vmem:[#allocation2 + $0xc8] sm:$0xff] }
 0x327   : > { %v2517_v54 = vpop.f32.mrf.mxu3  ;;  %v2906_v29 = vadd.f32 %v7488_v0, %v2870_v49  ;;  %v2279_v38 = vadd.f32 %v2239_v35, %v2000_v7  ;;  %v6184_v0 = vld [vmem:[%s8982_s4 + $0x18] sm:$0xf]  ;;  %v6305_v49 = vld [vmem:[%s8980_s2] ss:$0 sm:$0xff]  ;;  %9173 = vst [vmem:[#allocation30_spill] sm:$0xff] %v7958_v50 }
 0x328   : > { %v7906_v39 = vpop.f32.mrf.mxu1  ;;  %6185 = vmatpush.msk.msra.mxu3 %vm563_vm0, %v6184_v0  ;;  %v7951_v0 = vld [vmem:[#allocation2 + $0xaa] sm:$0xff] }
 0x329   : > { %v2938_v63 = vmax.f32 %v2906_v29, 0.0  ;;  %v2557_v31 = vadd.f32 %v2517_v54, %v2279_v38  ;;  %v2801_v25 = vpop.f32.mrf.mxu0  ;;  %v6306_v38 = vld [vmem:[%s8981_s3] ss:$0 sm:$0xff]  ;;  %9172 = vst [vmem:[#allocation25_spill] sm:$0xff] %v7951_v0 }
 0x32b   : > { %v7908_v56 = vld [vmem:[#allocation2 + $0x151] sm:$0xff]  ;;  %2970 = vst.msk [vmem:[#allocation2 + $0x159] sm:$0xff] %vm279_vm1, %v2938_v63  ;;  %v2835_v48 = vadd.f32 %v2795_v9, %v2557_v31  ;;  %6029 = vmatmul.msk.f32.gmra.mxu2 %vm279_vm1, %v7854_v2  ;;  %v9170_v9 = vld [vmem:[#allocation41_spill] sm:$0xff] }
 0x32c   : > { %9167 = vst [vmem:[#allocation21_spill] sm:$0xff] %v7908_v56  ;;  %6063 = vmatmul.msk.f32.gmra.mxu3 %vm279_vm1, %v7910_v21  ;;  %6011 = vmatmul.msk.f32.gmra.mxu1 %vm279_vm1, %v7908_v56  ;;  %v2001_v7 = vadd.f32 %v7620_v36, %v9170_v9 }
 0x32d   : > { %6098 = vmatmul.msk.f32.gmra.mxu0 %vm279_vm1, %v7917_v44  ;;  %v2871_v35 = vmul.f32 %v6305_v49, %v2835_v48 }
 0x32e   : > { %v2242_v54 = vpop.f32.mrf.mxu2 }
 0x32f   : > { %v2520_v29 = vpop.f32.mrf.mxu3  ;;  %v2907_v36 = vadd.f32 %v6306_v38, %v2871_v35  ;;  %v2280_v63 = vadd.f32 %v2242_v54, %v2001_v7  ;;  %v2002_v7 = vadd.f32 %v7633_v28, %v7466_v6  ;;  %v7977_v6 = vld [vmem:[#allocation2 + $0xd8] sm:$0xff] }
 0x330   : > { %v7947_v56 = vpop.f32.mrf.mxu1  ;;  %9176 = vst [vmem:[#allocation29_spill] sm:$0xff] %v7977_v6  ;;  %v9177_v28 = vld [vmem:[#allocation16_spill] sm:$0xff] }
 0x331   : > { %v2939_v31 = vmax.f32 %v2907_v36, 0.0  ;;  %v2558_v9 = vadd.f32 %v2520_v29, %v2280_v63  ;;  %v2804_v48 = vpop.f32.mrf.mxu0 }
 0x332   : > { %v7949_v62 = vld [vmem:[#allocation2 + $0x159] sm:$0xff] }
 0x333   : > { %9171 = vst [vmem:[#allocation28_spill] sm:$0xff] %v7949_v62  ;;  %v2836_v41 = vadd.f32 %v2798_v32, %v2558_v9  ;;  %6030 = vmatmul.msk.f32.gmra.mxu2 %vm279_vm1, %v7875_v4  ;;  %v7970_v4 = vld [vmem:[#allocation2 + $0xb2] sm:$0xff] }
 0x334   : > { %2971 = vst.msk [vmem:[#allocation2 + $0x169] sm:$0xff] %vm279_vm1, %v2939_v31  ;;  %6064 = vmatmul.msk.f32.gmra.mxu3 %vm279_vm1, %v7951_v0  ;;  %6012 = vmatmul.msk.f32.gmra.mxu1 %vm279_vm1, %v7949_v62 }
 0x335   : > { %6099 = vmatmul.msk.f32.gmra.mxu0 %vm279_vm1, %v7958_v50  ;;  %v2872_v35 = vmul.f32 %v6305_v49, %v2836_v41  ;;  %9175 = vst [vmem:[#allocation32_spill] sm:$0xff] %v7970_v4  ;;  %v2003_v41 = vadd.f32 %v7651_v5, %v9177_v28  ;;  %v7996_v5 = vld [vmem:[#allocation2 + $0xe0] sm:$0xff] }
 0x336   : > { %v2245_v54 = vpop.f32.mrf.mxu2  ;;  %9180 = vst [vmem:[#allocation36_spill] sm:$0xff] %v7996_v5 }
 0x337   : > { %v2523_v32 = vpop.f32.mrf.mxu3  ;;  %v2908_v29 = vadd.f32 %v6306_v38, %v2872_v35  ;;  %v2281_v36 = vadd.f32 %v2245_v54, %v2002_v7 }
 0x338   : > { %v7966_v9 = vpop.f32.mrf.mxu1 }
 0x339   : > { %v2940_v63 = vmax.f32 %v2908_v29, 0.0  ;;  %v2559_v31 = vadd.f32 %v2523_v32, %v2281_v36  ;;  %v3894_v0 = vpop.f32.mrf.mxu0 }
 0x33b   : > { %v7968_v21 = vld [vmem:[#allocation2 + $0x169] sm:$0xff]  ;;  %2972 = vst.msk [vmem:[#allocation2 + $0x171] sm:$0xff] %vm279_vm1, %v2940_v63  ;;  %v2837_v62 = vadd.f32 %v2801_v25, %v2559_v31  ;;  %6031 = vmatmul.msk.f32.gmra.mxu2 %vm279_vm1, %v7896_v43 }
 0x33c   : > { %9174 = vst [vmem:[#allocation27_spill] sm:$0xff] %v7968_v21  ;;  %6065 = vmatmul.msk.f32.gmra.mxu3 %vm279_vm1, %v7970_v4  ;;  %6013 = vmatmul.msk.f32.gmra.mxu1 %vm279_vm1, %v7968_v21  ;;  %v7989_v43 = vld [vmem:[#allocation2 + $0xc2] sm:$0xff] }
 0x33d   : > { %6100 = vmatmul.msk.f32.gmra.mxu0 %vm279_vm1, %v7977_v6  ;;  %v2873_v7 = vmul.f32 %v6305_v49, %v2837_v62  ;;  %9179 = vst [vmem:[#allocation31_spill] sm:$0xff] %v7989_v43 }
 0x33e   : > { %v2248_v35 = vpop.f32.mrf.mxu2 }
 0x33f   : > { %v2526_v25 = vpop.f32.mrf.mxu3  ;;  %v2909_v54 = vadd.f32 %v6306_v38, %v2873_v7  ;;  %v2282_v32 = vadd.f32 %v2248_v35, %v2003_v41 }
 0x340   : > { %v7985_v63 = vpop.f32.mrf.mxu1 }
 0x341   : > { %v2941_v29 = vmax.f32 %v2909_v54, 0.0  ;;  %v2560_v36 = vadd.f32 %v2526_v25, %v2282_v32  ;;  %v3897_v31 = vpop.f32.mrf.mxu0 }
 0x342   : > { %v7987_v4 = vld [vmem:[#allocation2 + $0x171] sm:$0xff] }
 0x343   : > { %9178 = vst [vmem:[#allocation34_spill] sm:$0xff] %v7987_v4  ;;  %v2838_v21 = vadd.f32 %v2804_v48, %v2560_v36  ;;  %6032 = vmatmul.msk.f32.gmra.mxu2 %vm279_vm1, %v7917_v44  ;;  %v8171_v44 = vld [vmem:[#allocation2 + $0x13a] sm:$0xff]  ;;  %v8244_v2 = vld [vmem:[#allocation2 + $0x16a] sm:$0xff] }
 0x344   : > { %2973 = vst.msk [vmem:[#allocation2 + $0x181] sm:$0xff] %vm279_vm1, %v2941_v29  ;;  %6066 = vmatmul.msk.f32.gmra.mxu3 %vm279_vm1, %v7989_v43  ;;  %6014 = vmatmul.msk.f32.gmra.mxu1 %vm279_vm1, %v7987_v4  ;;  %v8005_v29 = vld [vmem:[#allocation2 + $0xca] sm:$0xff]  ;;  %v8133_v43 = vld [vmem:[#allocation2 + $0x122] sm:$0xff] }
 0x345   : > { %6101 = vmatmul.msk.f32.gmra.mxu0 %vm279_vm1, %v7996_v5  ;;  %v2874_v62 = vmul.f32 %v6305_v49, %v2838_v21  ;;  %9181 = vst [vmem:[#allocation33_spill] sm:$0xff] %v8005_v29  ;;  %v4022_v21 = vld [vmem:[#allocation2 + $0x19] sm:$0xff]  ;;  %v8012_v49 = vld [vmem:[#allocation2 + $0xf0] sm:$0xff] }
 0x346   : > { %v3370_v28 = vpop.f32.mrf.mxu2  ;;  %9182 = vst [vmem:[#allocation38_spill] sm:$0xff] %v8012_v49  ;;  %v8095_v4 = vld [vmem:[#allocation2 + $0x10a] sm:$0xff] }
 0x347   : > { %v3616_v41 = vpop.f32.mrf.mxu3  ;;  %v2910_v7 = vadd.f32 %v6306_v38, %v2874_v62  ;;  %v3371_v48 = vadd.f32 %v3370_v28, %v7663_v14  ;;  %9196 = vst [vmem:[#allocation10_spill] sm:$0xff] %v8095_v4 }
 0x348   : > { %v8003_v54 = vpop.f32.mrf.mxu1  ;;  %9202 = vst [vmem:[#allocation45_spill] sm:$0xff] %v8133_v43 }
 0x349   : > { %v2942_v35 = vmax.f32 %v2910_v7, 0.0  ;;  %v3712_v25 = vadd.f32 %v3616_v41, %v3371_v48  ;;  %v3900_v32 = vpop.f32.mrf.mxu0  ;;  %v8022_v48 = vld [vmem:[#allocation2 + $0xda] sm:$0xff]  ;;  %9209 = vst [vmem:[#allocation52_spill] sm:$0xff] %v8171_v44 }
 0x34a   : > { %9184 = vst [vmem:[#allocation40_spill] sm:$0xff] %v8022_v48 }
 0x34b   : > { %2974 = vst.msk [vmem:[#allocation2 + $0x189] sm:$0xff] %vm279_vm1, %v2942_v35  ;;  %6033 = vmatmul.msk.f32.gmra.mxu2 %vm279_vm1, %v7958_v50  ;;  %v8014_v38 = vadd.f32 %v3894_v0, %v3712_v25  ;;  %v4023_v0 = vld [vmem:[#allocation2 + $0x21] sm:$0xff]  ;;  %v8028_v35 = vld [vmem:[#allocation2 + $0xf8] sm:$0xff]  ;;  %v8152_v50 = vld [vmem:[#allocation2 + $0x12a] sm:$0xff] }
 0x34c   : > { %6067 = vmatmul.msk.f32.gmra.mxu3 %vm279_vm1, %v8005_v29  ;;  %6118 = vmatmul.msk.f32.vlgmr.msrb.gmra.mxu1 %vm279_vm1, %v4022_v21  ;;  %9185 = vst [vmem:[#allocation37_spill] sm:$0xff] %v8028_v35  ;;  %v8038_v29 = vld [vmem:[#allocation2 + $0xe2] sm:$0xff] }
 0x34d   : > { %9183 = vst [vmem:[#allocation35_spill] sm:$0xff] %v8014_v38  ;;  %6102 = vmatmul.msk.f32.gmra.mxu0 %vm279_vm1, %v8012_v49 }
 0x34e   : > { %v3373_v14 = vpop.f32.mrf.mxu2  ;;  %9187 = vst [vmem:[#allocation42_spill] sm:$0xff] %v8038_v29 }
 0x34f   : > { %v3619_v36 = vpop.f32.mrf.mxu3  ;;  %v3374_v62 = vadd.f32 %v3373_v14, %v7678_v58  ;;  %9205 = vst [vmem:[#allocation48_spill] sm:$0xff] %v8152_v50 }
 0x350   : > { %v8020_v41 = vpop.f32.mrf.mxu1 }
 0x351   : > { %v3713_v28 = vadd.f32 %v3619_v36, %v3374_v62  ;;  %v3903_v7 = vpop.f32.mrf.mxu0 }
 0x353   : > { %6034 = vmatmul.msk.f32.gmra.mxu2 %vm279_vm1, %v7977_v6  ;;  %v8030_v25 = vadd.f32 %v3897_v31, %v3713_v28  ;;  %v8044_v31 = vld [vmem:[#allocation2 + $0x31] sm:$0xff]  ;;  %v8046_v28 = vld [vmem:[#allocation2 + $0x108] sm:$0xff] }
 0x354   : > { %6068 = vmatmul.msk.f32.gmra.mxu3 %vm279_vm1, %v8022_v48  ;;  %6119 = vmatmul.msk.f32.gmra.mxu1 %vm279_vm1, %v4023_v0  ;;  %9188 = vst [vmem:[#allocation43_spill] sm:$0xff] %v8046_v28  ;;  %v8057_v48 = vld [vmem:[#allocation2 + $0xf2] sm:$0xff] }
 0x355   : > { %9186 = vst [vmem:[#allocation39_spill] sm:$0xff] %v8030_v25  ;;  %6103 = vmatmul.msk.f32.gmra.mxu0 %vm279_vm1, %v8028_v35  ;;  %v8114_v6 = vld [vmem:[#allocation2 + $0x112] sm:$0xff] }
 0x356   : > { %v3376_v58 = vpop.f32.mrf.mxu2  ;;  %9190 = vst [vmem:[#allocation4_spill] sm:$0xff] %v8057_v48 }
 0x357   : > { %v3622_v21 = vpop.f32.mrf.mxu3  ;;  %v3377_v14 = vadd.f32 %v3376_v58, %v7698_v1  ;;  %9199 = vst [vmem:[#allocation41_spill] sm:$0xff] %v8114_v6 }
 0x358   : > { %v8036_v62 = vpop.f32.mrf.mxu1 }
 0x359   : > { %v3714_v36 = vadd.f32 %v3622_v21, %v3377_v14  ;;  %v3906_v38 = vpop.f32.mrf.mxu0 }
 0x35b   : > { %6035 = vmatmul.msk.f32.gmra.mxu2 %vm279_vm1, %v7996_v5  ;;  %v8048_v0 = vadd.f32 %v3900_v32, %v3714_v36  ;;  %v8063_v32 = vld [vmem:[#allocation2 + $0x39] sm:$0xff]  ;;  %v8065_v36 = vld [vmem:[#allocation2 + $0x110] sm:$0xff] }
 0x35c   : > { %6069 = vmatmul.msk.f32.gmra.mxu3 %vm279_vm1, %v8038_v29  ;;  %6120 = vmatmul.msk.f32.gmra.mxu1 %vm279_vm1, %v8044_v31  ;;  %9191 = vst [vmem:[#allocation5_spill] sm:$0xff] %v8065_v36  ;;  %v8076_v5 = vld [vmem:[#allocation2 + $0xfa] sm:$0xff] }
 0x35d   : > { %9189 = vst [vmem:[#allocation3_spill] sm:$0xff] %v8048_v0  ;;  %6104 = vmatmul.msk.f32.gmra.mxu0 %vm279_vm1, %v8046_v28 }
 0x35e   : > { %v3379_v1 = vpop.f32.mrf.mxu2  ;;  %9193 = vst [vmem:[#allocation7_spill] sm:$0xff] %v8076_v5 }
 0x35f   : > { %v3625_v58 = vpop.f32.mrf.mxu3  ;;  %v3380_v21 = vadd.f32 %v3379_v1, %v7718_v24 }
 0x360   : > { %v8055_v25 = vpop.f32.mrf.mxu1 }
 0x361   : > { %v3715_v14 = vadd.f32 %v3625_v58, %v3380_v21  ;;  %v3909_v29 = vpop.f32.mrf.mxu0 }
 0x363   : > { %6036 = vmatmul.msk.f32.gmra.mxu2 %vm279_vm1, %v8012_v49  ;;  %v8067_v0 = vadd.f32 %v3903_v7, %v3715_v14  ;;  %v8082_v7 = vld [vmem:[#allocation2 + $0x49] sm:$0xff]  ;;  %v8084_v14 = vld [vmem:[#allocation2 + $0x120] sm:$0xff] }
 0x364   : > { %6070 = vmatmul.msk.f32.gmra.mxu3 %vm279_vm1, %v8057_v48  ;;  %6121 = vmatmul.msk.f32.gmra.mxu1 %vm279_vm1, %v8063_v32  ;;  %9194 = vst [vmem:[#allocation8_spill] sm:$0xff] %v8084_v14 }
 0x365   : > { %9192 = vst [vmem:[#allocation6_spill] sm:$0xff] %v8067_v0  ;;  %6105 = vmatmul.msk.f32.gmra.mxu0 %vm279_vm1, %v8065_v36 }
 0x366   : > { %v3382_v24 = vpop.f32.mrf.mxu2 }
 0x367   : > { %v3628_v1 = vpop.f32.mrf.mxu3  ;;  %v3383_v58 = vadd.f32 %v3382_v24, %v7738_v45 }
 0x368   : > { %v8074_v49 = vpop.f32.mrf.mxu1 }
 0x369   : > { %v3716_v21 = vadd.f32 %v3628_v1, %v3383_v58  ;;  %v3912_v48 = vpop.f32.mrf.mxu0 }
 0x36b   : > { %6037 = vmatmul.msk.f32.gmra.mxu2 %vm279_vm1, %v8028_v35  ;;  %v8086_v0 = vadd.f32 %v3906_v38, %v3716_v21  ;;  %v8101_v38 = vld [vmem:[#allocation2 + $0x51] sm:$0xff]  ;;  %v8103_v21 = vld [vmem:[#allocation2 + $0x128] sm:$0xff] }
 0x36c   : > { %6071 = vmatmul.msk.f32.gmra.mxu3 %vm279_vm1, %v8076_v5  ;;  %6122 = vmatmul.msk.f32.gmra.mxu1 %vm279_vm1, %v8082_v7  ;;  %9197 = vst [vmem:[#allocation11_spill] sm:$0xff] %v8103_v21 }
 0x36d   : > { %9195 = vst [vmem:[#allocation9_spill] sm:$0xff] %v8086_v0  ;;  %6106 = vmatmul.msk.f32.gmra.mxu0 %vm279_vm1, %v8084_v14 }
 0x36e   : > { %v3385_v45 = vpop.f32.mrf.mxu2 }
 0x36f   : > { %v3631_v24 = vpop.f32.mrf.mxu3  ;;  %v3386_v1 = vadd.f32 %v3385_v45, %v7759_v61 }
 0x370   : > { %v8093_v35 = vpop.f32.mrf.mxu1 }
 0x371   : > { %v3717_v58 = vadd.f32 %v3631_v24, %v3386_v1  ;;  %v3915_v5 = vpop.f32.mrf.mxu0 }
 0x373   : > { %6038 = vmatmul.msk.f32.gmra.mxu2 %vm279_vm1, %v8046_v28  ;;  %v8105_v0 = vadd.f32 %v3909_v29, %v3717_v58  ;;  %v8120_v29 = vld [vmem:[#allocation2 + $0x61] sm:$0xff]  ;;  %v8122_v58 = vld [vmem:[#allocation2 + $0x138] sm:$0xff] }
 0x374   : > { %6072 = vmatmul.msk.f32.gmra.mxu3 %vm279_vm1, %v8095_v4  ;;  %6123 = vmatmul.msk.f32.gmra.mxu1 %vm279_vm1, %v8101_v38  ;;  %9200 = vst [vmem:[#allocation16_spill] sm:$0xff] %v8122_v58 }
 0x375   : > { %9198 = vst [vmem:[#allocation14_spill] sm:$0xff] %v8105_v0  ;;  %6107 = vmatmul.msk.f32.gmra.mxu0 %vm279_vm1, %v8103_v21 }
 0x376   : > { %v3388_v61 = vpop.f32.mrf.mxu2 }
 0x377   : > { %v3634_v45 = vpop.f32.mrf.mxu3  ;;  %v3389_v24 = vadd.f32 %v3388_v61, %v7780_v17 }
 0x378   : > { %v8112_v28 = vpop.f32.mrf.mxu1 }
 0x379   : > { %v3718_v1 = vadd.f32 %v3634_v45, %v3389_v24  ;;  %v3918_v4 = vpop.f32.mrf.mxu0 }
 0x37b   : > { %6039 = vmatmul.msk.f32.gmra.mxu2 %vm279_vm1, %v8065_v36  ;;  %v8124_v0 = vadd.f32 %v3912_v48, %v3718_v1  ;;  %v8139_v48 = vld [vmem:[#allocation2 + $0x69] sm:$0xff]  ;;  %v8141_v1 = vld [vmem:[#allocation2 + $0x140] sm:$0xff] }
 0x37c   : > { %6073 = vmatmul.msk.f32.gmra.mxu3 %vm279_vm1, %v8114_v6  ;;  %6124 = vmatmul.msk.f32.gmra.mxu1 %vm279_vm1, %v8120_v29  ;;  %9203 = vst [vmem:[#allocation46_spill] sm:$0xff] %v8141_v1 }
 0x37d   : > { %9201 = vst [vmem:[#allocation44_spill] sm:$0xff] %v8124_v0  ;;  %6108 = vmatmul.msk.f32.gmra.mxu0 %vm279_vm1, %v8122_v58 }
 0x37e   : > { %v3391_v17 = vpop.f32.mrf.mxu2 }
 0x37f   : > { %v3637_v61 = vpop.f32.mrf.mxu3  ;;  %v3392_v45 = vadd.f32 %v3391_v17, %v7801_v19 }
 0x380   : > { %v8131_v36 = vpop.f32.mrf.mxu1 }
 0x381   : > { %v3719_v24 = vadd.f32 %v3637_v61, %v3392_v45  ;;  %v3921_v6 = vpop.f32.mrf.mxu0 }
 0x383   : > { %6040 = vmatmul.msk.f32.gmra.mxu2 %vm279_vm1, %v8084_v14  ;;  %v8143_v0 = vadd.f32 %v3915_v5, %v3719_v24  ;;  %v8158_v5 = vld [vmem:[#allocation2 + $0x79] sm:$0xff]  ;;  %v8160_v24 = vld [vmem:[#allocation2 + $0x150] sm:$0xff] }
 0x384   : > { %6074 = vmatmul.msk.f32.gmra.mxu3 %vm279_vm1, %v8133_v43  ;;  %6125 = vmatmul.msk.f32.gmra.mxu1 %vm279_vm1, %v8139_v48  ;;  %9206 = vst [vmem:[#allocation49_spill] sm:$0xff] %v8160_v24 }
 0x385   : > { %9204 = vst [vmem:[#allocation47_spill] sm:$0xff] %v8143_v0  ;;  %6109 = vmatmul.msk.f32.gmra.mxu0 %vm279_vm1, %v8141_v1 }
 0x386   : > { %v3394_v19 = vpop.f32.mrf.mxu2 }
 0x387   : > { %v3640_v17 = vpop.f32.mrf.mxu3  ;;  %v3395_v61 = vadd.f32 %v3394_v19, %v7822_v37 }
 0x388   : > { %v8150_v14 = vpop.f32.mrf.mxu1 }
 0x389   : > { %v3720_v45 = vadd.f32 %v3640_v17, %v3395_v61  ;;  %v3924_v43 = vpop.f32.mrf.mxu0 }
 0x38b   : > { %6041 = vmatmul.msk.f32.gmra.mxu2 %vm279_vm1, %v8103_v21  ;;  %v8162_v0 = vadd.f32 %v3918_v4, %v3720_v45  ;;  %v8177_v4 = vld [vmem:[#allocation2 + $0x81] sm:$0xff]  ;;  %v8179_v45 = vld [vmem:[#allocation2 + $0x158] sm:$0xff] }
 0x38c   : > { %6075 = vmatmul.msk.f32.gmra.mxu3 %vm279_vm1, %v8152_v50  ;;  %6126 = vmatmul.msk.f32.gmra.mxu1 %vm279_vm1, %v8158_v5  ;;  %9210 = vst [vmem:[#allocation53_spill] sm:$0xff] %v8179_v45 }
 0x38d   : > { %9207 = vst [vmem:[#allocation50_spill] sm:$0xff] %v8162_v0  ;;  %6110 = vmatmul.msk.f32.gmra.mxu0 %vm279_vm1, %v8160_v24 }
 0x38e   : > { %v3397_v37 = vpop.f32.mrf.mxu2 }
 0x38f   : > { %v3643_v19 = vpop.f32.mrf.mxu3  ;;  %v3398_v17 = vadd.f32 %v3397_v37, %v7843_v27 }
 0x390   : > { %v8169_v21 = vpop.f32.mrf.mxu1 }
 0x391   : > { %v3721_v61 = vadd.f32 %v3643_v19, %v3398_v17  ;;  %9208 = vst [vmem:[#allocation51_spill] sm:$0xff] %v8169_v21  ;;  %v3927_v50 = vpop.f32.mrf.mxu0  ;;  %v8190_v21 = vld [vmem:[#allocation2 + $0x142] sm:$0xff] }
 0x392   : > { %9213 = vst [vmem:[#allocation56_spill] sm:$0xff] %v8190_v21 }
 0x393   : > { %6042 = vmatmul.msk.f32.gmra.mxu2 %vm279_vm1, %v8122_v58  ;;  %v8181_v0 = vadd.f32 %v3921_v6, %v3721_v61  ;;  %v8196_v6 = vld [vmem:[#allocation2 + $0x91] sm:$0xff]  ;;  %v8198_v61 = vld [vmem:[#allocation2 + $0x168] sm:$0xff] }
 0x394   : > { %6076 = vmatmul.msk.f32.gmra.mxu3 %vm279_vm1, %v8171_v44  ;;  %6127 = vmatmul.msk.f32.gmra.mxu1 %vm279_vm1, %v8177_v4 }
 0x395   : > { %9211 = vst [vmem:[#allocation54_spill] sm:$0xff] %v8181_v0  ;;  %6111 = vmatmul.msk.f32.gmra.mxu0 %vm279_vm1, %v8179_v45 }
 0x396   : > { %v3400_v27 = vpop.f32.mrf.mxu2 }
 0x397   : > { %v3646_v37 = vpop.f32.mrf.mxu3  ;;  %v3401_v19 = vadd.f32 %v3400_v27, %v7864_v26 }
 0x399   : > { %v3722_v17 = vadd.f32 %v3646_v37, %v3401_v19  ;;  %v8188_v58 = vpop.f32.mrf.mxu1 }
 0x39a   : > { %9212 = vst [vmem:[#allocation55_spill] sm:$0xff] %v8188_v58  ;;  %v3930_v44 = vpop.f32.mrf.mxu0  ;;  %v8209_v58 = vld [vmem:[#allocation2 + $0x152] sm:$0xff] }
 0x39b   : > { %6043 = vmatmul.msk.f32.gmra.mxu2 %vm279_vm1, %v8141_v1  ;;  %v8200_v0 = vadd.f32 %v3924_v43, %v3722_v17  ;;  %9216 = vst [vmem:[#allocation59_spill] sm:$0xff] %v8209_v58  ;;  %v8215_v43 = vld [vmem:[#allocation2 + $0x99] sm:$0xff]  ;;  %v8217_v17 = vld [vmem:[#allocation2 + $0x170] sm:$0xff] }
 0x39c   : > { %6077 = vmatmul.msk.f32.gmra.mxu3 %vm279_vm1, %v8190_v21  ;;  %6128 = vmatmul.msk.f32.gmra.mxu1 %vm279_vm1, %v8196_v6 }
 0x39d   : > { %9214 = vst [vmem:[#allocation57_spill] sm:$0xff] %v8200_v0  ;;  %6112 = vmatmul.msk.f32.gmra.mxu0 %vm279_vm1, %v8198_v61 }
 0x39e   : > { %v3403_v26 = vpop.f32.mrf.mxu2 }
 0x39f   : > { %v3649_v27 = vpop.f32.mrf.mxu3  ;;  %v3404_v37 = vadd.f32 %v3403_v26, %v7885_v53 }
 0x3a1   : > { %v3723_v19 = vadd.f32 %v3649_v27, %v3404_v37  ;;  %v8207_v1 = vpop.f32.mrf.mxu1 }
 0x3a2   : > { %9215 = vst [vmem:[#allocation58_spill] sm:$0xff] %v8207_v1  ;;  %v3933_v21 = vpop.f32.mrf.mxu0  ;;  %v8228_v1 = vld [vmem:[#allocation2 + $0x15a] sm:$0xff] }
 0x3a3   : > { %6044 = vmatmul.msk.f32.gmra.mxu2 %vm279_vm1, %v8160_v24  ;;  %v8219_v0 = vadd.f32 %v3927_v50, %v3723_v19  ;;  %9219 = vst [vmem:[#allocation62_spill] sm:$0xff] %v8228_v1  ;;  %v8234_v50 = vld [vmem:[#allocation2 + $0x180] sm:$0xff] }
 0x3a4   : > { %6078 = vmatmul.msk.f32.gmra.mxu3 %vm279_vm1, %v8209_v58  ;;  %6129 = vmatmul.msk.f32.gmra.mxu1 %vm279_vm1, %v8215_v43  ;;  %9220 = vst [vmem:[#allocation63_spill] sm:$0xff] %v8234_v50 }
 0x3a5   : > { %9217 = vst [vmem:[#allocation60_spill] sm:$0xff] %v8219_v0  ;;  %6113 = vmatmul.msk.f32.gmra.mxu0 %vm279_vm1, %v8217_v17  ;;  %v6307_v0 = vld [vmem:[#allocation2 + $0xa9] sm:$0xff] }
 0x3a6   : > { %v3406_v53 = vpop.f32.mrf.mxu2 }
 0x3a7   : > { %v3652_v26 = vpop.f32.mrf.mxu3  ;;  %v3407_v27 = vadd.f32 %v3406_v53, %v7906_v39 }
 0x3a9   : > { %v3724_v37 = vadd.f32 %v3652_v26, %v3407_v27  ;;  %v8226_v24 = vpop.f32.mrf.mxu1 }
 0x3aa   : > { %9218 = vst [vmem:[#allocation61_spill] sm:$0xff] %v8226_v24  ;;  %v3936_v58 = vpop.f32.mrf.mxu0 }
 0x3ab   : > { %6045 = vmatmul.msk.f32.gmra.mxu2 %vm279_vm1, %v8179_v45  ;;  %v8236_v19 = vadd.f32 %v3930_v44, %v3724_v37  ;;  %v8250_v44 = vld [vmem:[#allocation2 + $0x188] sm:$0xff]  ;;  %v6308_v37 = vld [vmem:[#allocation2 + $0xb1] sm:$0xff] }
 0x3ac   : > { %6079 = vmatmul.msk.f32.gmra.mxu3 %vm279_vm1, %v8228_v1  ;;  %6130 = vmatmul.msk.f32.gmra.mxu1 %vm279_vm1, %v6307_v0  ;;  %v8260_v1 = vld [vmem:[#allocation2 + $0x172] sm:$0xff] }
 0x3ad   : > { %9221 = vst [vmem:[#allocation64_spill] sm:$0xff] %v8236_v19  ;;  %6114 = vmatmul.msk.f32.gmra.mxu0 %vm279_vm1, %v8234_v50 }
 0x3ae   : > { %v3409_v39 = vpop.f32.mrf.mxu2 }
 0x3af   : > { %v3655_v53 = vpop.f32.mrf.mxu3  ;;  %v3410_v26 = vadd.f32 %v3409_v39, %v7947_v56 }
 0x3b1   : > { %v3725_v27 = vadd.f32 %v3655_v53, %v3410_v26  ;;  %v8242_v24 = vpop.f32.mrf.mxu1 }
 0x3b2   : > { %v3939_v45 = vpop.f32.mrf.mxu0 }
 0x3b3   : > { %6046 = vmatmul.msk.f32.gmra.mxu2 %vm279_vm1, %v8198_v61  ;;  %v8252_v0 = vadd.f32 %v3933_v21, %v3725_v27 }
 0x3b4   : > { %6080 = vmatmul.msk.f32.gmra.mxu3 %vm279_vm1, %v8244_v2  ;;  %6131 = vmatmul.msk.f32.gmra.mxu1 %vm279_vm1, %v6308_v37 }
 0x3b5   : > { %9222 = vst [vmem:[#allocation65_spill] sm:$0xff] %v8252_v0  ;;  %6115 = vmatmul.msk.f32.gmra.mxu0 %vm279_vm1, %v8250_v44  ;;  %v4578_v0 = vld [vmem:[#allocation2 + $0x30] sm:$0xff] }
 0x3b6   : > { %v3412_v56 = vpop.f32.mrf.mxu2 }
 0x3b7   : > { %v3658_v39 = vpop.f32.mrf.mxu3  ;;  %v3413_v53 = vadd.f32 %v3412_v56, %v7966_v9 }
 0x3b9   : > { %v3726_v26 = vadd.f32 %v3658_v39, %v3413_v53  ;;  %v8258_v19 = vpop.f32.mrf.mxu1 }
 0x3ba   : > { %v3942_v50 = vpop.f32.mrf.mxu0 }
 0x3bb   : > { %6047 = vmatmul.msk.f32.gmra.mxu2 %vm279_vm1, %v8217_v17  ;;  %v8266_v21 = vadd.f32 %v3936_v58, %v3726_v26 }
 0x3bc   : > { %6081 = vmatmul.msk.f32.gmra.mxu3 %vm279_vm1, %v8260_v1  ;;  %6132 = vmatmul.msk.f32.gmra.mxu1 %vm279_vm1, %v7666_v22 }
 0x3bd   : > { %6220 = vmatmul.msk.f32.vlgmr.msra.gmra.mxu0 %vm279_vm1, %v8044_v31 }
 0x3be   : > { %v3415_v9 = vpop.f32.mrf.mxu2 }
 0x3bf   : > { %v3661_v27 = vpop.f32.mrf.mxu3  ;;  %v3416_v37 = vadd.f32 %v3415_v9, %v7985_v63 }
 0x3c1   : > { %v3727_v56 = vadd.f32 %v3661_v27, %v3416_v37  ;;  %v8273_v39 = vpop.f32.mrf.mxu1 }
 0x3c2   : > { %v3945_v53 = vpop.f32.mrf.mxu0 }
 0x3c3   : > { %6152 = vmatmul.msk.f32.vlgmr.msra.gmra.mxu2 %vm279_vm1, %v7682_v33  ;;  %v8278_v58 = vadd.f32 %v3939_v45, %v3727_v56 }
 0x3c4   : > { %6186 = vmatmul.msk.f32.vlgmr.msra.gmra.mxu3 %vm279_vm1, %v4578_v0  ;;  %6133 = vmatmul.msk.f32.gmra.mxu1 %vm279_vm1, %v7680_v52 }
 0x3c5   : > { %6221 = vmatmul.msk.f32.gmra.mxu0 %vm279_vm1, %v8063_v32 }
 0x3c6   : > { %v3418_v22 = vpop.f32.mrf.mxu2 }
 0x3c7   : > { %v3664_v63 = vpop.f32.mrf.mxu3  ;;  %v3419_v31 = vadd.f32 %v3418_v22, %v8003_v54 }
 0x3c9   : > { %v3728_v26 = vadd.f32 %v3664_v63, %v3419_v31  ;;  %v8285_v9 = vpop.f32.mrf.mxu1 }
 0x3ca   : > { %v3948_v27 = vpop.f32.mrf.mxu0 }
 0x3cb   : > { %6153 = vmatmul.msk.f32.gmra.mxu2 %vm279_vm1, %v7702_v46  ;;  %v8291_v33 = vadd.f32 %v3942_v50, %v3728_v26 }
 0x3cc   : > { %6187 = vmatmul.msk.f32.gmra.mxu3 %vm279_vm1, %v7688_v8  ;;  %6134 = vmatmul.msk.f32.gmra.mxu1 %vm279_vm1, %v7700_v55 }
 0x3cd   : > { %6222 = vmatmul.msk.f32.gmra.mxu0 %vm279_vm1, %v8082_v7 }
 0x3ce   : > { %v3421_v52 = vpop.f32.mrf.mxu2 }
 0x3cf   : > { %v3667_v54 = vpop.f32.mrf.mxu3  ;;  %v3422_v32 = vadd.f32 %v3421_v52, %v8020_v41 }
 0x3d1   : > { %v3729_v45 = vadd.f32 %v3667_v54, %v3422_v32  ;;  %v8298_v0 = vpop.f32.mrf.mxu1 }
 0x3d2   : > { %v3951_v37 = vpop.f32.mrf.mxu0 }
 0x3d3   : > { %6154 = vmatmul.msk.f32.gmra.mxu2 %vm279_vm1, %v7722_v16  ;;  %v8304_v8 = vadd.f32 %v3945_v53, %v3729_v45 }
 0x3d4   : > { %6188 = vmatmul.msk.f32.gmra.mxu3 %vm279_vm1, %v7708_v51  ;;  %6135 = vmatmul.msk.f32.gmra.mxu1 %vm279_vm1, %v7720_v59 }
 0x3d5   : > { %6223 = vmatmul.msk.f32.gmra.mxu0 %vm279_vm1, %v8101_v38 }
 0x3d6   : > { %v3424_v55 = vpop.f32.mrf.mxu2 }
 0x3d7   : > { %v3670_v46 = vpop.f32.mrf.mxu3  ;;  %v3425_v41 = vadd.f32 %v3424_v55, %v8036_v62 }
 0x3d9   : > { %v3730_v7 = vadd.f32 %v3670_v46, %v3425_v41  ;;  %v8311_v50 = vpop.f32.mrf.mxu1 }
 0x3da   : > { %v3954_v56 = vpop.f32.mrf.mxu0 }
 0x3db   : > { %6155 = vmatmul.msk.f32.gmra.mxu2 %vm279_vm1, %v7742_v40  ;;  %v8317_v51 = vadd.f32 %v3948_v27, %v3730_v7  ;;  %v9225_v7 = vld [vmem:[#allocation20_spill] sm:$0xff] }
 0x3dc   : > { %6189 = vmatmul.msk.f32.gmra.mxu3 %vm279_vm1, %v7728_v11  ;;  %6136 = vmatmul.msk.f32.gmra.mxu1 %vm279_vm1, %v7740_v34 }
 0x3dd   : > { %6224 = vmatmul.msk.f32.gmra.mxu0 %vm279_vm1, %v8120_v29 }
 0x3de   : > { %v3427_v59 = vpop.f32.mrf.mxu2 }
 0x3df   : > { %v3673_v16 = vpop.f32.mrf.mxu3  ;;  %v3428_v62 = vadd.f32 %v3427_v59, %v8055_v25 }
 0x3e1   : > { %v3731_v38 = vadd.f32 %v3673_v16, %v3428_v62  ;;  %v8324_v53 = vpop.f32.mrf.mxu1  ;;  %v9227_v16 = vld [vmem:[#allocation15_spill] sm:$0xff] }
 0x3e2   : > { %v3957_v22 = vpop.f32.mrf.mxu0  ;;  %v9228_v62 = vld [vmem:[#allocation51_spill] sm:$0xff] }
 0x3e3   : > { %6156 = vmatmul.msk.f32.gmra.mxu2 %vm279_vm1, %v7763_v60  ;;  %v8330_v11 = vadd.f32 %v3951_v37, %v3731_v38 }
 0x3e4   : > { %6190 = vmatmul.msk.f32.gmra.mxu3 %vm279_vm1, %v7749_v42  ;;  %6137 = vmatmul.msk.f32.gmra.mxu1 %vm279_vm1, %v7761_v15 }
 0x3e5   : > { %6225 = vmatmul.msk.f32.gmra.mxu0 %vm279_vm1, %v8139_v48 }
 0x3e6   : > { %v3430_v34 = vpop.f32.mrf.mxu2 }
 0x3e7   : > { %v3676_v40 = vpop.f32.mrf.mxu3  ;;  %v3431_v25 = vadd.f32 %v3430_v34, %v8074_v49 }
 0x3e9   : > { %v3732_v29 = vadd.f32 %v3676_v40, %v3431_v25  ;;  %v8337_v63 = vpop.f32.mrf.mxu1  ;;  %v9229_v25 = vld [vmem:[#allocation19_spill] sm:$0xff] }
 0x3ea   : > { %v3960_v31 = vpop.f32.mrf.mxu0 }
 0x3eb   : > { %6157 = vmatmul.msk.f32.gmra.mxu2 %vm279_vm1, %v7784_v20  ;;  %v8343_v42 = vadd.f32 %v3954_v56, %v3732_v29  ;;  %v4866_v56 = vld [vmem:[#allocation2 + $0xa9] sm:$0xff]  ;;  %v9230_v29 = vld [vmem:[#allocation17_spill] sm:$0xff] }
 0x3ec   : > { %6191 = vmatmul.msk.f32.gmra.mxu3 %vm279_vm1, %v7770_v10  ;;  %6138 = vmatmul.msk.f32.gmra.mxu1 %vm279_vm1, %v7782_v12 }
 0x3ed   : > { %6226 = vmatmul.msk.f32.gmra.mxu0 %vm279_vm1, %v8158_v5 }
 0x3ee   : > { %v3433_v15 = vpop.f32.mrf.mxu2 }
 0x3ef   : > { %v3679_v60 = vpop.f32.mrf.mxu3  ;;  %v3434_v49 = vadd.f32 %v3433_v15, %v8093_v35 }
 0x3f1   : > { %v3733_v48 = vadd.f32 %v3679_v60, %v3434_v49  ;;  %v8350_v26 = vpop.f32.mrf.mxu1  ;;  %v9231_v60 = vld [vmem:[#allocation22_spill] sm:$0xff] }
 0x3f2   : > { %v3963_v27 = vpop.f32.mrf.mxu0 }
 0x3f3   : > { %6158 = vmatmul.msk.f32.gmra.mxu2 %vm279_vm1, %v7805_v57  ;;  %v8356_v10 = vadd.f32 %v3957_v22, %v3733_v48 }
 0x3f4   : > { %6192 = vmatmul.msk.f32.gmra.mxu3 %vm279_vm1, %v7791_v18  ;;  %6139 = vmatmul.msk.f32.gmra.mxu1 %vm279_vm1, %v7803_v13 }
 0x3f5   : > { %6227 = vmatmul.msk.f32.gmra.mxu0 %vm279_vm1, %v8177_v4 }
 0x3f6   : > { %v3436_v12 = vpop.f32.mrf.mxu2 }
 0x3f7   : > { %v3682_v20 = vpop.f32.mrf.mxu3  ;;  %v3437_v35 = vadd.f32 %v3436_v12, %v8112_v28 }
 0x3f9   : > { %v3734_v5 = vadd.f32 %v3682_v20, %v3437_v35  ;;  %v8363_v52 = vpop.f32.mrf.mxu1 }
 0x3fa   : > { %v3966_v54 = vpop.f32.mrf.mxu0 }
 0x3fb   : > { %6159 = vmatmul.msk.f32.gmra.mxu2 %vm279_vm1, %v7826_v3  ;;  %v8369_v18 = vadd.f32 %v3960_v31, %v3734_v5  ;;  %v9223_v3 = vld [vmem:[#allocation13_spill] sm:$0xff]  ;;  %v4867_v31 = vld [vmem:[#allocation2 + $0xb1] sm:$0xff] }
 0x3fc   : > { %6193 = vmatmul.msk.f32.gmra.mxu3 %vm279_vm1, %v7812_v47  ;;  %6140 = vmatmul.msk.f32.gmra.mxu1 %vm279_vm1, %v7824_v23  ;;  %v9224_v23 = vld [vmem:[#allocation12_spill] sm:$0xff] }
 0x3fd   : > { %6228 = vmatmul.msk.f32.gmra.mxu0 %vm279_vm1, %v8196_v6 }
 0x3fe   : > { %v3439_v13 = vpop.f32.mrf.mxu2 }
 0x3ff   : > { %v3685_v57 = vpop.f32.mrf.mxu3  ;;  %v3440_v28 = vadd.f32 %v3439_v13, %v8131_v36  ;;  %v9234_v13 = vld [vmem:[#allocation24_spill] sm:$0xff] }
 0x401   : > { %v3735_v4 = vadd.f32 %v3685_v57, %v3440_v28  ;;  %v8376_v32 = vpop.f32.mrf.mxu1  ;;  %v4868_v57 = vld [vmem:[#allocation2 + $0xc1] sm:$0xff] }
 0x402   : > { %v3969_v45 = vpop.f32.mrf.mxu0 }
 0x403   : > { %6160 = vmatmul.msk.f32.gmra.mxu2 %vm279_vm1, %v9223_v3  ;;  %v8382_v47 = vadd.f32 %v3963_v27, %v3735_v4  ;;  %v9232_v27 = vld [vmem:[#allocation55_spill] sm:$0xff]  ;;  %v9235_v4 = vld [vmem:[#allocation21_spill] sm:$0xff] }
 0x404   : > { %6194 = vmatmul.msk.f32.gmra.mxu3 %vm279_vm1, %v7833_v30  ;;  %6141 = vmatmul.msk.f32.gmra.mxu1 %vm279_vm1, %v9224_v23  ;;  %v9226_v30 = vld [vmem:[#allocation18_spill] sm:$0xff] }
 0x405   : > { %6229 = vmatmul.msk.f32.gmra.mxu0 %vm279_vm1, %v8215_v43  ;;  %v9236_v23 = vld [vmem:[#allocation58_spill] sm:$0xff] }
 0x406   : > { %v3442_v6 = vpop.f32.mrf.mxu2 }
 0x407   : > { %v3688_v36 = vpop.f32.mrf.mxu3  ;;  %v3443_v37 = vadd.f32 %v3442_v6, %v8150_v14 }
 0x409   : > { %v3736_v55 = vadd.f32 %v3688_v36, %v3443_v37  ;;  %v8389_v46 = vpop.f32.mrf.mxu1 }
 0x40a   : > { %v3972_v41 = vpop.f32.mrf.mxu0 }
 0x40b   : > { %6161 = vmatmul.msk.f32.gmra.mxu2 %vm279_vm1, %v9225_v7  ;;  %v8395_v59 = vadd.f32 %v3966_v54, %v3736_v55  ;;  %v9233_v54 = vld [vmem:[#allocation26_spill] sm:$0xff]  ;;  %v9237_v7 = vld [vmem:[#allocation25_spill] sm:$0xff] }
 0x40c   : > { %6195 = vmatmul.msk.f32.gmra.mxu3 %vm279_vm1, %v9226_v30  ;;  %6142 = vmatmul.msk.f32.gmra.mxu1 %vm279_vm1, %v9227_v16  ;;  %v9238_v30 = vld [vmem:[#allocation23_spill] sm:$0xff]  ;;  %v9240_v16 = vld [vmem:[#allocation28_spill] sm:$0xff] }
 0x40d   : > { %6230 = vmatmul.msk.f32.gmra.mxu0 %vm279_vm1, %v4866_v56 }
 0x40e   : > { %v3445_v43 = vpop.f32.mrf.mxu2 }
 0x40f   : > { %v3691_v14 = vpop.f32.mrf.mxu3  ;;  %v3446_v38 = vadd.f32 %v3445_v43, %v9228_v62  ;;  %v9241_v62 = vld [vmem:[#allocation61_spill] sm:$0xff] }
 0x411   : > { %v3737_v22 = vadd.f32 %v3691_v14, %v3446_v38  ;;  %v8401_v34 = vpop.f32.mrf.mxu1 }
 0x412   : > { %v3975_v40 = vpop.f32.mrf.mxu0 }
 0x413   : > { %6162 = vmatmul.msk.f32.gmra.mxu2 %vm279_vm1, %v9229_v25  ;;  %v8407_v15 = vadd.f32 %v3969_v45, %v3737_v22 }
 0x414   : > { %6196 = vmatmul.msk.f32.gmra.mxu3 %vm279_vm1, %v9230_v29  ;;  %6143 = vmatmul.msk.f32.gmra.mxu1 %vm279_vm1, %v9231_v60  ;;  %v9243_v60 = vld [vmem:[#allocation30_spill] sm:$0xff] }
 0x415   : > { %6231 = vmatmul.msk.f32.gmra.mxu0 %vm279_vm1, %v4867_v31  ;;  %v9242_v31 = vld [vmem:[#allocation32_spill] sm:$0xff] }
 0x416   : > { %v3448_v49 = vpop.f32.mrf.mxu2 }
 0x417   : > { %v3694_v48 = vpop.f32.mrf.mxu3  ;;  %v3449_v12 = vadd.f32 %v3448_v49, %v9232_v27 }
 0x419   : > { %v3738_v20 = vadd.f32 %v3694_v48, %v3449_v12  ;;  %v8413_v35 = vpop.f32.mrf.mxu1  ;;  %v9245_v48 = vld [vmem:[#allocation27_spill] sm:$0xff] }
 0x41a   : > { %v3978_v5 = vpop.f32.mrf.mxu0 }
 0x41b   : > { %6163 = vmatmul.msk.f32.gmra.mxu2 %vm279_vm1, %v9233_v54  ;;  %v8419_v28 = vadd.f32 %v3972_v41, %v3738_v20  ;;  %v4869_v41 = vld [vmem:[#allocation2 + $0xc9] sm:$0xff] }
 0x41c   : > { %6197 = vmatmul.msk.f32.gmra.mxu3 %vm279_vm1, %v9234_v13  ;;  %6144 = vmatmul.msk.f32.gmra.mxu1 %vm279_vm1, %v9235_v4  ;;  %v9246_v4 = vld [vmem:[#allocation31_spill] sm:$0xff] }
 0x41d   : > { %6232 = vmatmul.msk.f32.gmra.mxu0 %vm279_vm1, %v4868_v57 }
 0x41e   : > { %v3451_v45 = vpop.f32.mrf.mxu2 }
 0x41f   : > { %v3697_v3 = vpop.f32.mrf.mxu3  ;;  %v3452_v6 = vadd.f32 %v3451_v45, %v9236_v23  ;;  %v9247_v45 = vld [vmem:[#allocation29_spill] sm:$0xff]  ;;  %v9249_v23 = vld [vmem:[#allocation34_spill] sm:$0xff] }
 0x421   : > { %v3739_v36 = vadd.f32 %v3697_v3, %v3452_v6  ;;  %v8425_v37 = vpop.f32.mrf.mxu1 }
 0x422   : > { %v3981_v55 = vpop.f32.mrf.mxu0 }
 0x423   : > { %6164 = vmatmul.msk.f32.gmra.mxu2 %vm279_vm1, %v9237_v7  ;;  %v8431_v56 = vadd.f32 %v3975_v40, %v3739_v36  ;;  %v4870_v40 = vld [vmem:[#allocation2 + $0xd9] sm:$0xff] }
 0x424   : > { %6198 = vmatmul.msk.f32.gmra.mxu3 %vm279_vm1, %v9238_v30  ;;  %6145 = vmatmul.msk.f32.gmra.mxu1 %vm279_vm1, %v9240_v16  ;;  %v8463_v16 = vld [vmem:[#allocation2 + $0x181] sm:$0xff] }
 0x425   : > { %9239 = vst [vmem:[#allocation13_spill] sm:$0xff] %v8431_v56  ;;  %6233 = vmatmul.msk.f32.gmra.mxu0 %vm279_vm1, %v4869_v41  ;;  %v5157_v56 = vld [vmem:[#allocation2 + $0x142] sm:$0xff] }
 0x426   : > { %v3454_v43 = vpop.f32.mrf.mxu2 }
 0x427   : > { %v3700_v14 = vpop.f32.mrf.mxu3  ;;  %v3455_v38 = vadd.f32 %v3454_v43, %v9241_v62  ;;  %v9250_v43 = vld [vmem:[#allocation33_spill] sm:$0xff] }
 0x429   : > { %v3740_v22 = vadd.f32 %v3700_v14, %v3455_v38  ;;  %v8437_v25 = vpop.f32.mrf.mxu1  ;;  %v4872_v14 = vld [vmem:[#allocation2 + $0xf1] sm:$0xff] }
 0x42a   : > { %v3984_v29 = vpop.f32.mrf.mxu0 }
 0x42b   : > { %6165 = vmatmul.msk.f32.gmra.mxu2 %vm279_vm1, %v9242_v31  ;;  %v8443_v49 = vadd.f32 %v3978_v5, %v3740_v22  ;;  %v4871_v5 = vld [vmem:[#allocation2 + $0xe1] sm:$0xff] }
 0x42c   : > { %6199 = vmatmul.msk.f32.gmra.mxu3 %vm279_vm1, %v9243_v60  ;;  %6146 = vmatmul.msk.f32.gmra.mxu1 %vm279_vm1, %v9245_v48  ;;  %v9253_v48 = vld [vmem:[#allocation40_spill] sm:$0xff] }
 0x42d   : > { %9244 = vst [vmem:[#allocation12_spill] sm:$0xff] %v8443_v49  ;;  %6234 = vmatmul.msk.f32.gmra.mxu0 %vm279_vm1, %v4870_v40  ;;  %v8477_v40 = vld [vmem:[#allocation2 + $0x189] sm:$0xff]  ;;  %v5156_v49 = vld [vmem:[#allocation2 + $0x13a] sm:$0xff] }
 0x42e   : > { %v3457_v27 = vpop.f32.mrf.mxu2 }
 0x42f   : > { %v3703_v12 = vpop.f32.mrf.mxu3  ;;  %v3458_v20 = vadd.f32 %v3457_v27, %v8242_v24  ;;  %v9254_v27 = vld [vmem:[#allocation38_spill] sm:$0xff] }
 0x431   : > { %v3741_v54 = vadd.f32 %v3703_v12, %v3458_v20  ;;  %v8449_v13 = vpop.f32.mrf.mxu1 }
 0x432   : > { %v3987_v57 = vpop.f32.mrf.mxu0 }
 0x433   : > { %6166 = vmatmul.msk.f32.gmra.mxu2 %vm279_vm1, %v9246_v4  ;;  %v8455_v3 = vadd.f32 %v3981_v55, %v3741_v54  ;;  %v9251_v55 = vld [vmem:[#allocation36_spill] sm:$0xff] }
 0x434   : > { %6200 = vmatmul.msk.f32.gmra.mxu3 %vm279_vm1, %v9247_v45  ;;  %6147 = vmatmul.msk.f32.gmra.mxu1 %vm279_vm1, %v9249_v23 }
 0x435   : > { %9248 = vst [vmem:[#allocation20_spill] sm:$0xff] %v8455_v3  ;;  %6235 = vmatmul.msk.f32.gmra.mxu0 %vm279_vm1, %v4871_v5 }
 0x436   : > { %v3460_v6 = vpop.f32.mrf.mxu2 }
 0x437   : > { %v3706_v24 = vpop.f32.mrf.mxu3  ;;  %v3461_v36 = vadd.f32 %v3460_v6, %v8258_v19 }
 0x439   : > { %v3742_v7 = vadd.f32 %v3706_v24, %v3461_v36  ;;  %v8461_v30 = vpop.f32.mrf.mxu1  ;;  %v9257_v24 = vld [vmem:[#allocation42_spill] sm:$0xff]  ;;  %v5134_v36 = vld [vmem:[#allocation2 + $0x32] sm:$0xff] }
 0x43a   : > { %v5006_v41 = vpop.f32.mrf.mxu0 }
 0x43b   : > { %6167 = vmatmul.msk.f32.gmra.mxu2 %vm279_vm1, %v9250_v43  ;;  %v8469_v62 = vadd.f32 %v3984_v29, %v3742_v7  ;;  %v4873_v29 = vld [vmem:[#allocation2 + $0xf9] sm:$0xff]  ;;  %v4874_v7 = vld [vmem:[#allocation2 + $0x109] sm:$0xff] }
 0x43c   : > { %6201 = vmatmul.msk.f32.gmra.mxu3 %vm279_vm1, %v9251_v55  ;;  %6148 = vmatmul.msk.f32.gmra.mxu1 %vm279_vm1, %v8463_v16 }
 0x43d   : > { %9252 = vst [vmem:[#allocation18_spill] sm:$0xff] %v8469_v62  ;;  %6236 = vmatmul.msk.f32.gmra.mxu0 %vm279_vm1, %v4872_v14 }
 0x43e   : > { %v3463_v19 = vpop.f32.mrf.mxu2 }
 0x43f   : > { %v3709_v38 = vpop.f32.mrf.mxu3  ;;  %v3464_v22 = vadd.f32 %v3463_v19, %v8273_v39  ;;  %v9256_v39 = vld [vmem:[#allocation35_spill] sm:$0xff] }
 0x440   : > { %v4268_v20 = vadd.f32 %v8285_v9, %v9256_v39  ;;  %v9259_v9 = vld [vmem:[#allocation39_spill] sm:$0xff] }
 0x441   : > { %v3743_v31 = vadd.f32 %v3709_v38, %v3464_v22  ;;  %v8475_v60 = vpop.f32.mrf.mxu1  ;;  %v4269_v55 = vadd.f32 %v8298_v0, %v9259_v9  ;;  %v4875_v39 = vld [vmem:[#allocation2 + $0x111] sm:$0xff]  ;;  %v9264_v9 = vld [vmem:[#allocation5_spill] sm:$0xff] }
 0x442   : > { %v5009_v54 = vpop.f32.mrf.mxu0  ;;  %v9262_v0 = vld [vmem:[#allocation3_spill] sm:$0xff] }
 0x443   : > { %6168 = vmatmul.msk.f32.gmra.mxu2 %vm279_vm1, %v9253_v48  ;;  %v8483_v12 = vadd.f32 %v3987_v57, %v3743_v31  ;;  %v9258_v57 = vld [vmem:[#allocation37_spill] sm:$0xff] }
 0x444   : > { %6202 = vmatmul.msk.f32.gmra.mxu3 %vm279_vm1, %v9254_v27  ;;  %6149 = vmatmul.msk.f32.gmra.mxu1 %vm279_vm1, %v8477_v40  ;;  %v9260_v27 = vld [vmem:[#allocation4_spill] sm:$0xff] }
 0x445   : > { %9255 = vst [vmem:[#allocation15_spill] sm:$0xff] %v8483_v12  ;;  %6237 = vmatmul.msk.f32.gmra.mxu0 %vm279_vm1, %v4873_v29  ;;  %v9261_v29 = vld [vmem:[#allocation43_spill] sm:$0xff] }
 0x446   : > { %v4450_v4 = vpop.f32.mrf.mxu2 }
 0x447   : > { %v4728_v45 = vpop.f32.mrf.mxu3  ;;  %v4546_v5 = vadd.f32 %v4450_v4, %v4268_v20  ;;  %v4270_v4 = vadd.f32 %v8311_v50, %v9262_v0  ;;  %v9265_v50 = vld [vmem:[#allocation6_spill] sm:$0xff] }
 0x448   : > { %v9266_v0 = vld [vmem:[#allocation10_spill] sm:$0xff] }
 0x449   : > { %v4824_v23 = vadd.f32 %v4728_v45, %v4546_v5  ;;  %v8490_v6 = vpop.f32.mrf.mxu1 }
 0x44a   : > { %v5012_v38 = vpop.f32.mrf.mxu0 }
 0x44b   : > { %6169 = vmatmul.msk.f32.gmra.mxu2 %vm279_vm1, %v9257_v24  ;;  %v8496_v43 = vadd.f32 %v5006_v41, %v4824_v23  ;;  %v5135_v41 = vld [vmem:[#allocation2 + $0x3a] sm:$0xff] }
 0x44c   : > { %6203 = vmatmul.msk.f32.gmra.mxu3 %vm279_vm1, %v9258_v57  ;;  %6254 = vmatmul.msk.f32.vlgmr.msra.gmra.mxu1 %vm279_vm1, %v5134_v36 }
 0x44d   : > { %6238 = vmatmul.msk.f32.gmra.mxu0 %vm279_vm1, %v4874_v7  ;;  %v9263_v7 = vld [vmem:[#allocation7_spill] sm:$0xff] }
 0x44e   : > { %v4453_v14 = vpop.f32.mrf.mxu2 }
 0x44f   : > { %v4731_v19 = vpop.f32.mrf.mxu3  ;;  %v4547_v22 = vadd.f32 %v4453_v14, %v4269_v55  ;;  %v4876_v55 = vld [vmem:[#allocation2 + $0x121] sm:$0xff] }
 0x451   : > { %v4825_v31 = vadd.f32 %v4731_v19, %v4547_v22  ;;  %v8502_v48 = vpop.f32.mrf.mxu1  ;;  %v4271_v19 = vadd.f32 %v8324_v53, %v9265_v50  ;;  %v9268_v53 = vld [vmem:[#allocation9_spill] sm:$0xff] }
 0x452   : > { %v5015_v24 = vpop.f32.mrf.mxu0  ;;  %v9269_v50 = vld [vmem:[#allocation41_spill] sm:$0xff] }
 0x453   : > { %6170 = vmatmul.msk.f32.gmra.mxu2 %vm279_vm1, %v9260_v27  ;;  %v8508_v20 = vadd.f32 %v5009_v54, %v4825_v31  ;;  %v5136_v54 = vld [vmem:[#allocation2 + $0x4a] sm:$0xff] }
 0x454   : > { %6204 = vmatmul.msk.f32.gmra.mxu3 %vm279_vm1, %v9261_v29  ;;  %6255 = vmatmul.msk.f32.gmra.mxu1 %vm279_vm1, %v5135_v41 }
 0x455   : > { %6239 = vmatmul.msk.f32.gmra.mxu0 %vm279_vm1, %v4875_v39 }
 0x456   : > { %v4456_v45 = vpop.f32.mrf.mxu2 }
 0x457   : > { %v4734_v5 = vpop.f32.mrf.mxu3  ;;  %v4548_v23 = vadd.f32 %v4456_v45, %v4270_v4  ;;  %v9267_v4 = vld [vmem:[#allocation8_spill] sm:$0xff]  ;;  %v4877_v45 = vld [vmem:[#allocation2 + $0x129] sm:$0xff] }
 0x459   : > { %v4826_v57 = vadd.f32 %v4734_v5, %v4548_v23  ;;  %v8514_v36 = vpop.f32.mrf.mxu1  ;;  %v4272_v23 = vadd.f32 %v8337_v63, %v9268_v53  ;;  %v9271_v63 = vld [vmem:[#allocation14_spill] sm:$0xff] }
 0x45a   : > { %v5018_v39 = vpop.f32.mrf.mxu0 }
 0x45b   : > { %6171 = vmatmul.msk.f32.gmra.mxu2 %vm279_vm1, %v9263_v7  ;;  %v8520_v14 = vadd.f32 %v5012_v38, %v4826_v57  ;;  %v5137_v38 = vld [vmem:[#allocation2 + $0x52] sm:$0xff] }
 0x45c   : > { %6205 = vmatmul.msk.f32.gmra.mxu3 %vm279_vm1, %v9264_v9  ;;  %6256 = vmatmul.msk.f32.gmra.mxu1 %vm279_vm1, %v5136_v54 }
 0x45d   : > { %6240 = vmatmul.msk.f32.gmra.mxu0 %vm279_vm1, %v4876_v55 }
 0x45e   : > { %v4459_v22 = vpop.f32.mrf.mxu2 }
 0x45f   : > { %v4737_v31 = vpop.f32.mrf.mxu3  ;;  %v4549_v27 = vadd.f32 %v4459_v22, %v4271_v19  ;;  %v9270_v19 = vld [vmem:[#allocation11_spill] sm:$0xff]  ;;  %v4878_v22 = vld [vmem:[#allocation2 + $0x139] sm:$0xff] }
 0x461   : > { %v4827_v29 = vadd.f32 %v4737_v31, %v4549_v27  ;;  %v8526_v41 = vpop.f32.mrf.mxu1  ;;  %v4273_v27 = vadd.f32 %v8350_v26, %v9271_v63  ;;  %v9274_v26 = vld [vmem:[#allocation44_spill] sm:$0xff] }
 0x463   : > { %6172 = vmatmul.msk.f32.gmra.mxu2 %vm279_vm1, %v9266_v0  ;;  %v8532_v5 = vadd.f32 %v5015_v24, %v4827_v29  ;;  %v5138_v24 = vld [vmem:[#allocation2 + $0x62] sm:$0xff]  ;;  %v5021_v29 = vpop.f32.mrf.mxu0 }
 0x464   : > { %6206 = vmatmul.msk.f32.gmra.mxu3 %vm279_vm1, %v9267_v4  ;;  %6257 = vmatmul.msk.f32.gmra.mxu1 %vm279_vm1, %v5137_v38 }
 0x465   : > { %6241 = vmatmul.msk.f32.gmra.mxu0 %vm279_vm1, %v4877_v45 }
 0x466   : > { %v4462_v57 = vpop.f32.mrf.mxu2 }
 0x467   : > { %v4740_v7 = vpop.f32.mrf.mxu3  ;;  %v4550_v9 = vadd.f32 %v4462_v57, %v4272_v23  ;;  %v9272_v23 = vld [vmem:[#allocation45_spill] sm:$0xff]  ;;  %v9273_v57 = vld [vmem:[#allocation16_spill] sm:$0xff] }
 0x469   : > { %v4828_v54 = vadd.f32 %v4740_v7, %v4550_v9  ;;  %v8538_v55 = vpop.f32.mrf.mxu1  ;;  %v4879_v7 = vld [vmem:[#allocation2 + $0x141] sm:$0xff] }
 0x46b   : > { %6173 = vmatmul.msk.f32.gmra.mxu2 %vm279_vm1, %v9269_v50  ;;  %v8544_v31 = vadd.f32 %v5018_v39, %v4828_v54  ;;  %v5139_v39 = vld [vmem:[#allocation2 + $0x6a] sm:$0xff]  ;;  %v4274_v54 = vadd.f32 %v8363_v52, %v9274_v26 }
 0x46c   : > { %6207 = vmatmul.msk.f32.gmra.mxu3 %vm279_vm1, %v9270_v19  ;;  %6258 = vmatmul.msk.f32.gmra.mxu1 %vm279_vm1, %v5138_v24  ;;  %v9277_v52 = vld [vmem:[#allocation47_spill] sm:$0xff] }
 0x46d   : > { %6242 = vmatmul.msk.f32.gmra.mxu0 %vm279_vm1, %v4878_v22  ;;  %v5024_v22 = vpop.f32.mrf.mxu0 }
 0x46e   : > { %v4465_v0 = vpop.f32.mrf.mxu2 }
 0x46f   : > { %v4743_v4 = vpop.f32.mrf.mxu3  ;;  %v4551_v38 = vadd.f32 %v4465_v0, %v4273_v27  ;;  %v9275_v0 = vld [vmem:[#allocation48_spill] sm:$0xff] }
 0x471   : > { %v4829_v45 = vadd.f32 %v4743_v4, %v4551_v38  ;;  %v8550_v53 = vpop.f32.mrf.mxu1  ;;  %v9276_v4 = vld [vmem:[#allocation46_spill] sm:$0xff]  ;;  %v4880_v38 = vld [vmem:[#allocation2 + $0x151] sm:$0xff] }
 0x473   : > { %6174 = vmatmul.msk.f32.gmra.mxu2 %vm279_vm1, %v9272_v23  ;;  %v8556_v9 = vadd.f32 %v5021_v29, %v4829_v45  ;;  %v5140_v29 = vld [vmem:[#allocation2 + $0x7a] sm:$0xff]  ;;  %v4275_v23 = vadd.f32 %v8376_v32, %v9277_v52  ;;  %v4882_v52 = vld [vmem:[#allocation2 + $0x169] sm:$0xff] }
 0x474   : > { %6208 = vmatmul.msk.f32.gmra.mxu3 %vm279_vm1, %v9273_v57  ;;  %6259 = vmatmul.msk.f32.gmra.mxu1 %vm279_vm1, %v5139_v39 }
 0x475   : > { %6243 = vmatmul.msk.f32.gmra.mxu0 %vm279_vm1, %v4879_v7 }
 0x476   : > { %v4468_v50 = vpop.f32.mrf.mxu2 }
 0x477   : > { %v4746_v19 = vpop.f32.mrf.mxu3  ;;  %v4552_v24 = vadd.f32 %v4468_v50, %v4274_v54  ;;  %v5027_v50 = vpop.f32.mrf.mxu0 }
 0x479   : > { %v4830_v63 = vadd.f32 %v4746_v19, %v4552_v24  ;;  %v8562_v27 = vpop.f32.mrf.mxu1  ;;  %v9278_v19 = vld [vmem:[#allocation52_spill] sm:$0xff]  ;;  %v9279_v24 = vld [vmem:[#allocation49_spill] sm:$0xff] }
 0x47b   : > { %6175 = vmatmul.msk.f32.gmra.mxu2 %vm279_vm1, %v9275_v0  ;;  %v8568_v45 = vadd.f32 %v5024_v22, %v4830_v63  ;;  %v5141_v22 = vld [vmem:[#allocation2 + $0x82] sm:$0xff]  ;;  %v4881_v63 = vld [vmem:[#allocation2 + $0x159] sm:$0xff] }
 0x47c   : > { %6209 = vmatmul.msk.f32.gmra.mxu3 %vm279_vm1, %v9276_v4  ;;  %6260 = vmatmul.msk.f32.gmra.mxu1 %vm279_vm1, %v5140_v29  ;;  %v9280_v4 = vld [vmem:[#allocation56_spill] sm:$0xff]  ;;  %v9281_v29 = vld [vmem:[#allocation53_spill] sm:$0xff] }
 0x47d   : > { %6244 = vmatmul.msk.f32.gmra.mxu0 %vm279_vm1, %v4880_v38  ;;  %v5142_v38 = vld [vmem:[#allocation2 + $0x92] sm:$0xff] }
 0x47e   : > { %v4471_v57 = vpop.f32.mrf.mxu2 }
 0x47f   : > { %v4553_v39 = vadd.f32 %v4471_v57, %v4275_v23  ;;  %v4749_v7 = vpop.f32.mrf.mxu3  ;;  %v9282_v57 = vld [vmem:[#allocation59_spill] sm:$0xff] }
 0x481   : > { %v4831_v26 = vadd.f32 %v4749_v7, %v4553_v39  ;;  %v8574_v54 = vpop.f32.mrf.mxu1  ;;  %v5143_v39 = vld [vmem:[#allocation2 + $0x9a] sm:$0xff]  ;;  %v4883_v7 = vld [vmem:[#allocation2 + $0x171] sm:$0xff] }
 0x483   : > { %6176 = vmatmul.msk.f32.gmra.mxu2 %vm279_vm1, %v9278_v19  ;;  %v8580_v0 = vadd.f32 %v5027_v50, %v4831_v26  ;;  %v9284_v50 = vld [vmem:[#allocation62_spill] sm:$0xff] }
 0x484   : > { %6210 = vmatmul.msk.f32.gmra.mxu3 %vm279_vm1, %v9279_v24  ;;  %6261 = vmatmul.msk.f32.gmra.mxu1 %vm279_vm1, %v5141_v22  ;;  %v5144_v19 = vld [vmem:[#allocation2 + $0xaa] sm:$0xff]  ;;  %v5145_v22 = vld [vmem:[#allocation2 + $0xb2] sm:$0xff] }
 0x485   : > { %6245 = vmatmul.msk.f32.gmra.mxu0 %vm279_vm1, %v4881_v63  ;;  %v9286_v24 = vld [vmem:[#allocation63_spill] sm:$0xff]  ;;  %v4886_v63 = vld [vmem:[#allocation2 + $0x199] sm:$0xff] }
 0x489   : > { %v8584_v32 = vpop.f32.mrf.mxu1 }
 0x48b   : > { %6177 = vmatmul.msk.f32.gmra.mxu2 %vm279_vm1, %v9280_v4 }
 0x48c   : > { %6211 = vmatmul.msk.f32.gmra.mxu3 %vm279_vm1, %v9281_v29  ;;  %6262 = vmatmul.msk.f32.gmra.mxu1 %vm279_vm1, %v5142_v38  ;;  %v4887_v29 = vld [vmem:[#allocation2 + $0x1a1] sm:$0xff] }
 0x48d   : > { %6246 = vmatmul.msk.f32.gmra.mxu0 %vm279_vm1, %v4882_v52  ;;  %v8628_v38 = vld [vmem:[#allocation2 + $0x182] sm:$0xff]  ;;  %v8637_v52 = vld [vmem:[#allocation2 + $0x18a] sm:$0xff] }
 0x491   : > { %v8592_v23 = vpop.f32.mrf.mxu1 }
 0x493   : > { %6178 = vmatmul.msk.f32.gmra.mxu2 %vm279_vm1, %v9282_v57  ;;  %v5148_v57 = vld [vmem:[#allocation2 + $0xda] sm:$0xff] }
 0x494   : > { %6212 = vmatmul.msk.f32.gmra.mxu3 %vm279_vm1, %v8198_v61  ;;  %6263 = vmatmul.msk.f32.gmra.mxu1 %vm279_vm1, %v5143_v39 }
 0x495   : > { %6247 = vmatmul.msk.f32.gmra.mxu0 %vm279_vm1, %v4883_v7  ;;  %v5149_v7 = vld [vmem:[#allocation2 + $0xe2] sm:$0xff] }
 0x499   : > { %v8600_v26 = vpop.f32.mrf.mxu1 }
 0x49a   : > { %9283 = vst [vmem:[#allocation51_spill] sm:$0xff] %v8600_v26 }
 0x49b   : > { %6179 = vmatmul.msk.f32.gmra.mxu2 %vm279_vm1, %v9284_v50  ;;  %v8649_v50 = vld [vmem:[%s8983_s5] ss:$0 sm:$0xff] }
 0x49c   : > { %6213 = vmatmul.msk.f32.gmra.mxu3 %vm279_vm1, %v8217_v17  ;;  %6264 = vmatmul.msk.f32.gmra.mxu1 %vm279_vm1, %v5144_v19 }
 0x49d   : > { %6248 = vmatmul.msk.f32.gmra.mxu0 %vm279_vm1, %v8463_v16  ;;  %v5146_v16 = vld [vmem:[#allocation2 + $0xc2] sm:$0xff] }
 0x4a1   : > { %v8609_v61 = vpop.f32.mrf.mxu1 }
 0x4a2   : > { %9285 = vst [vmem:[#allocation19_spill] sm:$0xff] %v8609_v61 }
 0x4a3   : > { %6180 = vmatmul.msk.f32.gmra.mxu2 %vm279_vm1, %v8244_v2  ;;  %v4608_v2 = vld [vmem:[#allocation2 + $0x198] sm:$0xff] }
 0x4a4   : > { %6214 = vmatmul.msk.f32.gmra.mxu3 %vm279_vm1, %v9286_v24  ;;  %6265 = vmatmul.msk.f32.gmra.mxu1 %vm279_vm1, %v5145_v22  ;;  %v8655_v22 = vld [vmem:[%s8984_s6] ss:$0 sm:$0xff] }
 0x4a5   : > { %6249 = vmatmul.msk.f32.gmra.mxu0 %vm279_vm1, %v8477_v40  ;;  %v5147_v40 = vld [vmem:[#allocation2 + $0xca] sm:$0xff] }
 0x4a9   : > { %v8618_v17 = vpop.f32.mrf.mxu1 }
 0x4aa   : > { %9287 = vst [vmem:[#allocation17_spill] sm:$0xff] %v8618_v17  ;;  %v5155_v17 = vld [vmem:[#allocation2 + $0x12a] sm:$0xff] }
 0x4ab   : > { %6181 = vmatmul.msk.f32.gmra.mxu2 %vm279_vm1, %v8260_v1  ;;  %v4609_v1 = vld [vmem:[#allocation2 + $0x1a0] sm:$0xff] }
 0x4ac   : > { %6215 = vmatmul.msk.f32.gmra.mxu3 %vm279_vm1, %v8250_v44  ;;  %6266 = vmatmul.msk.f32.gmra.mxu1 %vm279_vm1, %v5146_v16 }
 0x4ad   : > { %6250 = vmatmul.msk.f32.gmra.mxu0 %vm279_vm1, %v4886_v63  ;;  %v5150_v63 = vld [vmem:[#allocation2 + $0xf2] sm:$0xff] }
 0x4b1   : > { %v8626_v4 = vpop.f32.mrf.mxu1 }
 0x4b2   : > { %9288 = vst [vmem:[#allocation22_spill] sm:$0xff] %v8626_v4 }
 0x4b3   : > { %6182 = vmatmul.msk.f32.gmra.mxu2 %vm279_vm1, %v8628_v38 }
 0x4b4   : > { %6216 = vmatmul.msk.f32.gmra.mxu3 %vm279_vm1, %v4608_v2  ;;  %6267 = vmatmul.msk.f32.gmra.mxu1 %vm279_vm1, %v5147_v40  ;;  %v5484_v2 = vld [vmem:[%s6459_s14] sm:$0xff]  ;;  %v8661_v40 = vpop.f32.mrf.mxu2 }
 0x4b5   : > { %6251 = vmatmul.msk.f32.gmra.mxu0 %vm279_vm1, %v4887_v29 }
 0x4b9   : > { %v8635_v44 = vpop.f32.mrf.mxu1 }
 0x4ba   : > { %9289 = vst [vmem:[#allocation55_spill] sm:$0xff] %v8635_v44 }
 0x4bb   : > { %6183 = vmatmul.msk.f32.gmra.mxu2 %vm279_vm1, %v8637_v52 }
 0x4bc   : > { %6217 = vmatmul.msk.f32.gmra.mxu3 %vm279_vm1, %v4609_v1  ;;  %6268 = vmatmul.msk.f32.gmra.mxu1 %vm279_vm1, %v5148_v57 }
 0x4c1   : > { %v8643_v39 = vpop.f32.mrf.mxu1 }
 0x4c2   : > { %9290 = vst [vmem:[#allocation26_spill] sm:$0xff] %v8643_v39 }
 0x4c4   : > { %6269 = vmatmul.msk.f32.gmra.mxu1 %vm279_vm1, %v5149_v7 }
 0x4c9   : > { %v5284_v19 = vpop.f32.mrf.mxu1 }
 0x4ca   : > { %v5380_v24 = vadd.f32 %v5284_v19, %v8496_v43  ;;  %v5151_v19 = vld [vmem:[#allocation2 + $0xfa] sm:$0xff] }
 0x4cc   : > { %v5416_v16 = vmul.f32 %v8649_v50, %v5380_v24  ;;  %6270 = vmatmul.msk.f32.gmra.mxu1 %vm279_vm1, %v5150_v63  ;;  %v8675_v63 = vpop.f32.mrf.mxu3 }
 0x4ce   : > { %v5452_v29 = vadd.f32 %v8655_v22, %v5416_v16  ;;  %v5485_v16 = vld [vmem:[%s6459_s14 + $0x8] sm:$0xff] }
 0x4d0   : > { %v5516_v1 = vadd.f32 %v5484_v2, %v5452_v29  ;;  %v8679_v29 = vpop.f32.mrf.mxu0 }
 0x4d1   : > { %v5287_v43 = vpop.f32.mrf.mxu1 }
 0x4d2   : > { %v5548_v57 = vmax.f32 %v5516_v1, 0.0  ;;  %v5381_v7 = vadd.f32 %v5287_v43, %v8508_v20  ;;  %v8681_v1 = vpop.f32.mrf.mxu2 }
 0x4d4   : > { %5580 = vst.msk [vmem:[%s8668_s19] sm:$0xff] %vm279_vm1, %v5548_v57  ;;  %v5417_v24 = vmul.f32 %v8649_v50, %v5381_v7  ;;  %6271 = vmatmul.msk.f32.gmra.mxu1 %vm279_vm1, %v5151_v19  ;;  %v5152_v57 = vld [vmem:[#allocation2 + $0x10a] sm:$0xff]  ;;  %v8690_v44 = vpop.f32.mrf.mxu3 }
 0x4d5   : > { %v5486_v19 = vld [vmem:[%s6459_s14 + $0x10] sm:$0xff] }
 0x4d6   : > { %v5453_v2 = vadd.f32 %v8655_v22, %v5417_v24 }
 0x4d8   : > { %v5517_v39 = vadd.f32 %v5485_v16, %v5453_v2  ;;  %v8692_v62 = vpop.f32.mrf.mxu0 }
 0x4d9   : > { %v5290_v12 = vpop.f32.mrf.mxu1 }
 0x4da   : > { %v5549_v20 = vmax.f32 %v5517_v39, 0.0  ;;  %v5382_v43 = vadd.f32 %v5290_v12, %v8520_v14  ;;  %v8695_v14 = vpop.f32.mrf.mxu2 }
 0x4dc   : > { %5581 = vst.msk [vmem:[%s8668_s19 + $0x8] sm:$0xff] %vm279_vm1, %v5549_v20  ;;  %v5418_v7 = vmul.f32 %v8649_v50, %v5382_v43  ;;  %6272 = vmatmul.msk.f32.gmra.mxu1 %vm279_vm1, %v5152_v57  ;;  %v5153_v20 = vld [vmem:[#allocation2 + $0x112] sm:$0xff] }
 0x4dd   : > { %v5487_v57 = vld [vmem:[%s6459_s14 + $0x18] sm:$0xff] }
 0x4de   : > { %v5454_v24 = vadd.f32 %v8655_v22, %v5418_v7 }
 0x4e0   : > { %v5518_v16 = vadd.f32 %v5486_v19, %v5454_v24  ;;  %v8703_v24 = vpop.f32.mrf.mxu3  ;;  %v8706_v3 = vpop.f32.mrf.mxu0 }
 0x4e1   : > { %v5293_v2 = vpop.f32.mrf.mxu1 }
 0x4e2   : > { %v5550_v39 = vmax.f32 %v5518_v16, 0.0  ;;  %v5383_v12 = vadd.f32 %v5293_v2, %v8532_v5  ;;  %v5154_v2 = vld [vmem:[#allocation2 + $0x122] sm:$0xff] }
 0x4e4   : > { %5582 = vst.msk [vmem:[%s8668_s19 + $0x10] sm:$0xff] %vm279_vm1, %v5550_v39  ;;  %v5419_v43 = vmul.f32 %v8649_v50, %v5383_v12  ;;  %6273 = vmatmul.msk.f32.gmra.mxu1 %vm279_vm1, %v5153_v20  ;;  %v8712_v12 = vpop.f32.mrf.mxu2  ;;  %v5488_v20 = vld [vmem:[%s6459_s14 + $0x20] sm:$0xff] }
 0x4e6   : > { %v5455_v7 = vadd.f32 %v8655_v22, %v5419_v43 }
 0x4e8   : > { %v5519_v19 = vadd.f32 %v5487_v57, %v5455_v7 }
 0x4e9   : > { %v5296_v16 = vpop.f32.mrf.mxu1 }
 0x4ea   : > { %v5551_v4 = vmax.f32 %v5519_v19, 0.0  ;;  %v5384_v5 = vadd.f32 %v5296_v16, %v8544_v31  ;;  %v8717_v16 = vpop.f32.mrf.mxu3 }
 0x4ec   : > { %5583 = vst.msk [vmem:[%s8668_s19 + $0x18] sm:$0xff] %vm279_vm1, %v5551_v4  ;;  %v5420_v39 = vmul.f32 %v8649_v50, %v5384_v5  ;;  %6274 = vmatmul.msk.f32.gmra.mxu1 %vm279_vm1, %v5154_v2  ;;  %v5489_v5 = vld [vmem:[%s6459_s14 + $0x28] sm:$0xff]  ;;  %v8724_v2 = vpop.f32.mrf.mxu0 }
 0x4ee   : > { %v5456_v43 = vadd.f32 %v8655_v22, %v5420_v39 }
 0x4f0   : > { %v5520_v57 = vadd.f32 %v5488_v20, %v5456_v43  ;;  %v8727_v20 = vpop.f32.mrf.mxu2 }
 0x4f1   : > { %v5299_v7 = vpop.f32.mrf.mxu1 }
 0x4f2   : > { %v5552_v19 = vmax.f32 %v5520_v57, 0.0  ;;  %v5385_v31 = vadd.f32 %v5299_v7, %v8556_v9 }
 0x4f4   : > { %5584 = vst.msk [vmem:[%s8668_s19 + $0x20] sm:$0xff] %vm279_vm1, %v5552_v19  ;;  %v5421_v4 = vmul.f32 %v8649_v50, %v5385_v31  ;;  %6275 = vmatmul.msk.f32.gmra.mxu1 %vm279_vm1, %v5155_v17  ;;  %v8734_v17 = vpop.f32.mrf.mxu3  ;;  %v5490_v31 = vld [vmem:[%s6459_s14 + $0x30] sm:$0xff] }
 0x4f6   : > { %v5457_v39 = vadd.f32 %v8655_v22, %v5421_v4  ;;  %v9291_v4 = vld [vmem:[#allocation50_spill] sm:$0xff] }
 0x4f7   : > { %v4276_v61 = vadd.f32 %v8389_v46, %v9291_v4 }
 0x4f8   : > { %v5521_v43 = vadd.f32 %v5489_v5, %v5457_v39 }
 0x4f9   : > { %v5302_v57 = vpop.f32.mrf.mxu1  ;;  %v4554_v39 = vadd.f32 %v8661_v40, %v4276_v61  ;;  %v5491_v61 = vld [vmem:[%s6459_s14 + $0x38] sm:$0xff]  ;;  %v9292_v40 = vld [vmem:[#allocation54_spill] sm:$0xff] }
 0x4fa   : > { %v5553_v9 = vmax.f32 %v5521_v43, 0.0  ;;  %v5386_v7 = vadd.f32 %v5302_v57, %v8568_v45  ;;  %v8741_v45 = vpop.f32.mrf.mxu0  ;;  %v8743_v57 = vpop.f32.mrf.mxu2 }
 0x4fb   : > { %v4832_v26 = vadd.f32 %v8675_v63, %v4554_v39 }
 0x4fc   : > { %5585 = vst.msk [vmem:[%s8668_s19 + $0x28] sm:$0xff] %vm279_vm1, %v5553_v9  ;;  %v5422_v19 = vmul.f32 %v8649_v50, %v5386_v7  ;;  %6276 = vmatmul.msk.f32.gmra.mxu1 %vm279_vm1, %v5156_v49  ;;  %v8755_v4 = vpop.f32.mrf.mxu3 }
 0x4fd   : > { %v5110_v63 = vadd.f32 %v8679_v29, %v4832_v26 }
 0x4fe   : > { %v5458_v5 = vadd.f32 %v8655_v22, %v5422_v19  ;;  %v4277_v19 = vadd.f32 %v8401_v34, %v9292_v40 }
 0x500   : > { %v5522_v43 = vadd.f32 %v5490_v31, %v5458_v5 }
 0x501   : > { %v5305_v9 = vpop.f32.mrf.mxu1 }
 0x502   : > { %v5554_v7 = vmax.f32 %v5522_v43, 0.0  ;;  %v5387_v49 = vadd.f32 %v5305_v9, %v8580_v0  ;;  %v4555_v0 = vadd.f32 %v8681_v1, %v4277_v19  ;;  %v8759_v43 = vpop.f32.mrf.mxu0  ;;  %v5492_v1 = vld [vmem:[%s6459_s14 + $0x40] sm:$0xff] }
 0x504   : > { %5586 = vst.msk [vmem:[%s8668_s19 + $0x30] sm:$0xff] %vm279_vm1, %v5554_v7  ;;  %v5423_v46 = vmul.f32 %v8649_v50, %v5387_v49  ;;  %6277 = vmatmul.msk.f32.gmra.mxu1 %vm279_vm1, %v5157_v56  ;;  %v8761_v56 = vpop.f32.mrf.mxu2  ;;  %v5158_v49 = vld [vmem:[#allocation2 + $0x152] sm:$0xff]  ;;  %v4833_v34 = vadd.f32 %v8690_v44, %v4555_v0  ;;  %v8774_v44 = vpop.f32.mrf.mxu3 }
 0x506   : > { %v5459_v31 = vadd.f32 %v8655_v22, %v5423_v46 }
 0x508   : > { %v5523_v5 = vadd.f32 %v5491_v61, %v5459_v31  ;;  %v9293_v61 = vld [vmem:[#allocation57_spill] sm:$0xff]  ;;  %v5111_v31 = vadd.f32 %v8692_v62, %v4833_v34  ;;  %v5493_v62 = vld [vmem:[%s6459_s14 + $0x48] sm:$0xff] }
 0x509   : > { %v5308_v39 = vpop.f32.mrf.mxu1  ;;  %v4278_v26 = vadd.f32 %v8413_v35, %v9293_v61 }
 0x50a   : > { %v5555_v9 = vmax.f32 %v5523_v5, 0.0  ;;  %v5388_v7 = vadd.f32 %v5308_v39, %v5110_v63  ;;  %v5159_v39 = vld [vmem:[#allocation2 + $0x15a] sm:$0xff] }
 0x50b   : > { %v4556_v40 = vadd.f32 %v8695_v14, %v4278_v26 }
 0x50c   : > { %5587 = vst.msk [vmem:[%s8668_s19 + $0x38] sm:$0xff] %vm279_vm1, %v5555_v9  ;;  %v5424_v46 = vmul.f32 %v8649_v50, %v5388_v7  ;;  %6278 = vmatmul.msk.f32.gmra.mxu1 %vm279_vm1, %v5158_v49  ;;  %v8777_v7 = vpop.f32.mrf.mxu0  ;;  %v8783_v14 = vpop.f32.mrf.mxu2  ;;  %v9294_v49 = vld [vmem:[#allocation60_spill] sm:$0xff] }
 0x50d   : > { %v4834_v9 = vadd.f32 %v8703_v24, %v4556_v40  ;;  %v4279_v34 = vadd.f32 %v8425_v37, %v9294_v49 }
 0x50e   : > { %v5460_v29 = vadd.f32 %v8655_v22, %v5424_v46 }
 0x50f   : > { %v4557_v24 = vadd.f32 %v8712_v12, %v4279_v34  ;;  %v5112_v61 = vadd.f32 %v8706_v3, %v4834_v9  ;;  %v9295_v12 = vld [vmem:[#allocation64_spill] sm:$0xff] }
 0x510   : > { %v5524_v19 = vadd.f32 %v5492_v1, %v5460_v29 }
 0x511   : > { %v5311_v0 = vpop.f32.mrf.mxu1 }
 0x512   : > { %v5556_v5 = vmax.f32 %v5524_v19, 0.0  ;;  %v5389_v63 = vadd.f32 %v5311_v0, %v5111_v31  ;;  %v8791_v19 = vpop.f32.mrf.mxu3  ;;  %v5160_v31 = vld [vmem:[#allocation2 + $0x16a] sm:$0xff]  ;;  %v4835_v0 = vadd.f32 %v8717_v16, %v4557_v24  ;;  %v5161_v24 = vld [vmem:[#allocation2 + $0x172] sm:$0xff] }
 0x514   : > { %5588 = vst.msk [vmem:[%s8668_s19 + $0x40] sm:$0xff] %vm279_vm1, %v5556_v5  ;;  %v5425_v35 = vmul.f32 %v8649_v50, %v5389_v63  ;;  %6279 = vmatmul.msk.f32.gmra.mxu1 %vm279_vm1, %v5159_v39  ;;  %v5494_v5 = vld [vmem:[%s6459_s14 + $0x50] sm:$0xff]  ;;  %v4280_v63 = vadd.f32 %v8437_v25, %v9295_v12  ;;  %v8801_v3 = vpop.f32.mrf.mxu0  ;;  %v8804_v9 = vpop.f32.mrf.mxu2 }
 0x516   : > { %v5461_v46 = vadd.f32 %v8655_v22, %v5425_v35  ;;  %v4558_v16 = vadd.f32 %v8727_v20, %v4280_v63  ;;  %v9296_v20 = vld [vmem:[#allocation65_spill] sm:$0xff] }
 0x518   : > { %v5525_v1 = vadd.f32 %v5493_v62, %v5461_v46  ;;  %v5113_v62 = vadd.f32 %v8724_v2, %v4835_v0 }
 0x519   : > { %v5314_v26 = vpop.f32.mrf.mxu1 }
 0x51a   : > { %v5557_v29 = vmax.f32 %v5525_v1, 0.0  ;;  %v5390_v40 = vadd.f32 %v5314_v26, %v5112_v61  ;;  %v4836_v1 = vadd.f32 %v8734_v17, %v4558_v16  ;;  %v4776_v61 = vpop.f32.mrf.mxu3  ;;  %v5495_v26 = vld [vmem:[%s6459_s14 + $0x58] sm:$0xff]  ;;  %v4282_v16 = vadd.f32 %v8461_v30, %v8266_v21  ;;  %v5497_v30 = vld [vmem:[%s6459_s14 + $0x68] sm:$0xff] }
 0x51c   : > { %5589 = vst.msk [vmem:[%s8668_s19 + $0x48] sm:$0xff] %vm279_vm1, %v5557_v29  ;;  %v5426_v37 = vmul.f32 %v8649_v50, %v5390_v40  ;;  %6280 = vmatmul.msk.f32.gmra.mxu1 %vm279_vm1, %v5160_v31  ;;  %v4281_v29 = vadd.f32 %v8449_v13, %v9296_v20  ;;  %v8818_v31 = vpop.f32.mrf.mxu0  ;;  %v5114_v0 = vadd.f32 %v8741_v45, %v4836_v1 }
 0x51e   : > { %v5462_v39 = vadd.f32 %v8655_v22, %v5426_v37  ;;  %v4559_v40 = vadd.f32 %v8743_v57, %v4281_v29  ;;  %v4501_v37 = vpop.f32.mrf.mxu2  ;;  %v5496_v57 = vld [vmem:[%s6459_s14 + $0x60] sm:$0xff] }
 0x520   : > { %v5526_v35 = vadd.f32 %v5494_v5, %v5462_v39  ;;  %v4837_v39 = vadd.f32 %v8755_v4, %v4559_v40  ;;  %v5164_v40 = vld [vmem:[#allocation2 + $0x19a] sm:$0xff] }
 0x521   : > { %v5317_v49 = vpop.f32.mrf.mxu1 }
 0x522   : > { %v5558_v34 = vmax.f32 %v5526_v35, 0.0  ;;  %v5391_v46 = vadd.f32 %v5317_v49, %v5113_v62  ;;  %v4779_v35 = vpop.f32.mrf.mxu3  ;;  %v4560_v62 = vadd.f32 %v8761_v56, %v4282_v16  ;;  %v5115_v4 = vadd.f32 %v8759_v43, %v4837_v39 }
 0x523   : > { %v4283_v56 = vadd.f32 %v8475_v60, %v8278_v58 }
 0x524   : > { %5590 = vst.msk [vmem:[%s8668_s19 + $0x50] sm:$0xff] %vm279_vm1, %v5558_v34  ;;  %v5427_v25 = vmul.f32 %v8649_v50, %v5391_v46  ;;  %6281 = vmatmul.msk.f32.gmra.mxu1 %vm279_vm1, %v5161_v24  ;;  %v5057_v46 = vpop.f32.mrf.mxu0 }
 0x526   : > { %v5463_v2 = vadd.f32 %v8655_v22, %v5427_v25  ;;  %v4504_v25 = vpop.f32.mrf.mxu2 }
 0x528   : > { %v5527_v17 = vadd.f32 %v5495_v26, %v5463_v2  ;;  %v4561_v26 = vadd.f32 %v8783_v14, %v4283_v56  ;;  %v5498_v14 = vld [vmem:[%s6459_s14 + $0x70] sm:$0xff] }
 0x529   : > { %v5320_v5 = vpop.f32.mrf.mxu1 }
 0x52a   : > { %v5559_v12 = vmax.f32 %v5527_v17, 0.0  ;;  %v5392_v63 = vadd.f32 %v5320_v5, %v5114_v0  ;;  %v4782_v29 = vpop.f32.mrf.mxu3  ;;  %v4839_v5 = vadd.f32 %v8791_v19, %v4561_v26 }
 0x52c   : > { %5591 = vst.msk [vmem:[%s8668_s19 + $0x58] sm:$0xff] %vm279_vm1, %v5559_v12  ;;  %v5428_v13 = vmul.f32 %v8649_v50, %v5392_v63  ;;  %6282 = vmatmul.msk.f32.gmra.mxu1 %vm279_vm1, %v8628_v38  ;;  %v4838_v38 = vadd.f32 %v8774_v44, %v4560_v62  ;;  %v5117_v19 = vadd.f32 %v8801_v3, %v4839_v5 }
 0x52e   : > { %v5464_v45 = vadd.f32 %v8655_v22, %v5428_v13  ;;  %v5116_v44 = vadd.f32 %v8777_v7, %v4838_v38  ;;  %v4507_v60 = vpop.f32.mrf.mxu2  ;;  %v4284_v7 = vadd.f32 %v8490_v6, %v8291_v33  ;;  %v5499_v33 = vld [vmem:[%s6459_s14 + $0x78] sm:$0xff]  ;;  %v4285_v6 = vadd.f32 %v8502_v48, %v8304_v8  ;;  %v5500_v8 = vld [vmem:[%s6459_s14 + $0x80] sm:$0xff] }
 0x52f   : > { %v4286_v48 = vadd.f32 %v8514_v36, %v8317_v51  ;;  %v4287_v51 = vadd.f32 %v8526_v41, %v8330_v11  ;;  %v4288_v11 = vadd.f32 %v8538_v55, %v8343_v42  ;;  %v4289_v42 = vadd.f32 %v8550_v53, %v8356_v10 }
 0x530   : > { %v5528_v49 = vadd.f32 %v5496_v57, %v5464_v45  ;;  %v4562_v63 = vadd.f32 %v8804_v9, %v4284_v7  ;;  %v5165_v57 = vld [vmem:[#allocation2 + $0x1a2] sm:$0xff]  ;;  %v4290_v10 = vadd.f32 %v8562_v27, %v8369_v18  ;;  %v4291_v18 = vadd.f32 %v8574_v54, %v8382_v47 }
 0x531   : > { %v5323_v34 = vpop.f32.mrf.mxu1  ;;  %v4565_v7 = vadd.f32 %v4507_v60, %v4287_v51  ;;  %v5505_v51 = vld [vmem:[%s6459_s14 + $0xa8] sm:$0xff]  ;;  %v4292_v47 = vadd.f32 %v8584_v32, %v8395_v59  ;;  %v4293_v59 = vadd.f32 %v8592_v23, %v8407_v15  ;;  %v9297_v15 = vld [vmem:[#allocation51_spill] sm:$0xff] }
 0x532   : > { %v5560_v24 = vmax.f32 %v5528_v49, 0.0  ;;  %v5393_v1 = vadd.f32 %v5323_v34, %v5115_v4  ;;  %v4785_v62 = vpop.f32.mrf.mxu3  ;;  %v4840_v49 = vadd.f32 %v4776_v61, %v4562_v63  ;;  %v4294_v23 = vadd.f32 %v9297_v15, %v8419_v28 }
 0x534   : > { %5592 = vst.msk [vmem:[%s8668_s19 + $0x60] sm:$0xff] %vm279_vm1, %v5560_v24  ;;  %v5429_v21 = vmul.f32 %v8649_v50, %v5393_v1  ;;  %6283 = vmatmul.msk.f32.gmra.mxu1 %vm279_vm1, %v8637_v52  ;;  %v5060_v52 = vpop.f32.mrf.mxu0  ;;  %v4563_v24 = vadd.f32 %v4501_v37, %v4285_v6  ;;  %v5118_v61 = vadd.f32 %v8818_v31, %v4840_v49 }
 0x536   : > { %v5465_v43 = vadd.f32 %v8655_v22, %v5429_v21  ;;  %v4510_v34 = vpop.f32.mrf.mxu2  ;;  %v4841_v56 = vadd.f32 %v4779_v35, %v4563_v24 }
 0x537   : > { %v4566_v60 = vadd.f32 %v4510_v34, %v4288_v11 }
 0x538   : > { %v5529_v20 = vadd.f32 %v5497_v30, %v5465_v43 }
 0x539   : > { %v5326_v2 = vpop.f32.mrf.mxu1 }
 0x53a   : > { %v5561_v17 = vmax.f32 %v5529_v20, 0.0  ;;  %v5394_v0 = vadd.f32 %v5326_v2, %v5116_v44  ;;  %v4788_v26 = vpop.f32.mrf.mxu3  ;;  %v4564_v20 = vadd.f32 %v4504_v25, %v4286_v48  ;;  %v5119_v2 = vadd.f32 %v5057_v46, %v4841_v56 }
 0x53b   : > { %v4844_v24 = vadd.f32 %v4788_v26, %v4566_v60 }
 0x53c   : > { %5593 = vst.msk [vmem:[%s8668_s19 + $0x68] sm:$0xff] %vm279_vm1, %v5561_v17  ;;  %v5430_v58 = vmul.f32 %v8649_v50, %v5394_v0  ;;  %6284 = vmatmul.msk.f32.gmra.mxu1 %vm279_vm1, %v5164_v40  ;;  %v5063_v9 = vpop.f32.mrf.mxu0  ;;  %v4842_v5 = vadd.f32 %v4782_v29, %v4564_v20 }
 0x53e   : > { %v5466_v12 = vadd.f32 %v8655_v22, %v5430_v58  ;;  %v4513_v40 = vpop.f32.mrf.mxu2 }
 0x540   : > { %v5530_v39 = vadd.f32 %v5498_v14, %v5466_v12  ;;  %v5501_v14 = vld [vmem:[%s6459_s14 + $0x88] sm:$0xff]  ;;  %v5120_v12 = vadd.f32 %v5060_v52, %v4842_v5 }
 0x541   : > { %v5329_v13 = vpop.f32.mrf.mxu1 }
 0x542   : > { %v5562_v16 = vmax.f32 %v5530_v39, 0.0  ;;  %v5395_v45 = vadd.f32 %v5329_v13, %v5117_v19  ;;  %v4791_v25 = vpop.f32.mrf.mxu3 }
 0x544   : > { %5594 = vst.msk [vmem:[%s8668_s19 + $0x70] sm:$0xff] %vm279_vm1, %v5562_v16  ;;  %v5431_v4 = vmul.f32 %v8649_v50, %v5395_v45  ;;  %6285 = vmatmul.msk.f32.gmra.mxu1 %vm279_vm1, %v5165_v57  ;;  %v5066_v44 = vpop.f32.mrf.mxu0  ;;  %v4843_v57 = vadd.f32 %v4785_v62, %v4565_v7  ;;  %v5502_v45 = vld [vmem:[%s6459_s14 + $0x90] sm:$0xff] }
 0x546   : > { %v5467_v3 = vadd.f32 %v8655_v22, %v5431_v4  ;;  %v4516_v13 = vpop.f32.mrf.mxu2  ;;  %v5121_v49 = vadd.f32 %v5063_v9, %v4843_v57  ;;  %v4567_v9 = vadd.f32 %v4513_v40, %v4289_v42  ;;  %v5506_v57 = vld [vmem:[%s6459_s14 + $0xb0] sm:$0xff] }
 0x548   : > { %v5531_v1 = vadd.f32 %v5499_v33, %v5467_v3 }
 0x549   : > { %v5332_v38 = vpop.f32.mrf.mxu1 }
 0x54a   : > { %v5563_v21 = vmax.f32 %v5531_v1, 0.0  ;;  %v5396_v30 = vadd.f32 %v5332_v38, %v5118_v61  ;;  %v4794_v4 = vpop.f32.mrf.mxu3  ;;  %v5503_v38 = vld [vmem:[%s6459_s14 + $0x98] sm:$0xff] }
 0x54c   : > { %5595 = vst.msk [vmem:[%s8668_s19 + $0x78] sm:$0xff] %vm279_vm1, %v5563_v21  ;;  %v5432_v43 = vmul.f32 %v8649_v50, %v5396_v30  ;;  %v5069_v39 = vpop.f32.mrf.mxu0  ;;  %v5122_v21 = vadd.f32 %v5066_v44, %v4844_v24  ;;  %v4568_v44 = vadd.f32 %v4516_v13, %v4290_v10  ;;  %v5507_v24 = vld [vmem:[%s6459_s14 + $0xb8] sm:$0xff] }
 0x54e   : > { %v5468_v37 = vadd.f32 %v8655_v22, %v5432_v43  ;;  %v4519_v61 = vpop.f32.mrf.mxu2  ;;  %v4846_v5 = vadd.f32 %v4794_v4, %v4568_v44 }
 0x550   : > { %v5532_v31 = vadd.f32 %v5500_v8, %v5468_v37  ;;  %v4845_v8 = vadd.f32 %v4791_v25, %v4567_v9  ;;  %v5504_v37 = vld [vmem:[%s6459_s14 + $0xa0] sm:$0xff]  ;;  %v4569_v25 = vadd.f32 %v4519_v61, %v4291_v18 }
 0x551   : > { %v5335_v17 = vpop.f32.mrf.mxu1 }
 0x552   : > { %v5564_v35 = vmax.f32 %v5532_v31, 0.0  ;;  %v5397_v0 = vadd.f32 %v5335_v17, %v5119_v2  ;;  %v4797_v26 = vpop.f32.mrf.mxu3  ;;  %v5123_v40 = vadd.f32 %v5069_v39, %v4845_v8 }
 0x554   : > { %5596 = vst.msk [vmem:[%s8668_s19 + $0x80] sm:$0xff] %vm279_vm1, %v5564_v35  ;;  %v5433_v58 = vmul.f32 %v8649_v50, %v5397_v0  ;;  %v5072_v62 = vpop.f32.mrf.mxu0 }
 0x556   : > { %v5469_v36 = vadd.f32 %v8655_v22, %v5433_v58  ;;  %v4522_v31 = vpop.f32.mrf.mxu2 }
 0x558   : > { %v5533_v46 = vadd.f32 %v5501_v14, %v5469_v36 }
 0x559   : > { %v5338_v63 = vpop.f32.mrf.mxu1 }
 0x55a   : > { %v5565_v19 = vmax.f32 %v5533_v46, 0.0  ;;  %v5398_v29 = vadd.f32 %v5338_v63, %v5120_v12  ;;  %v4800_v14 = vpop.f32.mrf.mxu3  ;;  %v5124_v46 = vadd.f32 %v5072_v62, %v4846_v5 }
 0x55c   : > { %5597 = vst.msk [vmem:[%s8668_s19 + $0x88] sm:$0xff] %vm279_vm1, %v5565_v19  ;;  %v5434_v16 = vmul.f32 %v8649_v50, %v5398_v29  ;;  %v5075_v53 = vpop.f32.mrf.mxu0  ;;  %v4847_v29 = vadd.f32 %v4797_v26, %v4569_v25 }
 0x55e   : > { %v5470_v41 = vadd.f32 %v8655_v22, %v5434_v16  ;;  %v4525_v12 = vpop.f32.mrf.mxu2 }
 0x55f   : > { %v4571_v62 = vadd.f32 %v4525_v12, %v4293_v59 }
 0x560   : > { %v5534_v52 = vadd.f32 %v5502_v45, %v5470_v41  ;;  %v4570_v45 = vadd.f32 %v4522_v31, %v4292_v47  ;;  %v5125_v41 = vadd.f32 %v5075_v53, %v4847_v29 }
 0x561   : > { %v5341_v33 = vpop.f32.mrf.mxu1 }
 0x562   : > { %v5566_v6 = vmax.f32 %v5534_v52, 0.0  ;;  %v5399_v3 = vadd.f32 %v5341_v33, %v5121_v49  ;;  %v4803_v16 = vpop.f32.mrf.mxu3 }
 0x564   : > { %5598 = vst.msk [vmem:[%s8668_s19 + $0x90] sm:$0xff] %vm279_vm1, %v5566_v6  ;;  %v5435_v1 = vmul.f32 %v8649_v50, %v5399_v3  ;;  %v5078_v36 = vpop.f32.mrf.mxu0  ;;  %v4848_v6 = vadd.f32 %v4800_v14, %v4570_v45 }
 0x566   : > { %v5471_v55 = vadd.f32 %v8655_v22, %v5435_v1  ;;  %v4528_v33 = vpop.f32.mrf.mxu2  ;;  %v5126_v61 = vadd.f32 %v5078_v36, %v4848_v6  ;;  %v9303_v6 = vld [vmem:[#allocation22_spill] sm:$0xff] }
 0x567   : > { %v4572_v8 = vadd.f32 %v4528_v33, %v4294_v23  ;;  %v9302_v33 = vld [vmem:[#allocation20_spill] sm:$0xff] }
 0x568   : > { %v5535_v34 = vadd.f32 %v5503_v38, %v5471_v55 }
 0x569   : > { %v5344_v30 = vpop.f32.mrf.mxu1 }
 0x56a   : > { %v5567_v56 = vmax.f32 %v5535_v34, 0.0  ;;  %v5400_v43 = vadd.f32 %v5344_v30, %v5122_v21  ;;  %v4806_v38 = vpop.f32.mrf.mxu3  ;;  %v4849_v21 = vadd.f32 %v4803_v16, %v4571_v62 }
 0x56b   : > { %v4850_v44 = vadd.f32 %v4806_v38, %v4572_v8 }
 0x56c   : > { %5599 = vst.msk [vmem:[%s8668_s19 + $0x98] sm:$0xff] %vm279_vm1, %v5567_v56  ;;  %v5436_v48 = vmul.f32 %v8649_v50, %v5400_v43  ;;  %v5081_v52 = vpop.f32.mrf.mxu0  ;;  %v5508_v43 = vld [vmem:[%s6459_s14 + $0xc0] sm:$0xff] }
 0x56e   : > { %v5472_v20 = vadd.f32 %v8655_v22, %v5436_v48  ;;  %v4531_v56 = vpop.f32.mrf.mxu2 }
 0x570   : > { %v5536_v2 = vadd.f32 %v5504_v37, %v5472_v20  ;;  %v5127_v37 = vadd.f32 %v5081_v52, %v4849_v21 }
 0x571   : > { %v5347_v17 = vpop.f32.mrf.mxu1 }
 0x572   : > { %v5568_v35 = vmax.f32 %v5536_v2, 0.0  ;;  %v5401_v0 = vadd.f32 %v5347_v17, %v5123_v40  ;;  %v4809_v31 = vpop.f32.mrf.mxu3  ;;  %v5509_v40 = vld [vmem:[%s6459_s14 + $0xc8] sm:$0xff]  ;;  %v9298_v17 = vld [vmem:[#allocation13_spill] sm:$0xff] }
 0x574   : > { %5600 = vst.msk [vmem:[%s8668_s19 + $0xa0] sm:$0xff] %vm279_vm1, %v5568_v35  ;;  %v5437_v58 = vmul.f32 %v8649_v50, %v5401_v0  ;;  %v5084_v34 = vpop.f32.mrf.mxu0  ;;  %v9299_v35 = vld [vmem:[#allocation19_spill] sm:$0xff] }
 0x575   : > { %v4295_v28 = vadd.f32 %v9299_v35, %v9298_v17  ;;  %v5128_v18 = vadd.f32 %v5084_v34, %v4850_v44  ;;  %v5513_v17 = vld [vmem:[%s6459_s14 + $0xe8] sm:$0xff]  ;;  %v9306_v35 = vld [vmem:[#allocation15_spill] sm:$0xff] }
 0x576   : > { %v5473_v27 = vadd.f32 %v8655_v22, %v5437_v58  ;;  %v4534_v58 = vpop.f32.mrf.mxu2 }
 0x577   : > { %v4573_v14 = vadd.f32 %v4531_v56, %v4295_v28  ;;  %v9304_v56 = vld [vmem:[#allocation18_spill] sm:$0xff] }
 0x578   : > { %v5537_v7 = vadd.f32 %v5505_v51, %v5473_v27  ;;  %v9307_v28 = vld [vmem:[#allocation26_spill] sm:$0xff] }
 0x579   : > { %v5350_v63 = vpop.f32.mrf.mxu1 }
 0x57a   : > { %v5569_v39 = vmax.f32 %v5537_v7, 0.0  ;;  %v5402_v19 = vadd.f32 %v5350_v63, %v5124_v46  ;;  %v4851_v7 = vadd.f32 %v4809_v31, %v4573_v14  ;;  %v4812_v12 = vpop.f32.mrf.mxu3  ;;  %v5510_v63 = vld [vmem:[%s6459_s14 + $0xd0] sm:$0xff] }
 0x57c   : > { %5601 = vst.msk [vmem:[%s8668_s19 + $0xa8] sm:$0xff] %vm279_vm1, %v5569_v39  ;;  %v5438_v13 = vmul.f32 %v8649_v50, %v5402_v19  ;;  %v5087_v0 = vpop.f32.mrf.mxu0  ;;  %v9300_v39 = vld [vmem:[#allocation12_spill] sm:$0xff]  ;;  %v9301_v19 = vld [vmem:[#allocation17_spill] sm:$0xff] }
 0x57d   : > { %v4296_v29 = vadd.f32 %v9301_v19, %v9300_v39  ;;  %v5129_v16 = vadd.f32 %v5087_v0, %v4851_v7  ;;  %v4299_v0 = vadd.f32 %v9307_v28, %v9306_v35 }
 0x57e   : > { %v5474_v54 = vadd.f32 %v8655_v22, %v5438_v13  ;;  %v4537_v45 = vpop.f32.mrf.mxu2 }
 0x57f   : > { %v4574_v47 = vadd.f32 %v4534_v58, %v4296_v29 }
 0x580   : > { %v5538_v11 = vadd.f32 %v5506_v57, %v5474_v54 }
 0x581   : > { %v5353_v60 = vpop.f32.mrf.mxu1  ;;  %v4852_v52 = vadd.f32 %v4812_v12, %v4574_v47 }
 0x582   : > { %v5570_v49 = vmax.f32 %v5538_v11, 0.0  ;;  %v5403_v4 = vadd.f32 %v5353_v60, %v5125_v41  ;;  %v4815_v59 = vpop.f32.mrf.mxu3 }
 0x584   : > { %5602 = vst.msk [vmem:[%s8668_s19 + $0xb0] sm:$0xff] %vm279_vm1, %v5570_v49  ;;  %v5439_v3 = vmul.f32 %v8649_v50, %v5403_v4  ;;  %v5090_v57 = vpop.f32.mrf.mxu0  ;;  %v5511_v4 = vld [vmem:[%s6459_s14 + $0xd8] sm:$0xff] }
 0x586   : > { %v5475_v32 = vadd.f32 %v8655_v22, %v5439_v3  ;;  %v4297_v3 = vadd.f32 %v9303_v6, %v9302_v33 }
 0x588   : > { %v5539_v1 = vadd.f32 %v5507_v24, %v5475_v32  ;;  %v4575_v32 = vadd.f32 %v4537_v45, %v4297_v3 }
 0x589   : > { %v5356_v42 = vpop.f32.mrf.mxu1 }
 0x58a   : > { %v5571_v55 = vmax.f32 %v5539_v1, 0.0  ;;  %v5404_v9 = vadd.f32 %v5356_v42, %v5126_v61  ;;  %v5130_v1 = vadd.f32 %v5090_v57, %v4852_v52  ;;  %v4853_v34 = vadd.f32 %v4815_v59, %v4575_v32 }
 0x58c   : > { %5603 = vst.msk [vmem:[%s8668_s19 + $0xb8] sm:$0xff] %vm279_vm1, %v5571_v55  ;;  %v5440_v30 = vmul.f32 %v8649_v50, %v5404_v9  ;;  %v5093_v55 = vpop.f32.mrf.mxu0  ;;  %v4540_v9 = vpop.f32.mrf.mxu2 }
 0x58e   : > { %v5476_v26 = vadd.f32 %v8655_v22, %v5440_v30  ;;  %v5512_v30 = vld [vmem:[%s6459_s14 + $0xe0] sm:$0xff] }
 0x590   : > { %v5540_v48 = vadd.f32 %v5508_v43, %v5476_v26  ;;  %v9305_v43 = vld [vmem:[#allocation55_spill] sm:$0xff]  ;;  %v4818_v26 = vpop.f32.mrf.mxu3 }
 0x591   : > { %v5359_v10 = vpop.f32.mrf.mxu1  ;;  %v4298_v15 = vadd.f32 %v9305_v43, %v9304_v56 }
 0x592   : > { %v5572_v53 = vmax.f32 %v5540_v48, 0.0  ;;  %v5405_v20 = vadd.f32 %v5359_v10, %v5127_v37  ;;  %v5131_v37 = vadd.f32 %v5093_v55, %v4853_v34 }
 0x593   : > { %v4576_v8 = vadd.f32 %v4540_v9, %v4298_v15 }
 0x594   : > { %5604 = vst.msk [vmem:[%s8668_s19 + $0xc0] sm:$0xff] %vm279_vm1, %v5572_v53  ;;  %v5441_v2 = vmul.f32 %v8649_v50, %v5405_v20  ;;  %v5096_v31 = vpop.f32.mrf.mxu0 }
 0x595   : > { %v4854_v44 = vadd.f32 %v4818_v26, %v4576_v8 }
 0x596   : > { %v5477_v5 = vadd.f32 %v8655_v22, %v5441_v2 }
 0x597   : > { %v5132_v58 = vadd.f32 %v5096_v31, %v4854_v44 }
 0x598   : > { %v5541_v51 = vadd.f32 %v5509_v40, %v5477_v5  ;;  %v4543_v40 = vpop.f32.mrf.mxu2 }
 0x599   : > { %v5362_v27 = vpop.f32.mrf.mxu1  ;;  %v4577_v14 = vadd.f32 %v4543_v40, %v4299_v0 }
 0x59a   : > { %v5573_v36 = vmax.f32 %v5541_v51, 0.0  ;;  %v5406_v25 = vadd.f32 %v5362_v27, %v5128_v18  ;;  %v4821_v18 = vpop.f32.mrf.mxu3 }
 0x59b   : > { %v4855_v7 = vadd.f32 %v4821_v18, %v4577_v14 }
 0x59c   : > { %5605 = vst.msk [vmem:[%s8668_s19 + $0xc8] sm:$0xff] %vm279_vm1, %v5573_v36  ;;  %v5442_v46 = vmul.f32 %v8649_v50, %v5406_v25  ;;  %v5099_v12 = vpop.f32.mrf.mxu0 }
 0x59d   : > { %v5133_v19 = vadd.f32 %v5099_v12, %v4855_v7 }
 0x59e   : > { %v5478_v13 = vadd.f32 %v8655_v22, %v5442_v46 }
 0x5a0   : > { %v5542_v54 = vadd.f32 %v5510_v63, %v5478_v13  ;;  %v5514_v63 = vld [vmem:[%s6459_s14 + $0xf0] sm:$0xff] }
 0x5a1   : > { %v5365_v11 = vpop.f32.mrf.mxu1 }
 0x5a2   : > { %v5574_v41 = vmax.f32 %v5542_v54, 0.0  ;;  %v5407_v60 = vadd.f32 %v5365_v11, %v5129_v16  ;;  %v5515_v16 = vld [vmem:[%s6459_s14 + $0xf8] sm:$0xff] }
 0x5a4   : > { %5606 = vst.msk [vmem:[%s8668_s19 + $0xd0] sm:$0xff] %vm279_vm1, %v5574_v41  ;;  %v5443_v49 = vmul.f32 %v8649_v50, %v5407_v60 }
 0x5a6   : > { %v5479_v24 = vadd.f32 %v8655_v22, %v5443_v49 }
 0x5a8   : > { %v5543_v62 = vadd.f32 %v5511_v4, %v5479_v24 }
 0x5a9   : > { %v5368_v61 = vpop.f32.mrf.mxu1 }
 0x5aa   : > { %v5575_v38 = vmax.f32 %v5543_v62, 0.0  ;;  %v5408_v42 = vadd.f32 %v5368_v61, %v5130_v1 }
 0x5ac   : > { %5607 = vst.msk [vmem:[%s8668_s19 + $0xd8] sm:$0xff] %vm279_vm1, %v5575_v38  ;;  %v5444_v21 = vmul.f32 %v8649_v50, %v5408_v42 }
 0x5ae   : > { %v5480_v23 = vadd.f32 %v8655_v22, %v5444_v21 }
 0x5b0   : > { %v5544_v48 = vadd.f32 %v5512_v30, %v5480_v23 }
 0x5b1   : > { %v5371_v10 = vpop.f32.mrf.mxu1 }
 0x5b2   : > { %v5576_v53 = vmax.f32 %v5544_v48, 0.0  ;;  %v5409_v20 = vadd.f32 %v5371_v10, %v5131_v37 }
 0x5b4   : > { %5608 = vst.msk [vmem:[%s8668_s19 + $0xe0] sm:$0xff] %vm279_vm1, %v5576_v53  ;;  %v5445_v2 = vmul.f32 %v8649_v50, %v5409_v20 }
 0x5b6   : > { %v5481_v5 = vadd.f32 %v8655_v22, %v5445_v2 }
 0x5b8   : > { %v5545_v51 = vadd.f32 %v5513_v17, %v5481_v5 }
 0x5b9   : > { %v5374_v27 = vpop.f32.mrf.mxu1 }
 0x5ba   : > { %v5577_v36 = vmax.f32 %v5545_v51, 0.0  ;;  %v5410_v25 = vadd.f32 %v5374_v27, %v5132_v58 }
 0x5bc   : > { %5609 = vst.msk [vmem:[%s8668_s19 + $0xe8] sm:$0xff] %vm279_vm1, %v5577_v36  ;;  %v5446_v46 = vmul.f32 %v8649_v50, %v5410_v25 }
 0x5be   : > { %v5482_v39 = vadd.f32 %v8655_v22, %v5446_v46 }
 0x5c0   : > { %v5546_v29 = vadd.f32 %v5514_v63, %v5482_v39 }
 0x5c1   : > { %v5377_v13 = vpop.f32.mrf.mxu1 }
 0x5c2   : > { %v5578_v57 = vmax.f32 %v5546_v29, 0.0  ;;  %v5411_v47 = vadd.f32 %v5377_v13, %v5133_v19 }
 0x5c4   : > { %5610 = vst.msk [vmem:[%s8668_s19 + $0xf0] sm:$0xff] %vm279_vm1, %v5578_v57  ;;  %v5447_v54 = vmul.f32 %v8649_v50, %v5411_v47 }
 0x5c6   : > { %v5483_v45 = vadd.f32 %v8655_v22, %v5447_v54 }
 0x5c8   : > { %v5547_v11 = vadd.f32 %v5515_v16, %v5483_v45 }
 0x5ca   : > { %v5579_v41 = vmax.f32 %v5547_v11, 0.0 }
 0x5cc   : > { %5611 = vst.msk [vmem:[%s8668_s19 + $0xf8] sm:$0xff] %vm279_vm1, %v5579_v41 }
 0x5cd PF: > { %s17_s24 = sadd.s32 1, %s6315_s24  }
 0x5ce   : > { %p14_p4 = scmp.ge.s32.totalorder %s17_s24, 4  }
 0x5d0   :  { %16 = sbr.rel (!%p14_p4) target bundleno = 1 (0x1), region = 96 }

</bundles_post_ra>
